<compile_context>
chip_gen: v7x
topology: tpu7x:2x2x1
jax: 0.10.0
libtpu: 0.0.40
codegen_flags: <defaults>
</compile_context>

<pallas_src>
import jax
import jax.numpy as jnp
from jax import lax
from jax.experimental import pallas as pl
from jax.experimental.pallas import tpu as pltpu

# ----------------------------- model dims -----------------------------------
B = 2          # batch
T = 8          # decoder sequence length
S = 16         # encoder sequence length
D = 32         # model width
H = 4          # heads
HD = D // H    # head dim
V = 64         # vocab
VP = 128       # vocab padded to a full lane width for a dense logits store
MLP = 4 * D    # mlp hidden
N_LAYERS = 2

# Order of the stacked per-layer weights passed to the kernel.
WEIGHT_KEYS = ("ln1_g", "ln1_b", "wqkv", "bqkv", "wo", "bo",
               "ln2_g", "ln2_b", "wq", "bq", "wkv", "bkv", "wo2", "bo2",
               "ln3_g", "ln3_b", "w1", "b1", "w2", "b2")


# ------------------------------ in-kernel helpers -----------------------------
def _layernorm(x, g, b, eps=1e-5):
    mu = jnp.mean(x, axis=-1, keepdims=True)
    xc = x - mu
    var = jnp.mean(xc * xc, axis=-1, keepdims=True)
    return xc * lax.rsqrt(var + eps) * g + b


def _mha(q, k, v, causal):
    # q: (Tq, H, HD), k/v: (Tk, H, HD)  -> (Tq, D)
    scale = 1.0 / (HD ** 0.5)
    scores = jnp.einsum("thd,shd->hts", q, k,
                        preferred_element_type=jnp.float32) * scale   # (H,Tq,Tk)
    if causal:
        tq, tk = scores.shape[1], scores.shape[2]
        ri = lax.broadcasted_iota(jnp.int32, (tq, tk), 0)
        ci = lax.broadcasted_iota(jnp.int32, (tq, tk), 1)
        scores = jnp.where((ri >= ci)[None, :, :], scores, -1e30)
    m = jnp.max(scores, axis=-1, keepdims=True)
    e = jnp.exp(scores - m)
    # divide -> EUP reciprocal (frees VALU slots)
    p = e * pl.reciprocal(jnp.sum(e, axis=-1, keepdims=True), approx=True)
    out = jnp.einsum("hts,shd->thd", p, v,
                     preferred_element_type=jnp.float32)              # (Tq,H,HD)
    return out.reshape(out.shape[0], D)


# ------------------------------ fused kernel ----------------------------------
def fused_decoder_kernel(tok_ref, enc_ref, wte_ref, wpe_ref,
                         ln1_g, ln1_b, wqkv, bqkv, wo, bo,
                         ln2_g, ln2_b, wq, bq, wkv, bkv, wo2, bo2,
                         ln3_g, ln3_b, w1, b1, w2, b2,
                         lnf_g, lnf_b, wte_t,
                         out_ref):
    # ---- token embedding as a one-hot MXU matmul + positional embedding ----
    onehot = (tok_ref[...] ==
              lax.broadcasted_iota(jnp.int32, (B * T, V), 1)).astype(jnp.float32)
    x = (jnp.dot(onehot, wte_ref[...], preferred_element_type=jnp.float32)
         + wpe_ref[...])                                  # (B*T, D)
    enc = enc_ref[...]                                    # (B*S, D)

    for li in range(N_LAYERS):                            # static unroll (L=2)
        # ---- causal self-attention ----
        h = _layernorm(x, ln1_g[li], ln1_b[li])
        qkv = jnp.dot(h, wqkv[li], preferred_element_type=jnp.float32) + bqkv[li]
        parts = []
        for b in range(B):                                # static, B=2
            qkv_b = qkv[b * T:(b + 1) * T, :]
            q = qkv_b[:, 0 * D:1 * D].reshape(T, H, HD)
            k = qkv_b[:, 1 * D:2 * D].reshape(T, H, HD)
            v = qkv_b[:, 2 * D:3 * D].reshape(T, H, HD)
            parts.append(_mha(q, k, v, causal=True))
        attn = jnp.concatenate(parts, axis=0)             # (B*T, D)
        x = x + jnp.dot(attn, wo[li], preferred_element_type=jnp.float32) + bo[li]

        # ---- cross-attention to the encoder (fused K/V projection) ----
        h = _layernorm(x, ln2_g[li], ln2_b[li])
        qc = jnp.dot(h, wq[li], preferred_element_type=jnp.float32) + bq[li]
        kvc = jnp.dot(enc, wkv[li], preferred_element_type=jnp.float32) + bkv[li]
        parts = []
        for b in range(B):
            q = qc[b * T:(b + 1) * T, :].reshape(T, H, HD)
            kv_b = kvc[b * S:(b + 1) * S, :]
            k = kv_b[:, 0 * D:1 * D].reshape(S, H, HD)
            v = kv_b[:, 1 * D:2 * D].reshape(S, H, HD)
            parts.append(_mha(q, k, v, causal=False))
        cattn = jnp.concatenate(parts, axis=0)
        x = x + jnp.dot(cattn, wo2[li], preferred_element_type=jnp.float32) + bo2[li]

        # ---- MLP ----
        h = _layernorm(x, ln3_g[li], ln3_b[li])
        h = jax.nn.gelu(jnp.dot(h, w1[li], preferred_element_type=jnp.float32) + b1[li])
        x = x + jnp.dot(h, w2[li], preferred_element_type=jnp.float32) + b2[li]

    # ---- final LN + logits (wte pre-transposed & lane-padded to VP=128) ----
    xf = _layernorm(x, lnf_g[...], lnf_b[...])
    out_ref[...] = jnp.dot(xf, wte_t[...],
                           preferred_element_type=jnp.float32).astype(out_ref.dtype)


# ------------------------------ cost estimate ---------------------------------
def _flops_and_transcendentals():
    BT, BS = B * T, B * S
    per_layer = (
        2 * BT * D * (3 * D)           # fused QKV projection
        + 4 * B * H * T * T * HD       # self-attn scores + PV
        + 2 * BT * D * D               # self-attn output projection
        + 2 * BT * D * D               # cross-attn Q projection
        + 2 * BS * D * (2 * D)         # fused cross-attn K/V projection
        + 4 * B * H * T * S * HD       # cross-attn scores + PV
        + 2 * BT * D * D               # cross-attn output projection
        + 2 * BT * D * MLP             # MLP fc1
        + 2 * BT * MLP * D             # MLP fc2
    )
    flops = (N_LAYERS * per_layer
             + 2 * BT * V * D          # one-hot token-embedding matmul
             + 2 * BT * D * VP)        # logits matmul
    transcend = N_LAYERS * (B * H * T * (T + S) + BT * MLP) + 4 * BT
    return flops, transcend


_FLOPS, _TRANS = _flops_and_transcendentals()


# ------------------------------ forward ----------------------------------------
@jax.jit
def decoder_forward(tokens, encoder_embd, params):
    tok = tokens.reshape(B * T, 1).astype(jnp.int32)
    enc = encoder_embd.astype(jnp.float32).reshape(B * S, D)
    wpe_tiled = jnp.tile(params["wpe"], (B, 1))           # (B*T, D), tiny

    args = (tok, enc, params["wte"], wpe_tiled,
            *[params[k] for k in WEIGHT_KEYS],
            params["lnf_g"], params["lnf_b"], params["wte_t_pad"])

    bytes_accessed = (sum(int(a.size) * jnp.dtype(a.dtype).itemsize for a in args)
                      + B * T * VP * 4)
    cost = pl.CostEstimate(flops=_FLOPS, transcendentals=_TRANS,
                           bytes_accessed=bytes_accessed)

    logits_pad = pl.pallas_call(
        fused_decoder_kernel,
        out_shape=jax.ShapeDtypeStruct((B * T, VP), jnp.float32),
        cost_estimate=cost,
    )(*args)

    return logits_pad[:, :V].reshape(B, T, V)


# --------------------------- parameter init -----------------------------------
def init_params(key):
    def nrm(k, shape, scale=0.02):
        return scale * jax.random.normal(k, shape, dtype=jnp.float32)

    keys = jax.random.split(key, 2 + N_LAYERS)
    wte = nrm(keys[0], (V, D))
    params = {
        "wte": wte,
        # pre-transposed + zero-padded to 128 lanes for the logits matmul
        "wte_t_pad": jnp.zeros((D, VP), jnp.float32).at[:, :V].set(wte.T),
        "wpe": nrm(keys[1], (T, D)),
        "lnf_g": jnp.ones((1, D), jnp.float32),
        "lnf_b": jnp.zeros((1, D), jnp.float32),
    }

    per = {k: [] for k in WEIGHT_KEYS}
    for li in range(N_LAYERS):
        lk = jax.random.split(keys[2 + li], 8)
        layer = {
            "ln1_g": jnp.ones((1, D), jnp.float32), "ln1_b": jnp.zeros((1, D), jnp.float32),
            "wqkv": nrm(lk[0], (D, 3 * D)), "bqkv": jnp.zeros((1, 3 * D), jnp.float32),
            "wo": nrm(lk[1], (D, D)), "bo": jnp.zeros((1, D), jnp.float32),
            "ln2_g": jnp.ones((1, D), jnp.float32), "ln2_b": jnp.zeros((1, D), jnp.float32),
            "wq": nrm(lk[2], (D, D)), "bq": jnp.zeros((1, D), jnp.float32),
            "wkv": nrm(lk[3], (D, 2 * D)), "bkv": jnp.zeros((1, 2 * D), jnp.float32),
            "wo2": nrm(lk[4], (D, D)), "bo2": jnp.zeros((1, D), jnp.float32),
            "ln3_g": jnp.ones((1, D), jnp.float32), "ln3_b": jnp.zeros((1, D), jnp.float32),
            "w1": nrm(lk[5], (D, MLP)), "b1": jnp.zeros((1, MLP), jnp.float32),
            "w2": nrm(lk[6], (MLP, D)), "b2": jnp.zeros((1, D), jnp.float32),
        }
        for k in WEIGHT_KEYS:
            per[k].append(layer[k])

    for k in WEIGHT_KEYS:
        params[k] = jnp.stack(per[k], axis=0)   # leading layer axis (N_LAYERS, ...)
    return params


# -------------------------------- main ------------------------------------------
if __name__ == "__main__":
    key = jax.random.PRNGKey(0)
    k_param, k_tok, k_enc = jax.random.split(key, 3)

    params = init_params(k_param)
    tokens = jax.random.randint(k_tok, (B, T), 0, V, dtype=jnp.int32)
    encoder_embd = jax.random.normal(k_enc, (B, S, D), dtype=jnp.float32)

    logits = decoder_forward(tokens, encoder_embd, params)
    jax.block_until_ready(logits)
    assert logits.shape == (B, T, V)
    assert bool(jnp.all(jnp.isfinite(logits)))
    print("KERNEL_OK")
</pallas_src>

<mosaic_0001>
module attributes {stable_mosaic.version = 11 : i64} {
  func.func @fused_decoder_kernel(%arg0: memref<16x1xi32, #tpu.memory_space<vmem>>, %arg1: memref<32x32xf32, #tpu.memory_space<vmem>>, %arg2: memref<64x32xf32, #tpu.memory_space<vmem>>, %arg3: memref<16x32xf32, #tpu.memory_space<vmem>>, %arg4: memref<2x1x32xf32, #tpu.memory_space<vmem>>, %arg5: memref<2x1x32xf32, #tpu.memory_space<vmem>>, %arg6: memref<2x32x96xf32, #tpu.memory_space<vmem>>, %arg7: memref<2x1x96xf32, #tpu.memory_space<vmem>>, %arg8: memref<2x32x32xf32, #tpu.memory_space<vmem>>, %arg9: memref<2x1x32xf32, #tpu.memory_space<vmem>>, %arg10: memref<2x1x32xf32, #tpu.memory_space<vmem>>, %arg11: memref<2x1x32xf32, #tpu.memory_space<vmem>>, %arg12: memref<2x32x32xf32, #tpu.memory_space<vmem>>, %arg13: memref<2x1x32xf32, #tpu.memory_space<vmem>>, %arg14: memref<2x32x64xf32, #tpu.memory_space<vmem>>, %arg15: memref<2x1x64xf32, #tpu.memory_space<vmem>>, %arg16: memref<2x32x32xf32, #tpu.memory_space<vmem>>, %arg17: memref<2x1x32xf32, #tpu.memory_space<vmem>>, %arg18: memref<2x1x32xf32, #tpu.memory_space<vmem>>, %arg19: memref<2x1x32xf32, #tpu.memory_space<vmem>>, %arg20: memref<2x32x128xf32, #tpu.memory_space<vmem>>, %arg21: memref<2x1x128xf32, #tpu.memory_space<vmem>>, %arg22: memref<2x128x32xf32, #tpu.memory_space<vmem>>, %arg23: memref<2x1x32xf32, #tpu.memory_space<vmem>>, %arg24: memref<1x32xf32, #tpu.memory_space<vmem>>, %arg25: memref<1x32xf32, #tpu.memory_space<vmem>>, %arg26: memref<32x128xf32, #tpu.memory_space<vmem>>, %arg27: memref<16x128xf32, #tpu.memory_space<vmem>>) attributes {dimension_semantics = [], scalar_prefetch = 0 : i64, scratch_operands = 0 : i64, tpu.core_type = #tpu.core_type<tc>} {
    %c0 = arith.constant 0 : index
    %c0_0 = arith.constant 0 : index
    %0 = vector.load %arg0[%c0, %c0_0] : memref<16x1xi32, #tpu.memory_space<vmem>>, vector<16x1xi32>
    %1 = tpu.iota {dimensions = array<i32: 1>} : vector<16x64xi32>
    %2 = vector.broadcast %0 : vector<16x1xi32> to vector<16x64xi32>
    %3 = arith.cmpi eq, %2, %1 : vector<16x64xi32>
    %4 = arith.extui %3 : vector<16x64xi1> to vector<16x64xi32>
    %5 = arith.sitofp %4 : vector<16x64xi32> to vector<16x64xf32>
    %c0_1 = arith.constant 0 : index
    %c0_2 = arith.constant 0 : index
    %6 = vector.load %arg2[%c0_1, %c0_2] : memref<64x32xf32, #tpu.memory_space<vmem>>, vector<64x32xf32>
    %cst = arith.constant dense<0.000000e+00> : vector<16x32xf32>
    %7 = tpu.matmul %5, %6, %cst {dimension_numbers = #tpu.dot_dimension_numbers<[1], [0], [0], [1], [0, 0, 1, 1], [], []>} : vector<16x64xf32>, vector<64x32xf32>, vector<16x32xf32> -> vector<16x32xf32>
    %c0_3 = arith.constant 0 : index
    %c0_4 = arith.constant 0 : index
    %8 = vector.load %arg3[%c0_3, %c0_4] : memref<16x32xf32, #tpu.memory_space<vmem>>, vector<16x32xf32>
    %9 = arith.addf %7, %8 : vector<16x32xf32>
    %c0_5 = arith.constant 0 : index
    %c0_6 = arith.constant 0 : index
    %10 = vector.load %arg1[%c0_5, %c0_6] : memref<32x32xf32, #tpu.memory_space<vmem>>, vector<32x32xf32>
    %c0_7 = arith.constant 0 : index
    %c0_8 = arith.constant 0 : index
    %c0_9 = arith.constant 0 : index
    %11 = vector.load %arg4[%c0_7, %c0_8, %c0_9] : memref<2x1x32xf32, #tpu.memory_space<vmem>>, vector<1x1x32xf32>
    %12 = vector.shape_cast %11 : vector<1x1x32xf32> to vector<1x32xf32>
    %c0_10 = arith.constant 0 : index
    %c0_11 = arith.constant 0 : index
    %c0_12 = arith.constant 0 : index
    %13 = vector.load %arg5[%c0_10, %c0_11, %c0_12] : memref<2x1x32xf32, #tpu.memory_space<vmem>>, vector<1x1x32xf32>
    %14 = vector.shape_cast %13 : vector<1x1x32xf32> to vector<1x32xf32>
    %cst_13 = arith.constant dense<0.000000e+00> : vector<16xf32>
    %15 = vector.multi_reduction <add>, %9, %cst_13 [1] : vector<16x32xf32> to vector<16xf32>
    %16 = vector.shape_cast %15 : vector<16xf32> to vector<16x1xf32>
    %cst_14 = arith.constant 3.200000e+01 : f32
    %17 = vector.broadcast %cst_14 : f32 to vector<16x1xf32>
    %18 = arith.divf %16, %17 : vector<16x1xf32>
    %19 = vector.broadcast %18 : vector<16x1xf32> to vector<16x32xf32>
    %20 = arith.subf %9, %19 : vector<16x32xf32>
    %21 = arith.mulf %20, %20 : vector<16x32xf32>
    %cst_15 = arith.constant dense<0.000000e+00> : vector<16xf32>
    %22 = vector.multi_reduction <add>, %21, %cst_15 [1] : vector<16x32xf32> to vector<16xf32>
    %23 = vector.shape_cast %22 : vector<16xf32> to vector<16x1xf32>
    %cst_16 = arith.constant 3.200000e+01 : f32
    %24 = vector.broadcast %cst_16 : f32 to vector<16x1xf32>
    %25 = arith.divf %23, %24 : vector<16x1xf32>
    %cst_17 = arith.constant 9.99999974E-6 : f32
    %26 = vector.broadcast %cst_17 : f32 to vector<16x1xf32>
    %27 = arith.addf %25, %26 : vector<16x1xf32>
    %28 = math.rsqrt %27 : vector<16x1xf32>
    %29 = vector.broadcast %28 : vector<16x1xf32> to vector<16x32xf32>
    %30 = arith.mulf %20, %29 : vector<16x32xf32>
    %31 = vector.broadcast %12 : vector<1x32xf32> to vector<16x32xf32>
    %32 = arith.mulf %30, %31 : vector<16x32xf32>
    %33 = vector.broadcast %14 : vector<1x32xf32> to vector<16x32xf32>
    %34 = arith.addf %32, %33 : vector<16x32xf32>
    %c0_18 = arith.constant 0 : index
    %c0_19 = arith.constant 0 : index
    %c0_20 = arith.constant 0 : index
    %35 = vector.load %arg6[%c0_18, %c0_19, %c0_20] : memref<2x32x96xf32, #tpu.memory_space<vmem>>, vector<1x32x96xf32>
    %36 = vector.shape_cast %35 : vector<1x32x96xf32> to vector<32x96xf32>
    %cst_21 = arith.constant dense<0.000000e+00> : vector<16x96xf32>
    %37 = tpu.matmul %34, %36, %cst_21 {dimension_numbers = #tpu.dot_dimension_numbers<[1], [0], [0], [1], [0, 0, 1, 1], [], []>} : vector<16x32xf32>, vector<32x96xf32>, vector<16x96xf32> -> vector<16x96xf32>
    %c0_22 = arith.constant 0 : index
    %c0_23 = arith.constant 0 : index
    %c0_24 = arith.constant 0 : index
    %38 = vector.load %arg7[%c0_22, %c0_23, %c0_24] : memref<2x1x96xf32, #tpu.memory_space<vmem>>, vector<1x1x96xf32>
    %39 = vector.shape_cast %38 : vector<1x1x96xf32> to vector<1x96xf32>
    %40 = vector.broadcast %39 : vector<1x96xf32> to vector<16x96xf32>
    %41 = arith.addf %37, %40 : vector<16x96xf32>
    %42 = vector.extract_strided_slice %41 {offsets = [0, 0], sizes = [8, 96], strides = [1, 1]} : vector<16x96xf32> to vector<8x96xf32>
    %43 = vector.extract_strided_slice %42 {offsets = [0, 0], sizes = [8, 32], strides = [1, 1]} : vector<8x96xf32> to vector<8x32xf32>
    %44 = vector.shape_cast %43 : vector<8x32xf32> to vector<8x4x8xf32>
    %45 = vector.extract_strided_slice %42 {offsets = [0, 32], sizes = [8, 32], strides = [1, 1]} : vector<8x96xf32> to vector<8x32xf32>
    %46 = vector.shape_cast %45 : vector<8x32xf32> to vector<8x4x8xf32>
    %47 = vector.extract_strided_slice %42 {offsets = [0, 64], sizes = [8, 32], strides = [1, 1]} : vector<8x96xf32> to vector<8x32xf32>
    %48 = vector.shape_cast %47 : vector<8x32xf32> to vector<8x4x8xf32>
    "tpu.trace_start"() <{level = 10 : i32, message = "thd,shd->hts"}> : () -> ()
    %cst_25 = arith.constant dense<0.000000e+00> : vector<4x8x8xf32>
    %49 = tpu.matmul %44, %46, %cst_25 {dimension_numbers = #tpu.dot_dimension_numbers<[2], [2], [0], [0], [0, 1, 0, 0, 1, 0], [1], [1]>} : vector<8x4x8xf32>, vector<8x4x8xf32>, vector<4x8x8xf32> -> vector<4x8x8xf32>
    "tpu.trace_stop"() : () -> ()
    %cst_26 = arith.constant 0.353553385 : f32
    %50 = vector.broadcast %cst_26 : f32 to vector<4x8x8xf32>
    %51 = arith.mulf %49, %50 : vector<4x8x8xf32>
    %52 = tpu.iota {dimensions = array<i32: 0>} : vector<8x8xi32>
    %53 = tpu.iota {dimensions = array<i32: 1>} : vector<8x8xi32>
    %54 = arith.cmpi sge, %52, %53 : vector<8x8xi32>
    %55 = vector.shape_cast %54 : vector<8x8xi1> to vector<1x8x8xi1>
    %cst_27 = arith.constant -1.000000e+30 : f32
    %56 = vector.shape_cast %55 : vector<1x8x8xi1> to vector<1x8x8xi1>
    %57 = vector.broadcast %56 : vector<1x8x8xi1> to vector<4x8x8xi1>
    %58 = vector.broadcast %cst_27 : f32 to vector<4x8x8xf32>
    %59 = arith.select %57, %51, %58 : vector<4x8x8xi1>, vector<4x8x8xf32>
    %cst_28 = arith.constant dense<0xFF800000> : vector<4x8xf32>
    %60 = vector.multi_reduction <maximumf>, %59, %cst_28 [2] : vector<4x8x8xf32> to vector<4x8xf32>
    %61 = vector.shape_cast %60 : vector<4x8xf32> to vector<4x8x1xf32>
    %62 = vector.broadcast %61 : vector<4x8x1xf32> to vector<4x8x8xf32>
    %63 = arith.subf %59, %62 : vector<4x8x8xf32>
    %64 = math.exp %63 : vector<4x8x8xf32>
    %cst_29 = arith.constant dense<0.000000e+00> : vector<4x8xf32>
    %65 = vector.multi_reduction <add>, %64, %cst_29 [2] : vector<4x8x8xf32> to vector<4x8xf32>
    %66 = vector.shape_cast %65 : vector<4x8xf32> to vector<4x8x1xf32>
    %67 = tpu.reciprocal %66 {approx = true} : vector<4x8x1xf32> -> vector<4x8x1xf32>
    %68 = vector.broadcast %67 : vector<4x8x1xf32> to vector<4x8x8xf32>
    %69 = arith.mulf %64, %68 : vector<4x8x8xf32>
    "tpu.trace_start"() <{level = 10 : i32, message = "hts,shd->thd"}> : () -> ()
    %cst_30 = arith.constant dense<0.000000e+00> : vector<4x8x8xf32>
    %70 = tpu.matmul %48, %69, %cst_30 {dimension_numbers = #tpu.dot_dimension_numbers<[0], [2], [2], [1], [0, 1, 0, 2, 1, 1], [1], [0]>} : vector<8x4x8xf32>, vector<4x8x8xf32>, vector<4x8x8xf32> -> vector<4x8x8xf32>
    %71 = tpu.transpose %70, [2, 0, 1] : vector<4x8x8xf32> -> vector<8x4x8xf32>
    "tpu.trace_stop"() : () -> ()
    %72 = vector.shape_cast %71 : vector<8x4x8xf32> to vector<8x32xf32>
    %73 = vector.extract_strided_slice %41 {offsets = [8, 0], sizes = [8, 96], strides = [1, 1]} : vector<16x96xf32> to vector<8x96xf32>
    %74 = vector.extract_strided_slice %73 {offsets = [0, 0], sizes = [8, 32], strides = [1, 1]} : vector<8x96xf32> to vector<8x32xf32>
    %75 = vector.shape_cast %74 : vector<8x32xf32> to vector<8x4x8xf32>
    %76 = vector.extract_strided_slice %73 {offsets = [0, 32], sizes = [8, 32], strides = [1, 1]} : vector<8x96xf32> to vector<8x32xf32>
    %77 = vector.shape_cast %76 : vector<8x32xf32> to vector<8x4x8xf32>
    %78 = vector.extract_strided_slice %73 {offsets = [0, 64], sizes = [8, 32], strides = [1, 1]} : vector<8x96xf32> to vector<8x32xf32>
    %79 = vector.shape_cast %78 : vector<8x32xf32> to vector<8x4x8xf32>
    "tpu.trace_start"() <{level = 10 : i32, message = "thd,shd->hts"}> : () -> ()
    %cst_31 = arith.constant dense<0.000000e+00> : vector<4x8x8xf32>
    %80 = tpu.matmul %75, %77, %cst_31 {dimension_numbers = #tpu.dot_dimension_numbers<[2], [2], [0], [0], [0, 1, 0, 0, 1, 0], [1], [1]>} : vector<8x4x8xf32>, vector<8x4x8xf32>, vector<4x8x8xf32> -> vector<4x8x8xf32>
    "tpu.trace_stop"() : () -> ()
    %cst_32 = arith.constant 0.353553385 : f32
    %81 = vector.broadcast %cst_32 : f32 to vector<4x8x8xf32>
    %82 = arith.mulf %80, %81 : vector<4x8x8xf32>
    %83 = tpu.iota {dimensions = array<i32: 0>} : vector<8x8xi32>
    %84 = tpu.iota {dimensions = array<i32: 1>} : vector<8x8xi32>
    %85 = arith.cmpi sge, %83, %84 : vector<8x8xi32>
    %86 = vector.shape_cast %85 : vector<8x8xi1> to vector<1x8x8xi1>
    %cst_33 = arith.constant -1.000000e+30 : f32
    %87 = vector.shape_cast %86 : vector<1x8x8xi1> to vector<1x8x8xi1>
    %88 = vector.broadcast %87 : vector<1x8x8xi1> to vector<4x8x8xi1>
    %89 = vector.broadcast %cst_33 : f32 to vector<4x8x8xf32>
    %90 = arith.select %88, %82, %89 : vector<4x8x8xi1>, vector<4x8x8xf32>
    %cst_34 = arith.constant dense<0xFF800000> : vector<4x8xf32>
    %91 = vector.multi_reduction <maximumf>, %90, %cst_34 [2] : vector<4x8x8xf32> to vector<4x8xf32>
    %92 = vector.shape_cast %91 : vector<4x8xf32> to vector<4x8x1xf32>
    %93 = vector.broadcast %92 : vector<4x8x1xf32> to vector<4x8x8xf32>
    %94 = arith.subf %90, %93 : vector<4x8x8xf32>
    %95 = math.exp %94 : vector<4x8x8xf32>
    %cst_35 = arith.constant dense<0.000000e+00> : vector<4x8xf32>
    %96 = vector.multi_reduction <add>, %95, %cst_35 [2] : vector<4x8x8xf32> to vector<4x8xf32>
    %97 = vector.shape_cast %96 : vector<4x8xf32> to vector<4x8x1xf32>
    %98 = tpu.reciprocal %97 {approx = true} : vector<4x8x1xf32> -> vector<4x8x1xf32>
    %99 = vector.broadcast %98 : vector<4x8x1xf32> to vector<4x8x8xf32>
    %100 = arith.mulf %95, %99 : vector<4x8x8xf32>
    "tpu.trace_start"() <{level = 10 : i32, message = "hts,shd->thd"}> : () -> ()
    %cst_36 = arith.constant dense<0.000000e+00> : vector<4x8x8xf32>
    %101 = tpu.matmul %79, %100, %cst_36 {dimension_numbers = #tpu.dot_dimension_numbers<[0], [2], [2], [1], [0, 1, 0, 2, 1, 1], [1], [0]>} : vector<8x4x8xf32>, vector<4x8x8xf32>, vector<4x8x8xf32> -> vector<4x8x8xf32>
    %102 = tpu.transpose %101, [2, 0, 1] : vector<4x8x8xf32> -> vector<8x4x8xf32>
    "tpu.trace_stop"() : () -> ()
    %103 = vector.shape_cast %102 : vector<8x4x8xf32> to vector<8x32xf32>
    %104 = tpu.concatenate %72, %103 in 0 : vector<8x32xf32>, vector<8x32xf32> -> vector<16x32xf32>
    %c0_37 = arith.constant 0 : index
    %c0_38 = arith.constant 0 : index
    %c0_39 = arith.constant 0 : index
    %105 = vector.load %arg8[%c0_37, %c0_38, %c0_39] : memref<2x32x32xf32, #tpu.memory_space<vmem>>, vector<1x32x32xf32>
    %106 = vector.shape_cast %105 : vector<1x32x32xf32> to vector<32x32xf32>
    %cst_40 = arith.constant dense<0.000000e+00> : vector<16x32xf32>
    %107 = tpu.matmul %104, %106, %cst_40 {dimension_numbers = #tpu.dot_dimension_numbers<[1], [0], [0], [1], [0, 0, 1, 1], [], []>} : vector<16x32xf32>, vector<32x32xf32>, vector<16x32xf32> -> vector<16x32xf32>
    %108 = arith.addf %9, %107 : vector<16x32xf32>
    %c0_41 = arith.constant 0 : index
    %c0_42 = arith.constant 0 : index
    %c0_43 = arith.constant 0 : index
    %109 = vector.load %arg9[%c0_41, %c0_42, %c0_43] : memref<2x1x32xf32, #tpu.memory_space<vmem>>, vector<1x1x32xf32>
    %110 = vector.shape_cast %109 : vector<1x1x32xf32> to vector<1x32xf32>
    %111 = vector.broadcast %110 : vector<1x32xf32> to vector<16x32xf32>
    %112 = arith.addf %108, %111 : vector<16x32xf32>
    %c0_44 = arith.constant 0 : index
    %c0_45 = arith.constant 0 : index
    %c0_46 = arith.constant 0 : index
    %113 = vector.load %arg10[%c0_44, %c0_45, %c0_46] : memref<2x1x32xf32, #tpu.memory_space<vmem>>, vector<1x1x32xf32>
    %114 = vector.shape_cast %113 : vector<1x1x32xf32> to vector<1x32xf32>
    %c0_47 = arith.constant 0 : index
    %c0_48 = arith.constant 0 : index
    %c0_49 = arith.constant 0 : index
    %115 = vector.load %arg11[%c0_47, %c0_48, %c0_49] : memref<2x1x32xf32, #tpu.memory_space<vmem>>, vector<1x1x32xf32>
    %116 = vector.shape_cast %115 : vector<1x1x32xf32> to vector<1x32xf32>
    %cst_50 = arith.constant dense<0.000000e+00> : vector<16xf32>
    %117 = vector.multi_reduction <add>, %112, %cst_50 [1] : vector<16x32xf32> to vector<16xf32>
    %118 = vector.shape_cast %117 : vector<16xf32> to vector<16x1xf32>
    %cst_51 = arith.constant 3.200000e+01 : f32
    %119 = vector.broadcast %cst_51 : f32 to vector<16x1xf32>
    %120 = arith.divf %118, %119 : vector<16x1xf32>
    %121 = vector.broadcast %120 : vector<16x1xf32> to vector<16x32xf32>
    %122 = arith.subf %112, %121 : vector<16x32xf32>
    %123 = arith.mulf %122, %122 : vector<16x32xf32>
    %cst_52 = arith.constant dense<0.000000e+00> : vector<16xf32>
    %124 = vector.multi_reduction <add>, %123, %cst_52 [1] : vector<16x32xf32> to vector<16xf32>
    %125 = vector.shape_cast %124 : vector<16xf32> to vector<16x1xf32>
    %cst_53 = arith.constant 3.200000e+01 : f32
    %126 = vector.broadcast %cst_53 : f32 to vector<16x1xf32>
    %127 = arith.divf %125, %126 : vector<16x1xf32>
    %cst_54 = arith.constant 9.99999974E-6 : f32
    %128 = vector.broadcast %cst_54 : f32 to vector<16x1xf32>
    %129 = arith.addf %127, %128 : vector<16x1xf32>
    %130 = math.rsqrt %129 : vector<16x1xf32>
    %131 = vector.broadcast %130 : vector<16x1xf32> to vector<16x32xf32>
    %132 = arith.mulf %122, %131 : vector<16x32xf32>
    %133 = vector.broadcast %114 : vector<1x32xf32> to vector<16x32xf32>
    %134 = arith.mulf %132, %133 : vector<16x32xf32>
    %135 = vector.broadcast %116 : vector<1x32xf32> to vector<16x32xf32>
    %136 = arith.addf %134, %135 : vector<16x32xf32>
    %c0_55 = arith.constant 0 : index
    %c0_56 = arith.constant 0 : index
    %c0_57 = arith.constant 0 : index
    %137 = vector.load %arg12[%c0_55, %c0_56, %c0_57] : memref<2x32x32xf32, #tpu.memory_space<vmem>>, vector<1x32x32xf32>
    %138 = vector.shape_cast %137 : vector<1x32x32xf32> to vector<32x32xf32>
    %cst_58 = arith.constant dense<0.000000e+00> : vector<16x32xf32>
    %139 = tpu.matmul %136, %138, %cst_58 {dimension_numbers = #tpu.dot_dimension_numbers<[1], [0], [0], [1], [0, 0, 1, 1], [], []>} : vector<16x32xf32>, vector<32x32xf32>, vector<16x32xf32> -> vector<16x32xf32>
    %c0_59 = arith.constant 0 : index
    %c0_60 = arith.constant 0 : index
    %c0_61 = arith.constant 0 : index
    %140 = vector.load %arg13[%c0_59, %c0_60, %c0_61] : memref<2x1x32xf32, #tpu.memory_space<vmem>>, vector<1x1x32xf32>
    %141 = vector.shape_cast %140 : vector<1x1x32xf32> to vector<1x32xf32>
    %142 = vector.broadcast %141 : vector<1x32xf32> to vector<16x32xf32>
    %143 = arith.addf %139, %142 : vector<16x32xf32>
    %c0_62 = arith.constant 0 : index
    %c0_63 = arith.constant 0 : index
    %c0_64 = arith.constant 0 : index
    %144 = vector.load %arg14[%c0_62, %c0_63, %c0_64] : memref<2x32x64xf32, #tpu.memory_space<vmem>>, vector<1x32x64xf32>
    %145 = vector.shape_cast %144 : vector<1x32x64xf32> to vector<32x64xf32>
    %cst_65 = arith.constant dense<0.000000e+00> : vector<32x64xf32>
    %146 = tpu.matmul %10, %145, %cst_65 {dimension_numbers = #tpu.dot_dimension_numbers<[1], [0], [0], [1], [0, 0, 1, 1], [], []>} : vector<32x32xf32>, vector<32x64xf32>, vector<32x64xf32> -> vector<32x64xf32>
    %c0_66 = arith.constant 0 : index
    %c0_67 = arith.constant 0 : index
    %c0_68 = arith.constant 0 : index
    %147 = vector.load %arg15[%c0_66, %c0_67, %c0_68] : memref<2x1x64xf32, #tpu.memory_space<vmem>>, vector<1x1x64xf32>
    %148 = vector.shape_cast %147 : vector<1x1x64xf32> to vector<1x64xf32>
    %149 = vector.broadcast %148 : vector<1x64xf32> to vector<32x64xf32>
    %150 = arith.addf %146, %149 : vector<32x64xf32>
    %151 = vector.extract_strided_slice %143 {offsets = [0, 0], sizes = [8, 32], strides = [1, 1]} : vector<16x32xf32> to vector<8x32xf32>
    %152 = vector.shape_cast %151 : vector<8x32xf32> to vector<8x4x8xf32>
    %153 = vector.extract_strided_slice %150 {offsets = [0, 0], sizes = [16, 64], strides = [1, 1]} : vector<32x64xf32> to vector<16x64xf32>
    %154 = vector.extract_strided_slice %153 {offsets = [0, 0], sizes = [16, 32], strides = [1, 1]} : vector<16x64xf32> to vector<16x32xf32>
    %155 = vector.shape_cast %154 : vector<16x32xf32> to vector<16x4x8xf32>
    %156 = vector.extract_strided_slice %153 {offsets = [0, 32], sizes = [16, 32], strides = [1, 1]} : vector<16x64xf32> to vector<16x32xf32>
    %157 = vector.shape_cast %156 : vector<16x32xf32> to vector<16x4x8xf32>
    "tpu.trace_start"() <{level = 10 : i32, message = "thd,shd->hts"}> : () -> ()
    %cst_69 = arith.constant dense<0.000000e+00> : vector<4x8x16xf32>
    %158 = tpu.matmul %152, %155, %cst_69 {dimension_numbers = #tpu.dot_dimension_numbers<[2], [2], [0], [0], [0, 1, 0, 0, 1, 0], [1], [1]>} : vector<8x4x8xf32>, vector<16x4x8xf32>, vector<4x8x16xf32> -> vector<4x8x16xf32>
    "tpu.trace_stop"() : () -> ()
    %cst_70 = arith.constant 0.353553385 : f32
    %159 = vector.broadcast %cst_70 : f32 to vector<4x8x16xf32>
    %160 = arith.mulf %158, %159 : vector<4x8x16xf32>
    %cst_71 = arith.constant dense<0xFF800000> : vector<4x8xf32>
    %161 = vector.multi_reduction <maximumf>, %160, %cst_71 [2] : vector<4x8x16xf32> to vector<4x8xf32>
    %162 = vector.shape_cast %161 : vector<4x8xf32> to vector<4x8x1xf32>
    %163 = vector.broadcast %162 : vector<4x8x1xf32> to vector<4x8x16xf32>
    %164 = arith.subf %160, %163 : vector<4x8x16xf32>
    %165 = math.exp %164 : vector<4x8x16xf32>
    %cst_72 = arith.constant dense<0.000000e+00> : vector<4x8xf32>
    %166 = vector.multi_reduction <add>, %165, %cst_72 [2] : vector<4x8x16xf32> to vector<4x8xf32>
    %167 = vector.shape_cast %166 : vector<4x8xf32> to vector<4x8x1xf32>
    %168 = tpu.reciprocal %167 {approx = true} : vector<4x8x1xf32> -> vector<4x8x1xf32>
    %169 = vector.broadcast %168 : vector<4x8x1xf32> to vector<4x8x16xf32>
    %170 = arith.mulf %165, %169 : vector<4x8x16xf32>
    "tpu.trace_start"() <{level = 10 : i32, message = "hts,shd->thd"}> : () -> ()
    %cst_73 = arith.constant dense<0.000000e+00> : vector<4x8x8xf32>
    %171 = tpu.matmul %157, %170, %cst_73 {dimension_numbers = #tpu.dot_dimension_numbers<[0], [2], [2], [1], [0, 1, 0, 2, 1, 1], [1], [0]>} : vector<16x4x8xf32>, vector<4x8x16xf32>, vector<4x8x8xf32> -> vector<4x8x8xf32>
    %172 = tpu.transpose %171, [2, 0, 1] : vector<4x8x8xf32> -> vector<8x4x8xf32>
    "tpu.trace_stop"() : () -> ()
    %173 = vector.shape_cast %172 : vector<8x4x8xf32> to vector<8x32xf32>
    %174 = vector.extract_strided_slice %143 {offsets = [8, 0], sizes = [8, 32], strides = [1, 1]} : vector<16x32xf32> to vector<8x32xf32>
    %175 = vector.shape_cast %174 : vector<8x32xf32> to vector<8x4x8xf32>
    %176 = vector.extract_strided_slice %150 {offsets = [16, 0], sizes = [16, 64], strides = [1, 1]} : vector<32x64xf32> to vector<16x64xf32>
    %177 = vector.extract_strided_slice %176 {offsets = [0, 0], sizes = [16, 32], strides = [1, 1]} : vector<16x64xf32> to vector<16x32xf32>
    %178 = vector.shape_cast %177 : vector<16x32xf32> to vector<16x4x8xf32>
    %179 = vector.extract_strided_slice %176 {offsets = [0, 32], sizes = [16, 32], strides = [1, 1]} : vector<16x64xf32> to vector<16x32xf32>
    %180 = vector.shape_cast %179 : vector<16x32xf32> to vector<16x4x8xf32>
    "tpu.trace_start"() <{level = 10 : i32, message = "thd,shd->hts"}> : () -> ()
    %cst_74 = arith.constant dense<0.000000e+00> : vector<4x8x16xf32>
    %181 = tpu.matmul %175, %178, %cst_74 {dimension_numbers = #tpu.dot_dimension_numbers<[2], [2], [0], [0], [0, 1, 0, 0, 1, 0], [1], [1]>} : vector<8x4x8xf32>, vector<16x4x8xf32>, vector<4x8x16xf32> -> vector<4x8x16xf32>
    "tpu.trace_stop"() : () -> ()
    %cst_75 = arith.constant 0.353553385 : f32
    %182 = vector.broadcast %cst_75 : f32 to vector<4x8x16xf32>
    %183 = arith.mulf %181, %182 : vector<4x8x16xf32>
    %cst_76 = arith.constant dense<0xFF800000> : vector<4x8xf32>
    %184 = vector.multi_reduction <maximumf>, %183, %cst_76 [2] : vector<4x8x16xf32> to vector<4x8xf32>
    %185 = vector.shape_cast %184 : vector<4x8xf32> to vector<4x8x1xf32>
    %186 = vector.broadcast %185 : vector<4x8x1xf32> to vector<4x8x16xf32>
    %187 = arith.subf %183, %186 : vector<4x8x16xf32>
    %188 = math.exp %187 : vector<4x8x16xf32>
    %cst_77 = arith.constant dense<0.000000e+00> : vector<4x8xf32>
    %189 = vector.multi_reduction <add>, %188, %cst_77 [2] : vector<4x8x16xf32> to vector<4x8xf32>
    %190 = vector.shape_cast %189 : vector<4x8xf32> to vector<4x8x1xf32>
    %191 = tpu.reciprocal %190 {approx = true} : vector<4x8x1xf32> -> vector<4x8x1xf32>
    %192 = vector.broadcast %191 : vector<4x8x1xf32> to vector<4x8x16xf32>
    %193 = arith.mulf %188, %192 : vector<4x8x16xf32>
    "tpu.trace_start"() <{level = 10 : i32, message = "hts,shd->thd"}> : () -> ()
    %cst_78 = arith.constant dense<0.000000e+00> : vector<4x8x8xf32>
    %194 = tpu.matmul %180, %193, %cst_78 {dimension_numbers = #tpu.dot_dimension_numbers<[0], [2], [2], [1], [0, 1, 0, 2, 1, 1], [1], [0]>} : vector<16x4x8xf32>, vector<4x8x16xf32>, vector<4x8x8xf32> -> vector<4x8x8xf32>
    %195 = tpu.transpose %194, [2, 0, 1] : vector<4x8x8xf32> -> vector<8x4x8xf32>
    "tpu.trace_stop"() : () -> ()
    %196 = vector.shape_cast %195 : vector<8x4x8xf32> to vector<8x32xf32>
    %197 = tpu.concatenate %173, %196 in 0 : vector<8x32xf32>, vector<8x32xf32> -> vector<16x32xf32>
    %c0_79 = arith.constant 0 : index
    %c0_80 = arith.constant 0 : index
    %c0_81 = arith.constant 0 : index
    %198 = vector.load %arg16[%c0_79, %c0_80, %c0_81] : memref<2x32x32xf32, #tpu.memory_space<vmem>>, vector<1x32x32xf32>
    %199 = vector.shape_cast %198 : vector<1x32x32xf32> to vector<32x32xf32>
    %cst_82 = arith.constant dense<0.000000e+00> : vector<16x32xf32>
    %200 = tpu.matmul %197, %199, %cst_82 {dimension_numbers = #tpu.dot_dimension_numbers<[1], [0], [0], [1], [0, 0, 1, 1], [], []>} : vector<16x32xf32>, vector<32x32xf32>, vector<16x32xf32> -> vector<16x32xf32>
    %201 = arith.addf %112, %200 : vector<16x32xf32>
    %c0_83 = arith.constant 0 : index
    %c0_84 = arith.constant 0 : index
    %c0_85 = arith.constant 0 : index
    %202 = vector.load %arg17[%c0_83, %c0_84, %c0_85] : memref<2x1x32xf32, #tpu.memory_space<vmem>>, vector<1x1x32xf32>
    %203 = vector.shape_cast %202 : vector<1x1x32xf32> to vector<1x32xf32>
    %204 = vector.broadcast %203 : vector<1x32xf32> to vector<16x32xf32>
    %205 = arith.addf %201, %204 : vector<16x32xf32>
    %c0_86 = arith.constant 0 : index
    %c0_87 = arith.constant 0 : index
    %c0_88 = arith.constant 0 : index
    %206 = vector.load %arg18[%c0_86, %c0_87, %c0_88] : memref<2x1x32xf32, #tpu.memory_space<vmem>>, vector<1x1x32xf32>
    %207 = vector.shape_cast %206 : vector<1x1x32xf32> to vector<1x32xf32>
    %c0_89 = arith.constant 0 : index
    %c0_90 = arith.constant 0 : index
    %c0_91 = arith.constant 0 : index
    %208 = vector.load %arg19[%c0_89, %c0_90, %c0_91] : memref<2x1x32xf32, #tpu.memory_space<vmem>>, vector<1x1x32xf32>
    %209 = vector.shape_cast %208 : vector<1x1x32xf32> to vector<1x32xf32>
    %cst_92 = arith.constant dense<0.000000e+00> : vector<16xf32>
    %210 = vector.multi_reduction <add>, %205, %cst_92 [1] : vector<16x32xf32> to vector<16xf32>
    %211 = vector.shape_cast %210 : vector<16xf32> to vector<16x1xf32>
    %cst_93 = arith.constant 3.200000e+01 : f32
    %212 = vector.broadcast %cst_93 : f32 to vector<16x1xf32>
    %213 = arith.divf %211, %212 : vector<16x1xf32>
    %214 = vector.broadcast %213 : vector<16x1xf32> to vector<16x32xf32>
    %215 = arith.subf %205, %214 : vector<16x32xf32>
    %216 = arith.mulf %215, %215 : vector<16x32xf32>
    %cst_94 = arith.constant dense<0.000000e+00> : vector<16xf32>
    %217 = vector.multi_reduction <add>, %216, %cst_94 [1] : vector<16x32xf32> to vector<16xf32>
    %218 = vector.shape_cast %217 : vector<16xf32> to vector<16x1xf32>
    %cst_95 = arith.constant 3.200000e+01 : f32
    %219 = vector.broadcast %cst_95 : f32 to vector<16x1xf32>
    %220 = arith.divf %218, %219 : vector<16x1xf32>
    %cst_96 = arith.constant 9.99999974E-6 : f32
    %221 = vector.broadcast %cst_96 : f32 to vector<16x1xf32>
    %222 = arith.addf %220, %221 : vector<16x1xf32>
    %223 = math.rsqrt %222 : vector<16x1xf32>
    %224 = vector.broadcast %223 : vector<16x1xf32> to vector<16x32xf32>
    %225 = arith.mulf %215, %224 : vector<16x32xf32>
    %226 = vector.broadcast %207 : vector<1x32xf32> to vector<16x32xf32>
    %227 = arith.mulf %225, %226 : vector<16x32xf32>
    %228 = vector.broadcast %209 : vector<1x32xf32> to vector<16x32xf32>
    %229 = arith.addf %227, %228 : vector<16x32xf32>
    %c0_97 = arith.constant 0 : index
    %c0_98 = arith.constant 0 : index
    %c0_99 = arith.constant 0 : index
    %230 = vector.load %arg20[%c0_97, %c0_98, %c0_99] : memref<2x32x128xf32, #tpu.memory_space<vmem>>, vector<1x32x128xf32>
    %231 = vector.shape_cast %230 : vector<1x32x128xf32> to vector<32x128xf32>
    %cst_100 = arith.constant dense<0.000000e+00> : vector<16x128xf32>
    %232 = tpu.matmul %229, %231, %cst_100 {dimension_numbers = #tpu.dot_dimension_numbers<[1], [0], [0], [1], [0, 0, 1, 1], [], []>} : vector<16x32xf32>, vector<32x128xf32>, vector<16x128xf32> -> vector<16x128xf32>
    %c0_101 = arith.constant 0 : index
    %c0_102 = arith.constant 0 : index
    %c0_103 = arith.constant 0 : index
    %233 = vector.load %arg21[%c0_101, %c0_102, %c0_103] : memref<2x1x128xf32, #tpu.memory_space<vmem>>, vector<1x1x128xf32>
    %234 = vector.shape_cast %233 : vector<1x1x128xf32> to vector<1x128xf32>
    %235 = vector.broadcast %234 : vector<1x128xf32> to vector<16x128xf32>
    %236 = arith.addf %232, %235 : vector<16x128xf32>
    %237 = arith.mulf %236, %236 : vector<16x128xf32>
    %238 = arith.mulf %236, %237 : vector<16x128xf32>
    %cst_104 = arith.constant 4.471500e-02 : f32
    %239 = vector.broadcast %cst_104 : f32 to vector<16x128xf32>
    %240 = arith.mulf %239, %238 : vector<16x128xf32>
    %241 = arith.addf %236, %240 : vector<16x128xf32>
    %cst_105 = arith.constant 0.797884583 : f32
    %242 = vector.broadcast %cst_105 : f32 to vector<16x128xf32>
    %243 = arith.mulf %242, %241 : vector<16x128xf32>
    %244 = math.tanh %243 : vector<16x128xf32>
    %cst_106 = arith.constant 1.000000e+00 : f32
    %245 = vector.broadcast %cst_106 : f32 to vector<16x128xf32>
    %246 = arith.addf %245, %244 : vector<16x128xf32>
    %cst_107 = arith.constant 5.000000e-01 : f32
    %247 = vector.broadcast %cst_107 : f32 to vector<16x128xf32>
    %248 = arith.mulf %247, %246 : vector<16x128xf32>
    %249 = arith.mulf %236, %248 : vector<16x128xf32>
    %c0_108 = arith.constant 0 : index
    %c0_109 = arith.constant 0 : index
    %c0_110 = arith.constant 0 : index
    %250 = vector.load %arg22[%c0_108, %c0_109, %c0_110] : memref<2x128x32xf32, #tpu.memory_space<vmem>>, vector<1x128x32xf32>
    %251 = vector.shape_cast %250 : vector<1x128x32xf32> to vector<128x32xf32>
    %cst_111 = arith.constant dense<0.000000e+00> : vector<16x32xf32>
    %252 = tpu.matmul %249, %251, %cst_111 {dimension_numbers = #tpu.dot_dimension_numbers<[1], [0], [0], [1], [0, 0, 1, 1], [], []>} : vector<16x128xf32>, vector<128x32xf32>, vector<16x32xf32> -> vector<16x32xf32>
    %253 = arith.addf %205, %252 : vector<16x32xf32>
    %c0_112 = arith.constant 0 : index
    %c0_113 = arith.constant 0 : index
    %c0_114 = arith.constant 0 : index
    %254 = vector.load %arg23[%c0_112, %c0_113, %c0_114] : memref<2x1x32xf32, #tpu.memory_space<vmem>>, vector<1x1x32xf32>
    %255 = vector.shape_cast %254 : vector<1x1x32xf32> to vector<1x32xf32>
    %256 = vector.broadcast %255 : vector<1x32xf32> to vector<16x32xf32>
    %257 = arith.addf %253, %256 : vector<16x32xf32>
    %c1 = arith.constant 1 : index
    %c0_115 = arith.constant 0 : index
    %c0_116 = arith.constant 0 : index
    %258 = vector.load %arg4[%c1, %c0_115, %c0_116] : memref<2x1x32xf32, #tpu.memory_space<vmem>>, vector<1x1x32xf32>
    %259 = vector.shape_cast %258 : vector<1x1x32xf32> to vector<1x32xf32>
    %c1_117 = arith.constant 1 : index
    %c0_118 = arith.constant 0 : index
    %c0_119 = arith.constant 0 : index
    %260 = vector.load %arg5[%c1_117, %c0_118, %c0_119] : memref<2x1x32xf32, #tpu.memory_space<vmem>>, vector<1x1x32xf32>
    %261 = vector.shape_cast %260 : vector<1x1x32xf32> to vector<1x32xf32>
    %cst_120 = arith.constant dense<0.000000e+00> : vector<16xf32>
    %262 = vector.multi_reduction <add>, %257, %cst_120 [1] : vector<16x32xf32> to vector<16xf32>
    %263 = vector.shape_cast %262 : vector<16xf32> to vector<16x1xf32>
    %cst_121 = arith.constant 3.200000e+01 : f32
    %264 = vector.broadcast %cst_121 : f32 to vector<16x1xf32>
    %265 = arith.divf %263, %264 : vector<16x1xf32>
    %266 = vector.broadcast %265 : vector<16x1xf32> to vector<16x32xf32>
    %267 = arith.subf %257, %266 : vector<16x32xf32>
    %268 = arith.mulf %267, %267 : vector<16x32xf32>
    %cst_122 = arith.constant dense<0.000000e+00> : vector<16xf32>
    %269 = vector.multi_reduction <add>, %268, %cst_122 [1] : vector<16x32xf32> to vector<16xf32>
    %270 = vector.shape_cast %269 : vector<16xf32> to vector<16x1xf32>
    %cst_123 = arith.constant 3.200000e+01 : f32
    %271 = vector.broadcast %cst_123 : f32 to vector<16x1xf32>
    %272 = arith.divf %270, %271 : vector<16x1xf32>
    %cst_124 = arith.constant 9.99999974E-6 : f32
    %273 = vector.broadcast %cst_124 : f32 to vector<16x1xf32>
    %274 = arith.addf %272, %273 : vector<16x1xf32>
    %275 = math.rsqrt %274 : vector<16x1xf32>
    %276 = vector.broadcast %275 : vector<16x1xf32> to vector<16x32xf32>
    %277 = arith.mulf %267, %276 : vector<16x32xf32>
    %278 = vector.broadcast %259 : vector<1x32xf32> to vector<16x32xf32>
    %279 = arith.mulf %277, %278 : vector<16x32xf32>
    %280 = vector.broadcast %261 : vector<1x32xf32> to vector<16x32xf32>
    %281 = arith.addf %279, %280 : vector<16x32xf32>
    %c1_125 = arith.constant 1 : index
    %c0_126 = arith.constant 0 : index
    %c0_127 = arith.constant 0 : index
    %282 = vector.load %arg6[%c1_125, %c0_126, %c0_127] : memref<2x32x96xf32, #tpu.memory_space<vmem>>, vector<1x32x96xf32>
    %283 = vector.shape_cast %282 : vector<1x32x96xf32> to vector<32x96xf32>
    %cst_128 = arith.constant dense<0.000000e+00> : vector<16x96xf32>
    %284 = tpu.matmul %281, %283, %cst_128 {dimension_numbers = #tpu.dot_dimension_numbers<[1], [0], [0], [1], [0, 0, 1, 1], [], []>} : vector<16x32xf32>, vector<32x96xf32>, vector<16x96xf32> -> vector<16x96xf32>
    %c1_129 = arith.constant 1 : index
    %c0_130 = arith.constant 0 : index
    %c0_131 = arith.constant 0 : index
    %285 = vector.load %arg7[%c1_129, %c0_130, %c0_131] : memref<2x1x96xf32, #tpu.memory_space<vmem>>, vector<1x1x96xf32>
    %286 = vector.shape_cast %285 : vector<1x1x96xf32> to vector<1x96xf32>
    %287 = vector.broadcast %286 : vector<1x96xf32> to vector<16x96xf32>
    %288 = arith.addf %284, %287 : vector<16x96xf32>
    %289 = vector.extract_strided_slice %288 {offsets = [0, 0], sizes = [8, 96], strides = [1, 1]} : vector<16x96xf32> to vector<8x96xf32>
    %290 = vector.extract_strided_slice %289 {offsets = [0, 0], sizes = [8, 32], strides = [1, 1]} : vector<8x96xf32> to vector<8x32xf32>
    %291 = vector.shape_cast %290 : vector<8x32xf32> to vector<8x4x8xf32>
    %292 = vector.extract_strided_slice %289 {offsets = [0, 32], sizes = [8, 32], strides = [1, 1]} : vector<8x96xf32> to vector<8x32xf32>
    %293 = vector.shape_cast %292 : vector<8x32xf32> to vector<8x4x8xf32>
    %294 = vector.extract_strided_slice %289 {offsets = [0, 64], sizes = [8, 32], strides = [1, 1]} : vector<8x96xf32> to vector<8x32xf32>
    %295 = vector.shape_cast %294 : vector<8x32xf32> to vector<8x4x8xf32>
    "tpu.trace_start"() <{level = 10 : i32, message = "thd,shd->hts"}> : () -> ()
    %cst_132 = arith.constant dense<0.000000e+00> : vector<4x8x8xf32>
    %296 = tpu.matmul %291, %293, %cst_132 {dimension_numbers = #tpu.dot_dimension_numbers<[2], [2], [0], [0], [0, 1, 0, 0, 1, 0], [1], [1]>} : vector<8x4x8xf32>, vector<8x4x8xf32>, vector<4x8x8xf32> -> vector<4x8x8xf32>
    "tpu.trace_stop"() : () -> ()
    %cst_133 = arith.constant 0.353553385 : f32
    %297 = vector.broadcast %cst_133 : f32 to vector<4x8x8xf32>
    %298 = arith.mulf %296, %297 : vector<4x8x8xf32>
    %299 = tpu.iota {dimensions = array<i32: 0>} : vector<8x8xi32>
    %300 = tpu.iota {dimensions = array<i32: 1>} : vector<8x8xi32>
    %301 = arith.cmpi sge, %299, %300 : vector<8x8xi32>
    %302 = vector.shape_cast %301 : vector<8x8xi1> to vector<1x8x8xi1>
    %cst_134 = arith.constant -1.000000e+30 : f32
    %303 = vector.shape_cast %302 : vector<1x8x8xi1> to vector<1x8x8xi1>
    %304 = vector.broadcast %303 : vector<1x8x8xi1> to vector<4x8x8xi1>
    %305 = vector.broadcast %cst_134 : f32 to vector<4x8x8xf32>
    %306 = arith.select %304, %298, %305 : vector<4x8x8xi1>, vector<4x8x8xf32>
    %cst_135 = arith.constant dense<0xFF800000> : vector<4x8xf32>
    %307 = vector.multi_reduction <maximumf>, %306, %cst_135 [2] : vector<4x8x8xf32> to vector<4x8xf32>
    %308 = vector.shape_cast %307 : vector<4x8xf32> to vector<4x8x1xf32>
    %309 = vector.broadcast %308 : vector<4x8x1xf32> to vector<4x8x8xf32>
    %310 = arith.subf %306, %309 : vector<4x8x8xf32>
    %311 = math.exp %310 : vector<4x8x8xf32>
    %cst_136 = arith.constant dense<0.000000e+00> : vector<4x8xf32>
    %312 = vector.multi_reduction <add>, %311, %cst_136 [2] : vector<4x8x8xf32> to vector<4x8xf32>
    %313 = vector.shape_cast %312 : vector<4x8xf32> to vector<4x8x1xf32>
    %314 = tpu.reciprocal %313 {approx = true} : vector<4x8x1xf32> -> vector<4x8x1xf32>
    %315 = vector.broadcast %314 : vector<4x8x1xf32> to vector<4x8x8xf32>
    %316 = arith.mulf %311, %315 : vector<4x8x8xf32>
    "tpu.trace_start"() <{level = 10 : i32, message = "hts,shd->thd"}> : () -> ()
    %cst_137 = arith.constant dense<0.000000e+00> : vector<4x8x8xf32>
    %317 = tpu.matmul %295, %316, %cst_137 {dimension_numbers = #tpu.dot_dimension_numbers<[0], [2], [2], [1], [0, 1, 0, 2, 1, 1], [1], [0]>} : vector<8x4x8xf32>, vector<4x8x8xf32>, vector<4x8x8xf32> -> vector<4x8x8xf32>
    %318 = tpu.transpose %317, [2, 0, 1] : vector<4x8x8xf32> -> vector<8x4x8xf32>
    "tpu.trace_stop"() : () -> ()
    %319 = vector.shape_cast %318 : vector<8x4x8xf32> to vector<8x32xf32>
    %320 = vector.extract_strided_slice %288 {offsets = [8, 0], sizes = [8, 96], strides = [1, 1]} : vector<16x96xf32> to vector<8x96xf32>
    %321 = vector.extract_strided_slice %320 {offsets = [0, 0], sizes = [8, 32], strides = [1, 1]} : vector<8x96xf32> to vector<8x32xf32>
    %322 = vector.shape_cast %321 : vector<8x32xf32> to vector<8x4x8xf32>
    %323 = vector.extract_strided_slice %320 {offsets = [0, 32], sizes = [8, 32], strides = [1, 1]} : vector<8x96xf32> to vector<8x32xf32>
    %324 = vector.shape_cast %323 : vector<8x32xf32> to vector<8x4x8xf32>
    %325 = vector.extract_strided_slice %320 {offsets = [0, 64], sizes = [8, 32], strides = [1, 1]} : vector<8x96xf32> to vector<8x32xf32>
    %326 = vector.shape_cast %325 : vector<8x32xf32> to vector<8x4x8xf32>
    "tpu.trace_start"() <{level = 10 : i32, message = "thd,shd->hts"}> : () -> ()
    %cst_138 = arith.constant dense<0.000000e+00> : vector<4x8x8xf32>
    %327 = tpu.matmul %322, %324, %cst_138 {dimension_numbers = #tpu.dot_dimension_numbers<[2], [2], [0], [0], [0, 1, 0, 0, 1, 0], [1], [1]>} : vector<8x4x8xf32>, vector<8x4x8xf32>, vector<4x8x8xf32> -> vector<4x8x8xf32>
    "tpu.trace_stop"() : () -> ()
    %cst_139 = arith.constant 0.353553385 : f32
    %328 = vector.broadcast %cst_139 : f32 to vector<4x8x8xf32>
    %329 = arith.mulf %327, %328 : vector<4x8x8xf32>
    %330 = tpu.iota {dimensions = array<i32: 0>} : vector<8x8xi32>
    %331 = tpu.iota {dimensions = array<i32: 1>} : vector<8x8xi32>
    %332 = arith.cmpi sge, %330, %331 : vector<8x8xi32>
    %333 = vector.shape_cast %332 : vector<8x8xi1> to vector<1x8x8xi1>
    %cst_140 = arith.constant -1.000000e+30 : f32
    %334 = vector.shape_cast %333 : vector<1x8x8xi1> to vector<1x8x8xi1>
    %335 = vector.broadcast %334 : vector<1x8x8xi1> to vector<4x8x8xi1>
    %336 = vector.broadcast %cst_140 : f32 to vector<4x8x8xf32>
    %337 = arith.select %335, %329, %336 : vector<4x8x8xi1>, vector<4x8x8xf32>
    %cst_141 = arith.constant dense<0xFF800000> : vector<4x8xf32>
    %338 = vector.multi_reduction <maximumf>, %337, %cst_141 [2] : vector<4x8x8xf32> to vector<4x8xf32>
    %339 = vector.shape_cast %338 : vector<4x8xf32> to vector<4x8x1xf32>
    %340 = vector.broadcast %339 : vector<4x8x1xf32> to vector<4x8x8xf32>
    %341 = arith.subf %337, %340 : vector<4x8x8xf32>
    %342 = math.exp %341 : vector<4x8x8xf32>
    %cst_142 = arith.constant dense<0.000000e+00> : vector<4x8xf32>
    %343 = vector.multi_reduction <add>, %342, %cst_142 [2] : vector<4x8x8xf32> to vector<4x8xf32>
    %344 = vector.shape_cast %343 : vector<4x8xf32> to vector<4x8x1xf32>
    %345 = tpu.reciprocal %344 {approx = true} : vector<4x8x1xf32> -> vector<4x8x1xf32>
    %346 = vector.broadcast %345 : vector<4x8x1xf32> to vector<4x8x8xf32>
    %347 = arith.mulf %342, %346 : vector<4x8x8xf32>
    "tpu.trace_start"() <{level = 10 : i32, message = "hts,shd->thd"}> : () -> ()
    %cst_143 = arith.constant dense<0.000000e+00> : vector<4x8x8xf32>
    %348 = tpu.matmul %326, %347, %cst_143 {dimension_numbers = #tpu.dot_dimension_numbers<[0], [2], [2], [1], [0, 1, 0, 2, 1, 1], [1], [0]>} : vector<8x4x8xf32>, vector<4x8x8xf32>, vector<4x8x8xf32> -> vector<4x8x8xf32>
    %349 = tpu.transpose %348, [2, 0, 1] : vector<4x8x8xf32> -> vector<8x4x8xf32>
    "tpu.trace_stop"() : () -> ()
    %350 = vector.shape_cast %349 : vector<8x4x8xf32> to vector<8x32xf32>
    %351 = tpu.concatenate %319, %350 in 0 : vector<8x32xf32>, vector<8x32xf32> -> vector<16x32xf32>
    %c1_144 = arith.constant 1 : index
    %c0_145 = arith.constant 0 : index
    %c0_146 = arith.constant 0 : index
    %352 = vector.load %arg8[%c1_144, %c0_145, %c0_146] : memref<2x32x32xf32, #tpu.memory_space<vmem>>, vector<1x32x32xf32>
    %353 = vector.shape_cast %352 : vector<1x32x32xf32> to vector<32x32xf32>
    %cst_147 = arith.constant dense<0.000000e+00> : vector<16x32xf32>
    %354 = tpu.matmul %351, %353, %cst_147 {dimension_numbers = #tpu.dot_dimension_numbers<[1], [0], [0], [1], [0, 0, 1, 1], [], []>} : vector<16x32xf32>, vector<32x32xf32>, vector<16x32xf32> -> vector<16x32xf32>
    %355 = arith.addf %257, %354 : vector<16x32xf32>
    %c1_148 = arith.constant 1 : index
    %c0_149 = arith.constant 0 : index
    %c0_150 = arith.constant 0 : index
    %356 = vector.load %arg9[%c1_148, %c0_149, %c0_150] : memref<2x1x32xf32, #tpu.memory_space<vmem>>, vector<1x1x32xf32>
    %357 = vector.shape_cast %356 : vector<1x1x32xf32> to vector<1x32xf32>
    %358 = vector.broadcast %357 : vector<1x32xf32> to vector<16x32xf32>
    %359 = arith.addf %355, %358 : vector<16x32xf32>
    %c1_151 = arith.constant 1 : index
    %c0_152 = arith.constant 0 : index
    %c0_153 = arith.constant 0 : index
    %360 = vector.load %arg10[%c1_151, %c0_152, %c0_153] : memref<2x1x32xf32, #tpu.memory_space<vmem>>, vector<1x1x32xf32>
    %361 = vector.shape_cast %360 : vector<1x1x32xf32> to vector<1x32xf32>
    %c1_154 = arith.constant 1 : index
    %c0_155 = arith.constant 0 : index
    %c0_156 = arith.constant 0 : index
    %362 = vector.load %arg11[%c1_154, %c0_155, %c0_156] : memref<2x1x32xf32, #tpu.memory_space<vmem>>, vector<1x1x32xf32>
    %363 = vector.shape_cast %362 : vector<1x1x32xf32> to vector<1x32xf32>
    %cst_157 = arith.constant dense<0.000000e+00> : vector<16xf32>
    %364 = vector.multi_reduction <add>, %359, %cst_157 [1] : vector<16x32xf32> to vector<16xf32>
    %365 = vector.shape_cast %364 : vector<16xf32> to vector<16x1xf32>
    %cst_158 = arith.constant 3.200000e+01 : f32
    %366 = vector.broadcast %cst_158 : f32 to vector<16x1xf32>
    %367 = arith.divf %365, %366 : vector<16x1xf32>
    %368 = vector.broadcast %367 : vector<16x1xf32> to vector<16x32xf32>
    %369 = arith.subf %359, %368 : vector<16x32xf32>
    %370 = arith.mulf %369, %369 : vector<16x32xf32>
    %cst_159 = arith.constant dense<0.000000e+00> : vector<16xf32>
    %371 = vector.multi_reduction <add>, %370, %cst_159 [1] : vector<16x32xf32> to vector<16xf32>
    %372 = vector.shape_cast %371 : vector<16xf32> to vector<16x1xf32>
    %cst_160 = arith.constant 3.200000e+01 : f32
    %373 = vector.broadcast %cst_160 : f32 to vector<16x1xf32>
    %374 = arith.divf %372, %373 : vector<16x1xf32>
    %cst_161 = arith.constant 9.99999974E-6 : f32
    %375 = vector.broadcast %cst_161 : f32 to vector<16x1xf32>
    %376 = arith.addf %374, %375 : vector<16x1xf32>
    %377 = math.rsqrt %376 : vector<16x1xf32>
    %378 = vector.broadcast %377 : vector<16x1xf32> to vector<16x32xf32>
    %379 = arith.mulf %369, %378 : vector<16x32xf32>
    %380 = vector.broadcast %361 : vector<1x32xf32> to vector<16x32xf32>
    %381 = arith.mulf %379, %380 : vector<16x32xf32>
    %382 = vector.broadcast %363 : vector<1x32xf32> to vector<16x32xf32>
    %383 = arith.addf %381, %382 : vector<16x32xf32>
    %c1_162 = arith.constant 1 : index
    %c0_163 = arith.constant 0 : index
    %c0_164 = arith.constant 0 : index
    %384 = vector.load %arg12[%c1_162, %c0_163, %c0_164] : memref<2x32x32xf32, #tpu.memory_space<vmem>>, vector<1x32x32xf32>
    %385 = vector.shape_cast %384 : vector<1x32x32xf32> to vector<32x32xf32>
    %cst_165 = arith.constant dense<0.000000e+00> : vector<16x32xf32>
    %386 = tpu.matmul %383, %385, %cst_165 {dimension_numbers = #tpu.dot_dimension_numbers<[1], [0], [0], [1], [0, 0, 1, 1], [], []>} : vector<16x32xf32>, vector<32x32xf32>, vector<16x32xf32> -> vector<16x32xf32>
    %c1_166 = arith.constant 1 : index
    %c0_167 = arith.constant 0 : index
    %c0_168 = arith.constant 0 : index
    %387 = vector.load %arg13[%c1_166, %c0_167, %c0_168] : memref<2x1x32xf32, #tpu.memory_space<vmem>>, vector<1x1x32xf32>
    %388 = vector.shape_cast %387 : vector<1x1x32xf32> to vector<1x32xf32>
    %389 = vector.broadcast %388 : vector<1x32xf32> to vector<16x32xf32>
    %390 = arith.addf %386, %389 : vector<16x32xf32>
    %c1_169 = arith.constant 1 : index
    %c0_170 = arith.constant 0 : index
    %c0_171 = arith.constant 0 : index
    %391 = vector.load %arg14[%c1_169, %c0_170, %c0_171] : memref<2x32x64xf32, #tpu.memory_space<vmem>>, vector<1x32x64xf32>
    %392 = vector.shape_cast %391 : vector<1x32x64xf32> to vector<32x64xf32>
    %cst_172 = arith.constant dense<0.000000e+00> : vector<32x64xf32>
    %393 = tpu.matmul %10, %392, %cst_172 {dimension_numbers = #tpu.dot_dimension_numbers<[1], [0], [0], [1], [0, 0, 1, 1], [], []>} : vector<32x32xf32>, vector<32x64xf32>, vector<32x64xf32> -> vector<32x64xf32>
    %c1_173 = arith.constant 1 : index
    %c0_174 = arith.constant 0 : index
    %c0_175 = arith.constant 0 : index
    %394 = vector.load %arg15[%c1_173, %c0_174, %c0_175] : memref<2x1x64xf32, #tpu.memory_space<vmem>>, vector<1x1x64xf32>
    %395 = vector.shape_cast %394 : vector<1x1x64xf32> to vector<1x64xf32>
    %396 = vector.broadcast %395 : vector<1x64xf32> to vector<32x64xf32>
    %397 = arith.addf %393, %396 : vector<32x64xf32>
    %398 = vector.extract_strided_slice %390 {offsets = [0, 0], sizes = [8, 32], strides = [1, 1]} : vector<16x32xf32> to vector<8x32xf32>
    %399 = vector.shape_cast %398 : vector<8x32xf32> to vector<8x4x8xf32>
    %400 = vector.extract_strided_slice %397 {offsets = [0, 0], sizes = [16, 64], strides = [1, 1]} : vector<32x64xf32> to vector<16x64xf32>
    %401 = vector.extract_strided_slice %400 {offsets = [0, 0], sizes = [16, 32], strides = [1, 1]} : vector<16x64xf32> to vector<16x32xf32>
    %402 = vector.shape_cast %401 : vector<16x32xf32> to vector<16x4x8xf32>
    %403 = vector.extract_strided_slice %400 {offsets = [0, 32], sizes = [16, 32], strides = [1, 1]} : vector<16x64xf32> to vector<16x32xf32>
    %404 = vector.shape_cast %403 : vector<16x32xf32> to vector<16x4x8xf32>
    "tpu.trace_start"() <{level = 10 : i32, message = "thd,shd->hts"}> : () -> ()
    %cst_176 = arith.constant dense<0.000000e+00> : vector<4x8x16xf32>
    %405 = tpu.matmul %399, %402, %cst_176 {dimension_numbers = #tpu.dot_dimension_numbers<[2], [2], [0], [0], [0, 1, 0, 0, 1, 0], [1], [1]>} : vector<8x4x8xf32>, vector<16x4x8xf32>, vector<4x8x16xf32> -> vector<4x8x16xf32>
    "tpu.trace_stop"() : () -> ()
    %cst_177 = arith.constant 0.353553385 : f32
    %406 = vector.broadcast %cst_177 : f32 to vector<4x8x16xf32>
    %407 = arith.mulf %405, %406 : vector<4x8x16xf32>
    %cst_178 = arith.constant dense<0xFF800000> : vector<4x8xf32>
    %408 = vector.multi_reduction <maximumf>, %407, %cst_178 [2] : vector<4x8x16xf32> to vector<4x8xf32>
    %409 = vector.shape_cast %408 : vector<4x8xf32> to vector<4x8x1xf32>
    %410 = vector.broadcast %409 : vector<4x8x1xf32> to vector<4x8x16xf32>
    %411 = arith.subf %407, %410 : vector<4x8x16xf32>
    %412 = math.exp %411 : vector<4x8x16xf32>
    %cst_179 = arith.constant dense<0.000000e+00> : vector<4x8xf32>
    %413 = vector.multi_reduction <add>, %412, %cst_179 [2] : vector<4x8x16xf32> to vector<4x8xf32>
    %414 = vector.shape_cast %413 : vector<4x8xf32> to vector<4x8x1xf32>
    %415 = tpu.reciprocal %414 {approx = true} : vector<4x8x1xf32> -> vector<4x8x1xf32>
    %416 = vector.broadcast %415 : vector<4x8x1xf32> to vector<4x8x16xf32>
    %417 = arith.mulf %412, %416 : vector<4x8x16xf32>
    "tpu.trace_start"() <{level = 10 : i32, message = "hts,shd->thd"}> : () -> ()
    %cst_180 = arith.constant dense<0.000000e+00> : vector<4x8x8xf32>
    %418 = tpu.matmul %404, %417, %cst_180 {dimension_numbers = #tpu.dot_dimension_numbers<[0], [2], [2], [1], [0, 1, 0, 2, 1, 1], [1], [0]>} : vector<16x4x8xf32>, vector<4x8x16xf32>, vector<4x8x8xf32> -> vector<4x8x8xf32>
    %419 = tpu.transpose %418, [2, 0, 1] : vector<4x8x8xf32> -> vector<8x4x8xf32>
    "tpu.trace_stop"() : () -> ()
    %420 = vector.shape_cast %419 : vector<8x4x8xf32> to vector<8x32xf32>
    %421 = vector.extract_strided_slice %390 {offsets = [8, 0], sizes = [8, 32], strides = [1, 1]} : vector<16x32xf32> to vector<8x32xf32>
    %422 = vector.shape_cast %421 : vector<8x32xf32> to vector<8x4x8xf32>
    %423 = vector.extract_strided_slice %397 {offsets = [16, 0], sizes = [16, 64], strides = [1, 1]} : vector<32x64xf32> to vector<16x64xf32>
    %424 = vector.extract_strided_slice %423 {offsets = [0, 0], sizes = [16, 32], strides = [1, 1]} : vector<16x64xf32> to vector<16x32xf32>
    %425 = vector.shape_cast %424 : vector<16x32xf32> to vector<16x4x8xf32>
    %426 = vector.extract_strided_slice %423 {offsets = [0, 32], sizes = [16, 32], strides = [1, 1]} : vector<16x64xf32> to vector<16x32xf32>
    %427 = vector.shape_cast %426 : vector<16x32xf32> to vector<16x4x8xf32>
    "tpu.trace_start"() <{level = 10 : i32, message = "thd,shd->hts"}> : () -> ()
    %cst_181 = arith.constant dense<0.000000e+00> : vector<4x8x16xf32>
    %428 = tpu.matmul %422, %425, %cst_181 {dimension_numbers = #tpu.dot_dimension_numbers<[2], [2], [0], [0], [0, 1, 0, 0, 1, 0], [1], [1]>} : vector<8x4x8xf32>, vector<16x4x8xf32>, vector<4x8x16xf32> -> vector<4x8x16xf32>
    "tpu.trace_stop"() : () -> ()
    %cst_182 = arith.constant 0.353553385 : f32
    %429 = vector.broadcast %cst_182 : f32 to vector<4x8x16xf32>
    %430 = arith.mulf %428, %429 : vector<4x8x16xf32>
    %cst_183 = arith.constant dense<0xFF800000> : vector<4x8xf32>
    %431 = vector.multi_reduction <maximumf>, %430, %cst_183 [2] : vector<4x8x16xf32> to vector<4x8xf32>
    %432 = vector.shape_cast %431 : vector<4x8xf32> to vector<4x8x1xf32>
    %433 = vector.broadcast %432 : vector<4x8x1xf32> to vector<4x8x16xf32>
    %434 = arith.subf %430, %433 : vector<4x8x16xf32>
    %435 = math.exp %434 : vector<4x8x16xf32>
    %cst_184 = arith.constant dense<0.000000e+00> : vector<4x8xf32>
    %436 = vector.multi_reduction <add>, %435, %cst_184 [2] : vector<4x8x16xf32> to vector<4x8xf32>
    %437 = vector.shape_cast %436 : vector<4x8xf32> to vector<4x8x1xf32>
    %438 = tpu.reciprocal %437 {approx = true} : vector<4x8x1xf32> -> vector<4x8x1xf32>
    %439 = vector.broadcast %438 : vector<4x8x1xf32> to vector<4x8x16xf32>
    %440 = arith.mulf %435, %439 : vector<4x8x16xf32>
    "tpu.trace_start"() <{level = 10 : i32, message = "hts,shd->thd"}> : () -> ()
    %cst_185 = arith.constant dense<0.000000e+00> : vector<4x8x8xf32>
    %441 = tpu.matmul %427, %440, %cst_185 {dimension_numbers = #tpu.dot_dimension_numbers<[0], [2], [2], [1], [0, 1, 0, 2, 1, 1], [1], [0]>} : vector<16x4x8xf32>, vector<4x8x16xf32>, vector<4x8x8xf32> -> vector<4x8x8xf32>
    %442 = tpu.transpose %441, [2, 0, 1] : vector<4x8x8xf32> -> vector<8x4x8xf32>
    "tpu.trace_stop"() : () -> ()
    %443 = vector.shape_cast %442 : vector<8x4x8xf32> to vector<8x32xf32>
    %444 = tpu.concatenate %420, %443 in 0 : vector<8x32xf32>, vector<8x32xf32> -> vector<16x32xf32>
    %c1_186 = arith.constant 1 : index
    %c0_187 = arith.constant 0 : index
    %c0_188 = arith.constant 0 : index
    %445 = vector.load %arg16[%c1_186, %c0_187, %c0_188] : memref<2x32x32xf32, #tpu.memory_space<vmem>>, vector<1x32x32xf32>
    %446 = vector.shape_cast %445 : vector<1x32x32xf32> to vector<32x32xf32>
    %cst_189 = arith.constant dense<0.000000e+00> : vector<16x32xf32>
    %447 = tpu.matmul %444, %446, %cst_189 {dimension_numbers = #tpu.dot_dimension_numbers<[1], [0], [0], [1], [0, 0, 1, 1], [], []>} : vector<16x32xf32>, vector<32x32xf32>, vector<16x32xf32> -> vector<16x32xf32>
    %448 = arith.addf %359, %447 : vector<16x32xf32>
    %c1_190 = arith.constant 1 : index
    %c0_191 = arith.constant 0 : index
    %c0_192 = arith.constant 0 : index
    %449 = vector.load %arg17[%c1_190, %c0_191, %c0_192] : memref<2x1x32xf32, #tpu.memory_space<vmem>>, vector<1x1x32xf32>
    %450 = vector.shape_cast %449 : vector<1x1x32xf32> to vector<1x32xf32>
    %451 = vector.broadcast %450 : vector<1x32xf32> to vector<16x32xf32>
    %452 = arith.addf %448, %451 : vector<16x32xf32>
    %c1_193 = arith.constant 1 : index
    %c0_194 = arith.constant 0 : index
    %c0_195 = arith.constant 0 : index
    %453 = vector.load %arg18[%c1_193, %c0_194, %c0_195] : memref<2x1x32xf32, #tpu.memory_space<vmem>>, vector<1x1x32xf32>
    %454 = vector.shape_cast %453 : vector<1x1x32xf32> to vector<1x32xf32>
    %c1_196 = arith.constant 1 : index
    %c0_197 = arith.constant 0 : index
    %c0_198 = arith.constant 0 : index
    %455 = vector.load %arg19[%c1_196, %c0_197, %c0_198] : memref<2x1x32xf32, #tpu.memory_space<vmem>>, vector<1x1x32xf32>
    %456 = vector.shape_cast %455 : vector<1x1x32xf32> to vector<1x32xf32>
    %cst_199 = arith.constant dense<0.000000e+00> : vector<16xf32>
    %457 = vector.multi_reduction <add>, %452, %cst_199 [1] : vector<16x32xf32> to vector<16xf32>
    %458 = vector.shape_cast %457 : vector<16xf32> to vector<16x1xf32>
    %cst_200 = arith.constant 3.200000e+01 : f32
    %459 = vector.broadcast %cst_200 : f32 to vector<16x1xf32>
    %460 = arith.divf %458, %459 : vector<16x1xf32>
    %461 = vector.broadcast %460 : vector<16x1xf32> to vector<16x32xf32>
    %462 = arith.subf %452, %461 : vector<16x32xf32>
    %463 = arith.mulf %462, %462 : vector<16x32xf32>
    %cst_201 = arith.constant dense<0.000000e+00> : vector<16xf32>
    %464 = vector.multi_reduction <add>, %463, %cst_201 [1] : vector<16x32xf32> to vector<16xf32>
    %465 = vector.shape_cast %464 : vector<16xf32> to vector<16x1xf32>
    %cst_202 = arith.constant 3.200000e+01 : f32
    %466 = vector.broadcast %cst_202 : f32 to vector<16x1xf32>
    %467 = arith.divf %465, %466 : vector<16x1xf32>
    %cst_203 = arith.constant 9.99999974E-6 : f32
    %468 = vector.broadcast %cst_203 : f32 to vector<16x1xf32>
    %469 = arith.addf %467, %468 : vector<16x1xf32>
    %470 = math.rsqrt %469 : vector<16x1xf32>
    %471 = vector.broadcast %470 : vector<16x1xf32> to vector<16x32xf32>
    %472 = arith.mulf %462, %471 : vector<16x32xf32>
    %473 = vector.broadcast %454 : vector<1x32xf32> to vector<16x32xf32>
    %474 = arith.mulf %472, %473 : vector<16x32xf32>
    %475 = vector.broadcast %456 : vector<1x32xf32> to vector<16x32xf32>
    %476 = arith.addf %474, %475 : vector<16x32xf32>
    %c1_204 = arith.constant 1 : index
    %c0_205 = arith.constant 0 : index
    %c0_206 = arith.constant 0 : index
    %477 = vector.load %arg20[%c1_204, %c0_205, %c0_206] : memref<2x32x128xf32, #tpu.memory_space<vmem>>, vector<1x32x128xf32>
    %478 = vector.shape_cast %477 : vector<1x32x128xf32> to vector<32x128xf32>
    %cst_207 = arith.constant dense<0.000000e+00> : vector<16x128xf32>
    %479 = tpu.matmul %476, %478, %cst_207 {dimension_numbers = #tpu.dot_dimension_numbers<[1], [0], [0], [1], [0, 0, 1, 1], [], []>} : vector<16x32xf32>, vector<32x128xf32>, vector<16x128xf32> -> vector<16x128xf32>
    %c1_208 = arith.constant 1 : index
    %c0_209 = arith.constant 0 : index
    %c0_210 = arith.constant 0 : index
    %480 = vector.load %arg21[%c1_208, %c0_209, %c0_210] : memref<2x1x128xf32, #tpu.memory_space<vmem>>, vector<1x1x128xf32>
    %481 = vector.shape_cast %480 : vector<1x1x128xf32> to vector<1x128xf32>
    %482 = vector.broadcast %481 : vector<1x128xf32> to vector<16x128xf32>
    %483 = arith.addf %479, %482 : vector<16x128xf32>
    %484 = arith.mulf %483, %483 : vector<16x128xf32>
    %485 = arith.mulf %483, %484 : vector<16x128xf32>
    %cst_211 = arith.constant 4.471500e-02 : f32
    %486 = vector.broadcast %cst_211 : f32 to vector<16x128xf32>
    %487 = arith.mulf %486, %485 : vector<16x128xf32>
    %488 = arith.addf %483, %487 : vector<16x128xf32>
    %cst_212 = arith.constant 0.797884583 : f32
    %489 = vector.broadcast %cst_212 : f32 to vector<16x128xf32>
    %490 = arith.mulf %489, %488 : vector<16x128xf32>
    %491 = math.tanh %490 : vector<16x128xf32>
    %cst_213 = arith.constant 1.000000e+00 : f32
    %492 = vector.broadcast %cst_213 : f32 to vector<16x128xf32>
    %493 = arith.addf %492, %491 : vector<16x128xf32>
    %cst_214 = arith.constant 5.000000e-01 : f32
    %494 = vector.broadcast %cst_214 : f32 to vector<16x128xf32>
    %495 = arith.mulf %494, %493 : vector<16x128xf32>
    %496 = arith.mulf %483, %495 : vector<16x128xf32>
    %c1_215 = arith.constant 1 : index
    %c0_216 = arith.constant 0 : index
    %c0_217 = arith.constant 0 : index
    %497 = vector.load %arg22[%c1_215, %c0_216, %c0_217] : memref<2x128x32xf32, #tpu.memory_space<vmem>>, vector<1x128x32xf32>
    %498 = vector.shape_cast %497 : vector<1x128x32xf32> to vector<128x32xf32>
    %cst_218 = arith.constant dense<0.000000e+00> : vector<16x32xf32>
    %499 = tpu.matmul %496, %498, %cst_218 {dimension_numbers = #tpu.dot_dimension_numbers<[1], [0], [0], [1], [0, 0, 1, 1], [], []>} : vector<16x128xf32>, vector<128x32xf32>, vector<16x32xf32> -> vector<16x32xf32>
    %500 = arith.addf %452, %499 : vector<16x32xf32>
    %c1_219 = arith.constant 1 : index
    %c0_220 = arith.constant 0 : index
    %c0_221 = arith.constant 0 : index
    %501 = vector.load %arg23[%c1_219, %c0_220, %c0_221] : memref<2x1x32xf32, #tpu.memory_space<vmem>>, vector<1x1x32xf32>
    %502 = vector.shape_cast %501 : vector<1x1x32xf32> to vector<1x32xf32>
    %503 = vector.broadcast %502 : vector<1x32xf32> to vector<16x32xf32>
    %504 = arith.addf %500, %503 : vector<16x32xf32>
    %c0_222 = arith.constant 0 : index
    %c0_223 = arith.constant 0 : index
    %505 = vector.load %arg24[%c0_222, %c0_223] : memref<1x32xf32, #tpu.memory_space<vmem>>, vector<1x32xf32>
    %c0_224 = arith.constant 0 : index
    %c0_225 = arith.constant 0 : index
    %506 = vector.load %arg25[%c0_224, %c0_225] : memref<1x32xf32, #tpu.memory_space<vmem>>, vector<1x32xf32>
    %cst_226 = arith.constant dense<0.000000e+00> : vector<16xf32>
    %507 = vector.multi_reduction <add>, %504, %cst_226 [1] : vector<16x32xf32> to vector<16xf32>
    %508 = vector.shape_cast %507 : vector<16xf32> to vector<16x1xf32>
    %cst_227 = arith.constant 3.200000e+01 : f32
    %509 = vector.broadcast %cst_227 : f32 to vector<16x1xf32>
    %510 = arith.divf %508, %509 : vector<16x1xf32>
    %511 = vector.broadcast %510 : vector<16x1xf32> to vector<16x32xf32>
    %512 = arith.subf %504, %511 : vector<16x32xf32>
    %513 = arith.mulf %512, %512 : vector<16x32xf32>
    %cst_228 = arith.constant dense<0.000000e+00> : vector<16xf32>
    %514 = vector.multi_reduction <add>, %513, %cst_228 [1] : vector<16x32xf32> to vector<16xf32>
    %515 = vector.shape_cast %514 : vector<16xf32> to vector<16x1xf32>
    %cst_229 = arith.constant 3.200000e+01 : f32
    %516 = vector.broadcast %cst_229 : f32 to vector<16x1xf32>
    %517 = arith.divf %515, %516 : vector<16x1xf32>
    %cst_230 = arith.constant 9.99999974E-6 : f32
    %518 = vector.broadcast %cst_230 : f32 to vector<16x1xf32>
    %519 = arith.addf %517, %518 : vector<16x1xf32>
    %520 = math.rsqrt %519 : vector<16x1xf32>
    %521 = vector.broadcast %520 : vector<16x1xf32> to vector<16x32xf32>
    %522 = arith.mulf %512, %521 : vector<16x32xf32>
    %523 = vector.broadcast %505 : vector<1x32xf32> to vector<16x32xf32>
    %524 = arith.mulf %522, %523 : vector<16x32xf32>
    %525 = vector.broadcast %506 : vector<1x32xf32> to vector<16x32xf32>
    %526 = arith.addf %524, %525 : vector<16x32xf32>
    %c0_231 = arith.constant 0 : index
    %c0_232 = arith.constant 0 : index
    %527 = vector.load %arg26[%c0_231, %c0_232] : memref<32x128xf32, #tpu.memory_space<vmem>>, vector<32x128xf32>
    %cst_233 = arith.constant dense<0.000000e+00> : vector<16x128xf32>
    %528 = tpu.matmul %526, %527, %cst_233 {dimension_numbers = #tpu.dot_dimension_numbers<[1], [0], [0], [1], [0, 0, 1, 1], [], []>} : vector<16x32xf32>, vector<32x128xf32>, vector<16x128xf32> -> vector<16x128xf32>
    %c0_234 = arith.constant 0 : index
    %c0_235 = arith.constant 0 : index
    %529 = vector.load %arg27[%c0_234, %c0_235] : memref<16x128xf32, #tpu.memory_space<vmem>>, vector<16x128xf32>
    tpu.vector_store %arg27[%c0_234, %c0_235], %528 {strides = array<i32>} : memref<16x128xf32, #tpu.memory_space<vmem>>, vector<16x128xf32>,
    return
  }
}

</mosaic_0001>

<bundles_post_ra>
// kernel: decoder_forward.1
= control target key start
LH: loop header
LB: loop body
LE: loop exit
PB: predicated region body
PF: predicated region fallthrough
CT: control target
= control target key end

     0   :  { %s15400_s0 = inlined_call_operand.vmem [shape: s32[16,1], index: 0, kind: input, shape index: {}]   ;;  %s15401_s1 = inlined_call_operand.hbm [shape: f32[32,32], index: 1, kind: input, shape index: {}]   ;;  %s15402_s2 = inlined_call_operand.vmem [shape: f32[64,32], index: 2, kind: input, shape index: {}]   ;;  %s15403_s3 = inlined_call_operand.vmem [shape: f32[16,32], index: 3, kind: input, shape index: {}]   ;;  %s15404_s4 = inlined_call_operand.vmem [shape: f32[2,1,32], index: 4, kind: input, shape index: {}]   ;;  %s15405_s5 = inlined_call_operand.vmem [shape: f32[2,1,32], index: 5, kind: input, shape index: {}]   ;;  %s15406_s6 = inlined_call_operand.vmem [shape: f32[2,32,96], index: 6, kind: input, shape index: {}]   ;;  %s15407_s7 = inlined_call_operand.vmem [shape: f32[2,1,96], index: 7, kind: input, shape index: {}]   ;;  %s15408_s8 = inlined_call_operand.vmem [shape: f32[2,32,32], index: 8, kind: input, shape index: {}]   ;;  %s15409_s9 = inlined_call_operand.hbm [shape: f32[2,1,32], index: 9, kind: input, shape index: {}]   ;;  %s15410_s10 = inlined_call_operand.hbm [shape: f32[2,1,32], index: 10, kind: input, shape index: {}]   ;;  %s15411_s11 = inlined_call_operand.hbm [shape: f32[2,1,32], index: 11, kind: input, shape index: {}]   ;;  %s15412_s12 = inlined_call_operand.vmem [shape: f32[2,32,32], index: 12, kind: input, shape index: {}]   ;;  %s15413_s13 = inlined_call_operand.hbm [shape: f32[2,1,32], index: 13, kind: input, shape index: {}]   ;;  %s15414_s14 = inlined_call_operand.vmem [shape: f32[2,32,64], index: 14, kind: input, shape index: {}]   ;;  %s15415_s15 = inlined_call_operand.hbm [shape: f32[2,1,64], index: 15, kind: input, shape index: {}]   ;;  %s15416_s16 = inlined_call_operand.vmem [shape: f32[2,32,32], index: 16, kind: input, shape index: {}]   ;;  %s15417_s17 = inlined_call_operand.hbm [shape: f32[2,1,32], index: 17, kind: input, shape index: {}]   ;;  %s15418_s18 = inlined_call_operand.hbm [shape: f32[2,1,32], index: 18, kind: input, shape index: {}]   ;;  %s15419_s19 = inlined_call_operand.hbm [shape: f32[2,1,32], index: 19, kind: input, shape index: {}]   ;;  %s15420_s20 = inlined_call_operand.vmem [shape: f32[2,32,128], index: 20, kind: input, shape index: {}]   ;;  %s15421_s21 = inlined_call_operand.hbm [shape: f32[2,1,128], index: 21, kind: input, shape index: {}]   ;;  %s15422_s22 = inlined_call_operand.vmem [shape: f32[2,128,32], index: 22, kind: input, shape index: {}]   ;;  %s15423_s23 = inlined_call_operand.hbm [shape: f32[2,1,32], index: 23, kind: input, shape index: {}]   ;;  %s15424_s24 = inlined_call_operand.hbm [shape: f32[1,32], index: 24, kind: input, shape index: {}]   ;;  %s15425_s25 = inlined_call_operand.hbm [shape: f32[1,32], index: 25, kind: input, shape index: {}]   ;;  %s15426_s26 = inlined_call_operand.vmem [shape: f32[32,128], index: 26, kind: input, shape index: {}]   ;;  %s15427_s27 = inlined_call_operand.vmem [shape: f32[16,128], index: 27, kind: output, shape index: {}]  }
   0x1   :  { %15443 = sst [smem:[#allocation29_spill]] %s15400_s0 }
   0x2   :  { %15444 = sst [smem:[#allocation30_spill]] %s15401_s1 }
   0x3   :  { %15445 = sst [smem:[#allocation31_spill]] %s15402_s2 }
   0x4   :  { %15446 = sst [smem:[#allocation32_spill]] %s15403_s3 }
   0x5   :  { %15447 = sst [smem:[#allocation33_spill]] %s15404_s4 }
   0x6   :  { %15448 = sst [smem:[#allocation34_spill]] %s15405_s5 }
   0x7   :  { %15449 = sst [smem:[#allocation35_spill]] %s15406_s6 }
   0x8   :  { %15450 = sst [smem:[#allocation36_spill]] %s15407_s7 }
   0x9   :  { %15451 = sst [smem:[#allocation37_spill]] %s15408_s8 }
   0xa   :  { %15452 = sst [smem:[#allocation38_spill]] %s15409_s9 }
   0xb   :  { %15453 = sst [smem:[#allocation39_spill]] %s15410_s10 }
   0xc   :  { %15454 = sst [smem:[#allocation40_spill]] %s15411_s11 }
   0xd   :  { %15455 = sst [smem:[#allocation41_spill]] %s15422_s22 }
   0xe   :  { %15456 = sst [smem:[#allocation42_spill]] %s15426_s26 }
   0xf   :  { %15457 = sst [smem:[#allocation43_spill]] %s15427_s27 }
  0x10   :  { %32 = vsyncpa [#allocation3], 0 }
  0x11   :  { %33 = vsyncpa [#allocation5], 0 }
  0x12   :  { %34 = vsyncpa [#allocation8], 0 }
  0x13   :  { %35 = vsyncpa [#allocation11], 0 }
  0x14   :  { %36 = vsyncpa [#allocation14], 0 }
  0x15   :  { %37 = vsyncpa [#allocation17], 0 }
  0x16   :  { %38 = vsyncpa [#allocation20], 0  ;;  %s13642_s7 = smov [#allocation4]   ;;  %s15458_s9 = sld [smem:[#allocation38_spill]] }
  0x17   :  { %s72_s4 = sshll.u32 %s13642_s7, 4  ;;  %s73_s4 = int_to_ptr.vmem [resolvable:$true] %s72_s4 }
  0x1c   :  { %s13342_s5 = scalar_lea.hbm %s15458_s9, 32 }
  0x1d   :  { %p13343_p0 = scmp.ne.s32.totalorder %s15458_s9, %s13342_s5  ;;  %p13346_p1 = scmp.lt.u32.totalorder %s13342_s5, %s15458_s9 }
  0x1f   :  { %p13348_p2 = pnand %p13346_p1, %p13343_p0 }
  0x21   :  { %13351 = shalt.err (!%p13348_p2)
}
  0x22   :  { %s13352_s1 = scalar_lea.vmem %s73_s4, 32  ;;  %p13357_p4 = scmp.lt.s32.totalorder %s73_s4, %s73_s4 }
  0x23   :  { %p13353_p3 = scmp.ne.s32.totalorder %s73_s4, %s13352_s1  ;;  %p13358_p5 = scmp.lt.s32.totalorder %s13352_s1, %s13352_s1 }
  0x25   :  { %p13359_p6 = por %p13358_p5, %p13357_p4 }
  0x27   :  { %p13360_p7 = pnand %p13359_p6, %p13353_p3 }
  0x29   :  { %13363 = shalt.err (!%p13360_p7)
}
  0x2a   :  { %s13643_s6 = smov 16   ;;  %s13644_s11 = smov 1  }
  0x2b   :  { %78 = dma.hbm_to_vmem [thread:$0]  %s15458_s9, 32, %s73_s4, [#allocation5], %s13643_s6, %s13643_s6, %s13644_s11  }
  0x2c   :  { %s13645_s7 = smov [#allocation7]   ;;  %s13646_s30 = smov [#allocation10]  }
  0x2d   :  { %s96_s8 = sshll.u32 %s13645_s7, 4  ;;  %s124_s5 = sshll.u32 %s13646_s30, 4  ;;  %s97_s8 = int_to_ptr.vmem [resolvable:$true] %s96_s8  ;;  %s125_s5 = int_to_ptr.vmem [resolvable:$true] %s124_s5 }
  0x2e   :  { %s15459_s10 = sld [smem:[#allocation40_spill]] }
  0x34   :  { %s13364_s29 = scalar_lea.hbm %s15459_s10, 32 }
  0x35   :  { %p13365_p8 = scmp.ne.s32.totalorder %s15459_s10, %s13364_s29  ;;  %p13368_p9 = scmp.lt.u32.totalorder %s13364_s29, %s15459_s10 }
  0x37   :  { %p13370_p10 = pnand %p13368_p9, %p13365_p8 }
  0x39   :  { %13373 = shalt.err (!%p13370_p10)
}
  0x3a   :  { %s13374_s4 = scalar_lea.vmem %s97_s8, 32  ;;  %p13379_p12 = scmp.lt.s32.totalorder %s97_s8, %s97_s8 }
  0x3b   :  { %p13375_p11 = scmp.ne.s32.totalorder %s97_s8, %s13374_s4  ;;  %p13380_p13 = scmp.lt.s32.totalorder %s13374_s4, %s13374_s4 }
  0x3d   :  { %p13381_p0 = por %p13380_p13, %p13379_p12 }
  0x3f   :  { %p13382_p1 = pnand %p13381_p0, %p13375_p11 }
  0x41   :  { %13385 = shalt.err (!%p13382_p1)
}
  0x42   :  { %102 = dma.hbm_to_vmem [thread:$0]  %s15459_s10, 32, %s97_s8, [#allocation8], %s13643_s6, %s13643_s6, %s13644_s11  }
  0x43   :  { %s13386_s26 = scalar_lea.hbm %s15415_s15, 32 }
  0x44   :  { %p13387_p2 = scmp.ne.s32.totalorder %s15415_s15, %s13386_s26  ;;  %p13390_p3 = scmp.lt.u32.totalorder %s13386_s26, %s15415_s15 }
  0x46   :  { %p13392_p4 = pnand %p13390_p3, %p13387_p2 }
  0x48   :  { %13395 = shalt.err (!%p13392_p4)
}
  0x49   :  { %s13396_s0 = scalar_lea.vmem %s125_s5, 32  ;;  %p13401_p6 = scmp.lt.s32.totalorder %s125_s5, %s125_s5 }
  0x4a   :  { %p13397_p5 = scmp.ne.s32.totalorder %s125_s5, %s13396_s0  ;;  %p13402_p7 = scmp.lt.s32.totalorder %s13396_s0, %s13396_s0 }
  0x4c   :  { %p13403_p8 = por %p13402_p7, %p13401_p6 }
  0x4e   :  { %p13404_p9 = pnand %p13403_p8, %p13397_p5 }
  0x50   :  { %13407 = shalt.err (!%p13404_p9)
}
  0x51   :  { %130 = dma.hbm_to_vmem [thread:$0]  %s15415_s15, 32, %s125_s5, [#allocation11], %s13643_s6, %s13643_s6, %s13644_s11  }
  0x52   :  { %s13647_s29 = smov [#allocation13]   ;;  %s13648_s4 = smov [#allocation16]  }
  0x53   :  { %s150_s1 = sshll.u32 %s13647_s29, 4  ;;  %s176_s9 = sshll.u32 %s13648_s4, 4  ;;  %s151_s1 = int_to_ptr.vmem [resolvable:$true] %s150_s1  ;;  %s177_s9 = int_to_ptr.vmem [resolvable:$true] %s176_s9 }
  0x54   :  { %s13408_s22 = scalar_lea.hbm %s15418_s18, 32 }
  0x55   :  { %p13409_p10 = scmp.ne.s32.totalorder %s15418_s18, %s13408_s22  ;;  %p13412_p11 = scmp.lt.u32.totalorder %s13408_s22, %s15418_s18 }
  0x57   :  { %p13414_p12 = pnand %p13412_p11, %p13409_p10 }
  0x59   :  { %13417 = shalt.err (!%p13414_p12)
}
  0x5a   :  { %s13418_s15 = scalar_lea.vmem %s151_s1, 32  ;;  %p13423_p0 = scmp.lt.s32.totalorder %s151_s1, %s151_s1 }
  0x5b   :  { %p13419_p13 = scmp.ne.s32.totalorder %s151_s1, %s13418_s15  ;;  %p13424_p1 = scmp.lt.s32.totalorder %s13418_s15, %s13418_s15 }
  0x5d   :  { %p13425_p2 = por %p13424_p1, %p13423_p0 }
  0x5f   :  { %p13426_p3 = pnand %p13425_p2, %p13419_p13 }
  0x61   :  { %13429 = shalt.err (!%p13426_p3)
}
  0x62   :  { %156 = dma.hbm_to_vmem [thread:$0]  %s15418_s18, 32, %s151_s1, [#allocation14], %s13643_s6, %s13643_s6, %s13644_s11  }
  0x63   :  { %s13430_s10 = scalar_lea.hbm %s15421_s21, 32 }
  0x64   :  { %p13431_p4 = scmp.ne.s32.totalorder %s15421_s21, %s13430_s10  ;;  %p13434_p5 = scmp.lt.u32.totalorder %s13430_s10, %s15421_s21 }
  0x66   :  { %p13436_p6 = pnand %p13434_p5, %p13431_p4 }
  0x68   :  { %13439 = shalt.err (!%p13436_p6)
}
  0x69   :  { %s13440_s22 = scalar_lea.vmem %s177_s9, 32  ;;  %p13445_p8 = scmp.lt.s32.totalorder %s177_s9, %s177_s9 }
  0x6a   :  { %p13441_p7 = scmp.ne.s32.totalorder %s177_s9, %s13440_s22  ;;  %p13446_p9 = scmp.lt.s32.totalorder %s13440_s22, %s13440_s22 }
  0x6c   :  { %p13447_p10 = por %p13446_p9, %p13445_p8 }
  0x6e   :  { %p13448_p11 = pnand %p13447_p10, %p13441_p7 }
  0x70   :  { %13451 = shalt.err (!%p13448_p11)
}
  0x71   :  { %182 = dma.hbm_to_vmem [thread:$0]  %s15421_s21, 32, %s177_s9, [#allocation17], %s13643_s6, %s13643_s6, %s13644_s11  }
  0x72   :  { %s13649_s26 = smov [#allocation19]   ;;  %s13650_s7 = smov [#allocation2]  }
  0x73   :  { %s203_s3 = sshll.u32 %s13649_s26, 4  ;;  %s46_s30 = sshll.u32 %s13650_s7, 4  ;;  %s204_s3 = int_to_ptr.vmem [resolvable:$true] %s203_s3  ;;  %s47_s30 = int_to_ptr.vmem [resolvable:$true] %s46_s30 }
  0x74   :  { %s13452_s28 = scalar_lea.hbm %s15424_s24, 16 }
  0x75   :  { %p13453_p12 = scmp.ne.s32.totalorder %s15424_s24, %s13452_s28  ;;  %p13456_p13 = scmp.lt.u32.totalorder %s13452_s28, %s15424_s24 }
  0x77   :  { %p13458_p0 = pnand %p13456_p13, %p13453_p12 }
  0x79   :  { %13461 = shalt.err (!%p13458_p0)
}
  0x7a   :  { %s13462_s21 = scalar_lea.vmem %s204_s3, 16  ;;  %s13466_s9 = scalar_lea.vmem %s204_s3, 32 }
  0x7b   :  { %p13463_p1 = scmp.ne.s32.totalorder %s204_s3, %s13462_s21  ;;  %p13467_p2 = scmp.lt.s32.totalorder %s204_s3, %s204_s3 }
  0x7c   :  { %p13468_p3 = scmp.lt.s32.totalorder %s13466_s9, %s13462_s21 }
  0x7e   :  { %p13469_p4 = por %p13468_p3, %p13467_p2 }
  0x80   :  { %p13470_p5 = pnand %p13469_p4, %p13463_p1 }
  0x82   :  { %13473 = shalt.err (!%p13470_p5)
}
  0x83   :  { %206 = dma.hbm_to_vmem [thread:$0]  %s15424_s24, 16, %s204_s3, [#allocation20]  }
  0x84   :  { %s15460_s18 = sld [smem:[#allocation30_spill]] }
  0x8a   :  { %s13474_s1 = scalar_lea.hbm %s15460_s18, 512 }
  0x8b   :  { %p13475_p6 = scmp.ne.s32.totalorder %s15460_s18, %s13474_s1  ;;  %p13478_p7 = scmp.lt.u32.totalorder %s13474_s1, %s15460_s18 }
  0x8d   :  { %p13480_p8 = pnand %p13478_p7, %p13475_p6 }
  0x8f   :  { %13483 = shalt.err (!%p13480_p8)
}
  0x90   :  { %s13484_s28 = scalar_lea.vmem %s47_s30, 512  ;;  %p13489_p10 = scmp.lt.s32.totalorder %s47_s30, %s47_s30 }
  0x91   :  { %p13485_p9 = scmp.ne.s32.totalorder %s47_s30, %s13484_s28  ;;  %p13490_p11 = scmp.lt.s32.totalorder %s13484_s28, %s13484_s28 }
  0x93   :  { %p13491_p12 = por %p13490_p11, %p13489_p10 }
  0x95   :  { %p13492_p13 = pnand %p13491_p12, %p13485_p9 }
  0x97   :  { %13495 = shalt.err (!%p13492_p13)
}
  0x98   :  { %s13651_s24 = smov 128   ;;  %s13652_s3 = smov 8  }
  0x99   :  { %52 = dma.hbm_to_vmem [thread:$0]  %s15460_s18, 512, %s47_s30, [#allocation3], %s13651_s24, %s13651_s24, %s13652_s3  }
  0x9a   :  { %s13653_s10 = smov [#allocation6]   ;;  %s13654_s21 = smov [#allocation9]  }
  0x9b   :  { %s84_s29 = sshll.u32 %s13653_s10, 4  ;;  %s110_s9 = sshll.u32 %s13654_s21, 4  ;;  %s85_s29 = int_to_ptr.vmem [resolvable:$true] %s84_s29  ;;  %s111_s9 = int_to_ptr.vmem [resolvable:$true] %s110_s9 }
  0x9c   :  { %s15461_s27 = sld [smem:[#allocation39_spill]] }
  0xa2   :  { %s13496_s22 = scalar_lea.hbm %s15461_s27, 32 }
  0xa3   :  { %p13497_p0 = scmp.ne.s32.totalorder %s15461_s27, %s13496_s22  ;;  %p13500_p1 = scmp.lt.u32.totalorder %s13496_s22, %s15461_s27 }
  0xa5   :  { %p13502_p2 = pnand %p13500_p1, %p13497_p0 }
  0xa7   :  { %13505 = shalt.err (!%p13502_p2)
}
  0xa8   :  { %s13506_s30 = scalar_lea.vmem %s85_s29, 32  ;;  %p13511_p4 = scmp.lt.s32.totalorder %s85_s29, %s85_s29 }
  0xa9   :  { %p13507_p3 = scmp.ne.s32.totalorder %s85_s29, %s13506_s30  ;;  %p13512_p5 = scmp.lt.s32.totalorder %s13506_s30, %s13506_s30 }
  0xab   :  { %p13513_p6 = por %p13512_p5, %p13511_p4 }
  0xad   :  { %p13514_p7 = pnand %p13513_p6, %p13507_p3 }
  0xaf   :  { %13517 = shalt.err (!%p13514_p7)
}
  0xb0   :  { %90 = dma.hbm_to_vmem [thread:$0]  %s15461_s27, 32, %s85_s29, [#allocation5], %s13643_s6, %s13643_s6, %s13644_s11  }
  0xb1   :  { %s13518_s0 = scalar_lea.hbm %s15413_s13, 32 }
  0xb2   :  { %p13519_p8 = scmp.ne.s32.totalorder %s15413_s13, %s13518_s0  ;;  %p13522_p9 = scmp.lt.u32.totalorder %s13518_s0, %s15413_s13 }
  0xb4   :  { %p13524_p10 = pnand %p13522_p9, %p13519_p8 }
  0xb6   :  { %13527 = shalt.err (!%p13524_p10)
}
  0xb7   :  { %s13528_s2 = scalar_lea.vmem %s111_s9, 32  ;;  %p13533_p12 = scmp.lt.s32.totalorder %s111_s9, %s111_s9 }
  0xb8   :  { %p13529_p11 = scmp.ne.s32.totalorder %s111_s9, %s13528_s2  ;;  %p13534_p13 = scmp.lt.s32.totalorder %s13528_s2, %s13528_s2 }
  0xba   :  { %p13535_p0 = por %p13534_p13, %p13533_p12 }
  0xbc   :  { %p13536_p1 = pnand %p13535_p0, %p13529_p11 }
  0xbe   :  { %13539 = shalt.err (!%p13536_p1)
}
  0xbf   :  { %116 = dma.hbm_to_vmem [thread:$0]  %s15413_s13, 32, %s111_s9, [#allocation8], %s13643_s6, %s13643_s6, %s13644_s11  }
  0xc0   :  { %s13655_s22 = smov [#allocation12]   ;;  %s13656_s26 = smov [#allocation15]  }
  0xc1   :  { %s138_s1 = sshll.u32 %s13655_s22, 4  ;;  %s162_s7 = sshll.u32 %s13656_s26, 4  ;;  %s139_s1 = int_to_ptr.vmem [resolvable:$true] %s138_s1  ;;  %s163_s7 = int_to_ptr.vmem [resolvable:$true] %s162_s7 }
  0xc2   :  { %s13540_s18 = scalar_lea.hbm %s15417_s17, 32 }
  0xc3   :  { %p13541_p2 = scmp.ne.s32.totalorder %s15417_s17, %s13540_s18  ;;  %p13544_p3 = scmp.lt.u32.totalorder %s13540_s18, %s15417_s17 }
  0xc5   :  { %p13546_p4 = pnand %p13544_p3, %p13541_p2 }
  0xc7   :  { %13549 = shalt.err (!%p13546_p4)
}
  0xc8   :  { %s13550_s13 = scalar_lea.vmem %s139_s1, 32  ;;  %p13555_p6 = scmp.lt.s32.totalorder %s139_s1, %s139_s1 }
  0xc9   :  { %p13551_p5 = scmp.ne.s32.totalorder %s139_s1, %s13550_s13  ;;  %p13556_p7 = scmp.lt.s32.totalorder %s13550_s13, %s13550_s13 }
  0xcb   :  { %p13557_p8 = por %p13556_p7, %p13555_p6 }
  0xcd   :  { %p13558_p9 = pnand %p13557_p8, %p13551_p5 }
  0xcf   :  { %13561 = shalt.err (!%p13558_p9)
}
  0xd0   :  { %144 = dma.hbm_to_vmem [thread:$0]  %s15417_s17, 32, %s139_s1, [#allocation11], %s13643_s6, %s13643_s6, %s13644_s11  }
  0xd1   :  { %s13562_s4 = scalar_lea.hbm %s15419_s19, 32 }
  0xd2   :  { %p13563_p10 = scmp.ne.s32.totalorder %s15419_s19, %s13562_s4  ;;  %p13566_p11 = scmp.lt.u32.totalorder %s13562_s4, %s15419_s19 }
  0xd4   :  { %p13568_p12 = pnand %p13566_p11, %p13563_p10 }
  0xd6   :  { %13571 = shalt.err (!%p13568_p12)
}
  0xd7   :  { %s13572_s26 = scalar_lea.vmem %s163_s7, 32  ;;  %p13577_p0 = scmp.lt.s32.totalorder %s163_s7, %s163_s7 }
  0xd8   :  { %p13573_p13 = scmp.ne.s32.totalorder %s163_s7, %s13572_s26  ;;  %p13578_p1 = scmp.lt.s32.totalorder %s13572_s26, %s13572_s26 }
  0xda   :  { %p13579_p2 = por %p13578_p1, %p13577_p0 }
  0xdc   :  { %p13580_p3 = pnand %p13579_p2, %p13573_p13 }
  0xde   :  { %13583 = shalt.err (!%p13580_p3)
}
  0xdf   :  { %168 = dma.hbm_to_vmem [thread:$0]  %s15419_s19, 32, %s163_s7, [#allocation14], %s13643_s6, %s13643_s6, %s13644_s11  }
  0xe0   :  { %s13657_s15 = smov [#allocation18]   ;;  %s13658_s18 = smov [#allocation21]  }
  0xe1   :  { %s190_s30 = sshll.u32 %s13657_s15, 4  ;;  %s213_s5 = sshll.u32 %s13658_s18, 4  ;;  %s191_s30 = int_to_ptr.vmem [resolvable:$true] %s190_s30  ;;  %s214_s5 = int_to_ptr.vmem [resolvable:$true] %s213_s5 }
  0xe2   :  { %s13584_s0 = scalar_lea.hbm %s15423_s23, 32 }
  0xe3   :  { %p13585_p4 = scmp.ne.s32.totalorder %s15423_s23, %s13584_s0  ;;  %p13588_p5 = scmp.lt.u32.totalorder %s13584_s0, %s15423_s23 }
  0xe5   :  { %p13590_p6 = pnand %p13588_p5, %p13585_p4 }
  0xe7   :  { %13593 = shalt.err (!%p13590_p6)
}
  0xe8   :  { %s13594_s19 = scalar_lea.vmem %s191_s30, 32  ;;  %p13599_p8 = scmp.lt.s32.totalorder %s191_s30, %s191_s30 }
  0xe9   :  { %p13595_p7 = scmp.ne.s32.totalorder %s191_s30, %s13594_s19  ;;  %p13600_p9 = scmp.lt.s32.totalorder %s13594_s19, %s13594_s19 }
  0xeb   :  { %p13601_p10 = por %p13600_p9, %p13599_p8 }
  0xed   :  { %p13602_p11 = pnand %p13601_p10, %p13595_p7 }
  0xef   :  { %13605 = shalt.err (!%p13602_p11)
}
  0xf0   :  { %196 = dma.hbm_to_vmem [thread:$0]  %s15423_s23, 32, %s191_s30, [#allocation17], %s13643_s6, %s13643_s6, %s13644_s11  }
  0xf1   :  { %s13606_s29 = scalar_lea.hbm %s15425_s25, 16 }
  0xf2   :  { %p13607_p12 = scmp.ne.s32.totalorder %s15425_s25, %s13606_s29  ;;  %p13610_p13 = scmp.lt.u32.totalorder %s13606_s29, %s15425_s25 }
  0xf4   :  { %p13612_p0 = pnand %p13610_p13, %p13607_p12 }
  0xf6   :  { %13615 = shalt.err (!%p13612_p0)
}
  0xf7   :  { %s13616_s1 = scalar_lea.vmem %s214_s5, 16  ;;  %s13620_s15 = scalar_lea.vmem %s214_s5, 32 }
  0xf8   :  { %p13617_p1 = scmp.ne.s32.totalorder %s214_s5, %s13616_s1  ;;  %p13621_p2 = scmp.lt.s32.totalorder %s214_s5, %s214_s5 }
  0xf9   :  { %p13622_p3 = scmp.lt.s32.totalorder %s13620_s15, %s13616_s1 }
  0xfb   :  { %p13623_p4 = por %p13622_p3, %p13621_p2 }
  0xfd   :  { %p13624_p5 = pnand %p13623_p4, %p13617_p1 }
  0xff   :  { %13627 = shalt.err (!%p13624_p5)
}
 0x100   :  { %216 = dma.hbm_to_vmem [thread:$0]  %s15425_s25, 16, %s214_s5, [#allocation20]  }
 0x101   :  { %13628 = dma.done.wait [#allocation3], 512  }
 0x102   :  { %13629 = vsyncadd [#allocation3], 4294966784 }
 0x103   :  { %13630 = dma.done.wait [#allocation5], 64  }
 0x104   :  { %13631 = vsyncadd [#allocation5], 4294967232 }
 0x105   :  { %13632 = dma.done.wait [#allocation8], 64  }
 0x106   :  { %13633 = vsyncadd [#allocation8], 4294967232 }
 0x107   :  { %13634 = dma.done.wait [#allocation11], 64  }
 0x108   :  { %13635 = vsyncadd [#allocation11], 4294967232 }
 0x109   :  { %13636 = dma.done.wait [#allocation14], 64  }
 0x10a   :  { %13637 = vsyncadd [#allocation14], 4294967232 }
 0x10b   :  { %13638 = dma.done.wait [#allocation17], 64  }
 0x10c   :  { %13639 = vsyncadd [#allocation17], 4294967232 }
 0x10d   :  { %13640 = dma.done.wait [#allocation20], 32  }
 0x10e   :  { %13641 = vsyncadd [#allocation20], 4294967264  ;;  %v13659_v0 = vmov 0   ;;  %s15462_s28 = sld [smem:[#allocation29_spill]]  ;;  %s15463_s24 = sld [smem:[#allocation31_spill]]  ;;  %v13660_v15 = vmov 0.0   ;;  %v260_v16 = vlaneseq }
 0x10f   :  { %13173 = vset.pattern.permute.xlu0 %v13659_v0  ;;  %vm284_vm0 = vcmask 523264   ;;  %s15464_s11 = sld [smem:[#allocation32_spill]]  ;;  %vm372_vm3 = vcmask 261120   ;;  %s15465_s5 = sld [smem:[#allocation35_spill]]  ;;  %vm13665_vm4 = vmmov 0   ;;  %vm655_vm5 = vcmask 64512  }
 0x110   :  { %v14029_v17 = vand.u32 127, %v260_v16  ;;  %s15466_s21 = sld [smem:[#allocation33_spill]]  ;;  %s15467_s29 = sld [smem:[#allocation34_spill]]  ;;  %vm1722_vm7 = vcmask 130048   ;;  %vm1724_vm8 = vcmask 195584  }
 0x111   :  { %s15468_s26 = sld [smem:[#allocation36_spill]]  ;;  %s13661_s17 = smov 120  }
 0x112   :  { %s13662_s1 = smov 112   ;;  %s13663_s15 = smov 104  }
 0x113   :  { %s13664_s23 = smov 96   ;;  %s13669_s0 = smov 24  }
 0x114   :  { %v258_v1 = vld [vmem:[%s15462_s28] sm:$0xff]  ;;  %v275_v3 = vld [vmem:[%s15463_s24 + $0x8] sm:$0xff]  ;;  %v276_v4 = vld [vmem:[%s15463_s24 + $0x10] sm:$0xff]  ;;  %s15472_s30 = sld [smem:[#allocation41_spill]]  ;;  %s15473_s22 = sld [smem:[#allocation42_spill]] }
 0x115   :  { %v274_v2 = vld [vmem:[%s15463_s24] sm:$0xff]  ;;  %263 = vperm.xlu0 %13173, %v258_v1   ;;  %v277_v5 = vld [vmem:[%s15463_s24 + $0x18] sm:$0xff]  ;;  %v259_v6 = vld [vmem:[%s15462_s28 + $0x8] sm:$0xff]  ;;  %s15471_s28 = sld [smem:[#allocation37_spill]] }
 0x116   :  { %v12961_v7 = vpack.c.bf16 %v275_v3, %v274_v2  ;;  %v12965_v8 = vpack.c.bf16 %v277_v5, %v276_v4  ;;  %v278_v9 = vld [vmem:[%s15463_s24 + $0x20] sm:$0xff]  ;;  %v279_v10 = vld [vmem:[%s15463_s24 + $0x28] sm:$0xff]  ;;  %v280_v12 = vld [vmem:[%s15463_s24 + $0x30] sm:$0xff] }
 0x117   :  { %v12969_v11 = vpack.c.bf16 %v279_v10, %v278_v9  ;;  %v281_v13 = vld [vmem:[%s15463_s24 + $0x38] sm:$0xff]  ;;  %v282_v22 = vld [vmem:[%s15464_s11] sm:$0xff]  ;;  %v283_v24 = vld [vmem:[%s15464_s11 + $0x8] sm:$0xff]  ;;  %s13666_s11 = smov 64  }
 0x118   :  { %12962 = vmatprep.subr.bf16.mxu0 %v12961_v7  ;;  %v12973_v14 = vpack.c.bf16 %v281_v13, %v280_v12  ;;  %v416_v40 = vld [vmem:[%s15465_s5] sm:$0xff]  ;;  %v417_v41 = vld [vmem:[%s15465_s5 + $0x8] sm:$0xff]  ;;  %v418_v42 = vld [vmem:[%s15465_s5 + $0x10] sm:$0xff] }
 0x119   :  { %266 = vperm.xlu0 %13173, %v259_v6   ;;  %12964 = vmatpush3.bf16.msra.mxu0 %v12961_v7  ;;  %v12977_v43 = vpack.c.bf16 %v417_v41, %v416_v40  ;;  %v419_v44 = vld [vmem:[%s15465_s5 + $0x18] sm:$0xff]  ;;  %v11934_v53 = vld [vmem:[%s15466_s21] ss:$0 sm:$0xff] }
 0x11a   :  { %12966 = vmatprep.subr.bf16.mxu0 %v12965_v8  ;;  %v12981_v45 = vpack.c.bf16 %v419_v44, %v418_v42  ;;  %v11935_v55 = vld [vmem:[%s15467_s29] ss:$0 sm:$0xff] }
 0x11b   :  { %12978 = vmatprep.subr.bf16.mxu1 %v12977_v43  ;;  %v11936_v62 = vld [vmem:[%s15468_s26] ss:$0 sm:$0xff] }
 0x11c   :  { %12980 = vmatpush3.bf16.msra.mxu1 %v12977_v43 }
 0x11d   :  { %12968 = vmatpush3.bf16.msra.mxu0 %v12965_v8  ;;  %12982 = vmatprep.subr.bf16.mxu1 %v12981_v45 }
 0x11e   :  { %12970 = vmatprep.subr.bf16.mxu0 %v12969_v11 }
 0x120   :  { %12984 = vmatpush3.bf16.msra.mxu1 %v12981_v45 }
 0x121   :  { %12972 = vmatpush3.bf16.msra.mxu0 %v12969_v11  ;;  %12433 = vmatprep.subr.mxu1 %v13660_v15 }
 0x122   :  { %12974 = vmatprep.subr.bf16.mxu0 %v12973_v14 }
 0x125   :  { %12976 = vmatpush3.bf16.msra.mxu0 %v12973_v14  ;;  %v14126_v14 = vshrl.u32 %v260_v16, 7 }
 0x126   :  { %12443 = vmatprep.subr.mxu0 %v13660_v15 }
 0x127   :  { %vm14130_vm6 = vcmp.ge.s32.totalorder %v14126_v14, %v14029_v17 }
 0x194   :  { %v264_v18 = vpop.permute.xlu0 %263 }
 0x195   :  { %vm268_vm1 = vcmp.eq.s32.totalorder %v264_v18, %v14029_v17 }
 0x196   :  { %v11930_v19 = vsel %vm268_vm1, 1.0, %v13660_v15 }
 0x197   :  { %12419 = vmatprep.mubr.msk.f32.mxu0 %vm284_vm0, %v11930_v19 }
 0x198   :  { %v267_v20 = vpop.permute.xlu0 %266 }
 0x199   :  { %vm269_vm2 = vcmp.eq.s32.totalorder %v267_v20, %v14029_v17 }
 0x19a   :  { %v11931_v21 = vsel %vm269_vm2, 1.0, %v13660_v15 }
 0x19b   :  { %12420 = vmatmul.mubr.msk.f32.vlgmr.msra.gmra.mrb[0].mxu0 %vm284_vm0, %v11931_v21 }
 0x19c   :  { %12445 = vmatprep.mubr.msk.f32.mxu0 %vm13665_vm4, %v13660_v15 }
 0x26e   :  { %v12421_v23 = vpop.f32.mrb[0].mxu0 }
 0x26f   :  { %v357_v25 = vpop.f32.mrb[1].mxu0  ;;  %v14043_v27 = vadd.f32 %v12421_v23, %v283_v24 }
 0x270   :  { %v14041_v26 = vadd.f32 %v357_v25, %v282_v22 }
 0x271   :  { %v376_v29 = vsel %vm372_vm3, %v14043_v27, 0.0 }
 0x272   :  { %v373_v28 = vsel %vm372_vm3, %v14041_v26, 0.0 }
 0x273   :  { %374 = vadd.xlane.f32.xlu1 %v373_v28 }
 0x277   :  { %377 = vadd.xlane.f32.xlu1 %v376_v29 }
 0x300   :  { %v375_v30 = vpop.xlane.xlu1 %374 }
 0x301   :  { %v380_v31 = vmul.f32 0.03125, %v375_v30 }
 0x303   :  { %v382_v32 = vsub.f32 %v14041_v26, %v380_v31 }
 0x304   :  { %v378_v33 = vpop.xlane.xlu1 %377 }
 0x305   :  { %v381_v34 = vmul.f32 0.03125, %v378_v33  ;;  %v384_v35 = vmul.f32 %v382_v32, %v382_v32 }
 0x307   :  { %v383_v36 = vsub.f32 %v14043_v27, %v381_v34  ;;  %v386_v37 = vsel %vm372_vm3, %v384_v35, 0.0 }
 0x308   :  { %387 = vadd.xlane.f32.xlu0 %v386_v37 }
 0x309   :  { %v385_v38 = vmul.f32 %v383_v36, %v383_v36 }
 0x30b   :  { %v389_v39 = vsel %vm372_vm3, %v385_v38, 0.0 }
 0x30c   :  { %390 = vadd.xlane.f32.xlu1 %v389_v39 }
 0x395   :  { %v388_v46 = vpop.xlane.xlu0 %387 }
 0x396   :  { %v392_v47 = vmul.f32 0.03125, %v388_v46 }
 0x398   :  { %v394_v48 = vadd.f32 1e-05, %v392_v47 }
 0x399   :  { %v391_v49 = vpop.xlane.xlu1 %390 }
 0x39a   :  { %13174 = vrsqrt.f32 %v394_v48  ;;  %v393_v50 = vmul.f32 0.03125, %v391_v49 }
 0x39c   :  { %v395_v51 = vadd.f32 1e-05, %v393_v50 }
 0x39e   :  { %13176 = vrsqrt.f32 %v395_v51 }
 0x3a4   :  { %v13175_v52 = vpop.eup %13174 }
 0x3a5   :  { %v398_v54 = vmul.f32 %v13175_v52, %v382_v32 }
 0x3a7   :  { %v406_v56 = vmul.f32 %v11934_v53, %v398_v54 }
 0x3a8   :  { %v13177_v57 = vpop.eup %13176 }
 0x3a9   :  { %v399_v58 = vmul.f32 %v13177_v57, %v383_v36  ;;  %v414_v59 = vadd.f32 %v11935_v55, %v406_v56 }
 0x3ab   :  { %v407_v60 = vmul.f32 %v11934_v53, %v399_v58  ;;  %12430 = vmatprep.mubr.msk.f32.mxu1 %vm372_vm3, %v414_v59 }
 0x3ad   :  { %v415_v61 = vadd.f32 %v11935_v55, %v407_v60 }
 0x3af   :  { %12431 = vmatmul.mubr.msk.f32.vlgmr.msra.gmra.mrb[0].mxu1 %vm372_vm3, %v415_v61 }
 0x3b0   :  { %12435 = vmatprep.mubr.msk.f32.mxu1 %vm13665_vm4, %v13660_v15 }
 0x482   :  { %v12432_v63 = vpop.f32.mrb[0].mxu1 }
 0x483   :  { %v14077_v0 = vadd.f32 %v12432_v63, %v11936_v62  ;;  %v499_v1 = vpop.f32.mrb[1].mxu1 }
 0x484   :  { %v14079_v2 = vadd.f32 %v11936_v62, %v499_v1 }
 0x486   :  { %509 = vrot.lane.b32.xlu1 %v14079_v2, %s13661_s17 }
 0x48a   :  { %511 = vrot.lane.b32.xlu1 %v14079_v2, %s13662_s1 }
 0x48e   :  { %513 = vrot.lane.b32.xlu1 %v14079_v2, %s13663_s15 }
 0x492   :  { %515 = vrot.lane.b32.xlu1 %v14079_v2, %s13664_s23 }
 0x4f8   :  { %v14089_v3 = vpop.permute.xlu1 %509 }
 0x4f9   :  { %517 = vrot.lane.b32.xlu0 %v14089_v3, %s13664_s23 }
 0x4fc   :  { %v14093_v4 = vpop.permute.xlu1 %511 }
 0x4fd   :  { %519 = vrot.lane.b32.xlu1 %v14093_v4, %s13664_s23 }
 0x500   :  { %v14097_v5 = vpop.permute.xlu1 %513 }
 0x501   :  { %521 = vrot.lane.b32.xlu1 %v14097_v5, %s13664_s23 }
 0x504   :  { %v516_v6 = vpop.permute.xlu1 %515 }
 0x52a   :  { %527 = vxpose.xlu1.b32.start.end [1/1] (short) (narrow) %v516_v6, 8 }
 0x56b   :  { %v518_v7 = vpop.permute.xlu0 %517 }
 0x56c   :  { %559 = vxpose.xlu0.b32.start.end [1/1] (short) (narrow) %v518_v7, 8 }
 0x56f   :  { %v520_v8 = vpop.permute.xlu1 %519 }
 0x570   :  { %591 = vxpose.xlu1.b32.start.end [1/1] (short) (narrow) %v520_v8, 8 }
 0x573   :  { %v522_v9 = vpop.permute.xlu1 %521 }
 0x574   :  { %623 = vxpose.xlu0.b32.start.end [1/1] (short) (narrow) %v522_v9, 8 }
 0x5aa   :  { %v543_v10 = vpop.trf.xlu1 }
 0x5ab   :  { %12434 = vmatpush3.msra.mxu1 %v543_v10 }
 0x5ac   :  { %12436 = vmatmul.mubr.msk.f32.vlgmr.msra.gmra.mrb[2].mxu1 %vm655_vm5, %v14079_v2  ;;  %12438 = vmatprep.subr.mxu1 %v13660_v15 }
 0x5ad   :  { %12440 = vmatprep.mubr.msk.f32.mxu1 %vm13665_vm4, %v13660_v15 }
 0x5ec   :  { %v575_v11 = vpop.trf.xlu0 }
 0x5ed   :  { %12439 = vmatpush3.msra.mxu1 %v575_v11 }
 0x5ee   :  { %12441 = vmatmul.mubr.msk.f32.vlgmr.msra.gmra.mrb[4].mxu1 %vm655_vm5, %v14089_v3  ;;  %12448 = vmatprep.subr.mxu1 %v13660_v15 }
 0x5ef   :  { %12450 = vmatprep.mubr.msk.f32.mxu1 %vm13665_vm4, %v13660_v15 }
 0x5f0   :  { %v607_v12 = vpop.trf.xlu1 }
 0x5f1   :  { %12444 = vmatpush3.msra.mxu0 %v607_v12 }
 0x5f2   :  { %12446 = vmatmul.mubr.msk.f32.vlgmr.msra.gmra.mrb[2].mxu0 %vm655_vm5, %v14093_v4  ;;  %12453 = vmatprep.subr.mxu0 %v13660_v15 }
 0x5f3   :  { %12455 = vmatprep.mubr.msk.f32.mxu0 %vm13665_vm4, %v13660_v15 }
 0x5f4   :  { %v639_v13 = vpop.trf.xlu0 }
 0x5f5   :  { %12449 = vmatpush3.msra.mxu1 %v639_v13 }
 0x5f6   :  { %12451 = vmatmul.mubr.msk.f32.vlgmr.msra.gmra.mrb[6].mxu1 %vm655_vm5, %v14097_v5  ;;  %12458 = vmatprep.subr.mxu1 %v13660_v15 }
 0x5f7   :  { %12460 = vmatprep.mubr.msk.f32.mxu1 %vm13665_vm4, %v13660_v15 }
 0x67f   :  { %v724_v19 = vpop.f32.mrb[2].mxu1 }
 0x680   :  { %v944_v20 = vmul.f32 0.35355338, %v724_v19  ;;  %v12437_v21 = vpop.f32.mrb[3].mxu1 }
 0x682   :  { %v953_v22 = vsel %vm14130_vm6, %v944_v20, -1e+30 }
 0x683   :  { %v957_v23 = vsel %vm655_vm5, %v953_v22, -inf }
 0x684   :  { %958 = vmax.xlane.f32.xlu1 %v957_v23 }
 0x695   :  { %1729 = vrot.lane.b32.xlu1 %v14077_v0, %s13662_s1 }
 0x6c1   :  { %v796_v16 = vpop.f32.mrb[4].mxu1 }
 0x6c2   :  { %v945_v24 = vmul.f32 0.35355338, %v796_v16  ;;  %v12442_v25 = vpop.f32.mrb[5].mxu1 }
 0x6c4   :  { %v954_v17 = vsel %vm14130_vm6, %v945_v24, -1e+30 }
 0x6c5   :  { %v868_v28 = vpop.f32.mrb[2].mxu0  ;;  %v960_v29 = vsel %vm655_vm5, %v954_v17, -inf }
 0x6c6   :  { %v946_v30 = vmul.f32 0.35355338, %v868_v28  ;;  %961 = vmax.xlane.f32.xlu0 %v960_v29  ;;  %v12447_v31 = vpop.f32.mrb[3].mxu0 }
 0x6c8   :  { %v955_v32 = vsel %vm14130_vm6, %v946_v30, -1e+30 }
 0x6c9   :  { %v940_v33 = vpop.f32.mrb[6].mxu1  ;;  %v963_v34 = vsel %vm655_vm5, %v955_v32, -inf }
 0x6ca   :  { %v947_v35 = vmul.f32 0.35355338, %v940_v33  ;;  %v12452_v36 = vpop.f32.mrb[7].mxu1  ;;  %964 = vmax.xlane.f32.xlu1 %v963_v34 }
 0x6cc   :  { %v956_v37 = vsel %vm14130_vm6, %v947_v35, -1e+30 }
 0x6cd   :  { %v966_v38 = vsel %vm655_vm5, %v956_v37, -inf }
 0x6ce   :  { %967 = vmax.xlane.f32.xlu1 %v966_v38 }
 0x6dc   :  { %1727 = vrot.lane.b32.xlu0 %v14077_v0, %s13661_s17 }
 0x6df   :  { %1731 = vrot.lane.b32.xlu1 %v14077_v0, %s13663_s15 }
 0x6e0   :  { %1001 = vrot.lane.b32.xlu0 %v14079_v2, %s13666_s11 }
 0x6e3   :  { %1003 = vrot.lane.b32.xlu1 %v14089_v3, %s13666_s11 }
 0x6e4   :  { %1005 = vrot.lane.b32.xlu0 %v14093_v4, %s13666_s11 }
 0x6e7   :  { %1007 = vrot.lane.b32.xlu1 %v14097_v5, %s13666_s11 }
 0x6e8   :  { %1733 = vrot.lane.b32.xlu0 %v14077_v0, %s13664_s23 }
 0x711   :  { %v959_v39 = vpop.xlane.xlu1 %958 }
 0x712   :  { %v969_v41 = vsub.f32 %v953_v22, %v959_v39 }
 0x714   :  { %v973_v42 = vmul.f32 1.442695, %v969_v41 }
 0x715   :  { %v14162_v40 = vpop.permute.xlu1 %1729 }
 0x716   :  { %1737 = vrot.lane.b32.xlu0 %v14162_v40, %s13664_s23  ;;  %13178 = vpow2.f32 %v973_v42 }
 0x720   :  { %v13179_v43 = vpop.eup %13178 }
 0x721   :  { %v981_v44 = vsel %vm655_vm5, %v13179_v43, 0.0 }
 0x735   :  { %982 = vadd.xlane.f32.xlu0 %v981_v44 }
 0x753   :  { %v962_v45 = vpop.xlane.xlu0 %961 }
 0x754   :  { %v970_v54 = vsub.f32 %v954_v17, %v962_v45 }
 0x756   :  { %v975_v55 = vmul.f32 1.442695, %v970_v54 }
 0x757   :  { %v14167_v46 = vpop.permute.xlu0 %1727  ;;  %v965_v47 = vpop.xlane.xlu1 %964 }
 0x758   :  { %v971_v48 = vsub.f32 %v955_v32, %v965_v47  ;;  %1735 = vrot.lane.b32.xlu1 %v14167_v46, %s13664_s23 }
 0x75a   :  { %v977_v49 = vmul.f32 1.442695, %v971_v48 }
 0x75b   :  { %v968_v50 = vpop.xlane.xlu1 %967  ;;  %v1002_v62 = vpop.permute.xlu0 %1001 }
 0x75c   :  { %13180 = vpow2.f32 %v977_v49  ;;  %v972_v56 = vsub.f32 %v956_v37, %v968_v50 }
 0x75d   :  { %13182 = vpow2.f32 %v975_v55 }
 0x75e   :  { %v979_v57 = vmul.f32 1.442695, %v972_v56 }
 0x75f   :  { %v14171_v51 = vpop.permute.xlu1 %1731  ;;  %v1006_v1 = vpop.permute.xlu0 %1005 }
 0x760   :  { %1739 = vrot.lane.b32.xlu1 %v14171_v51, %s13664_s23  ;;  %13184 = vpow2.f32 %v979_v57 }
 0x763   :  { %v1004_v63 = vpop.permute.xlu1 %1003  ;;  %v1734_v3 = vpop.permute.xlu0 %1733 }
 0x766   :  { %v13181_v52 = vpop.eup %13180 }
 0x767   :  { %v987_v53 = vsel %vm655_vm5, %v13181_v52, 0.0  ;;  %v13183_v58 = vpop.eup %13182  ;;  %v1008_v2 = vpop.permute.xlu1 %1007 }
 0x768   :  { %988 = vadd.xlane.f32.xlu0 %v987_v53  ;;  %v984_v59 = vsel %vm655_vm5, %v13183_v58, 0.0 }
 0x76a   :  { %v13185_v60 = vpop.eup %13184 }
 0x76b   :  { %v990_v61 = vsel %vm655_vm5, %v13185_v60, 0.0 }
 0x784   :  { %985 = vadd.xlane.f32.xlu1 %v984_v59 }
 0x788   :  { %991 = vadd.xlane.f32.xlu1 %v990_v61  ;;  %v1738_v4 = vpop.permute.xlu0 %1737 }
 0x795   :  { %1013 = vxpose.xlu0.b32.start.end [1/1] (short) (narrow) %v1002_v62, 8 }
 0x799   :  { %1077 = vxpose.xlu0.b32.start.end [1/1] (short) (narrow) %v1006_v1, 8 }
 0x79d   :  { %1109 = vxpose.xlu0.b32.start.end [1/1] (short) (narrow) %v1008_v2, 8 }
 0x7a1   :  { %1745 = vxpose.xlu0.b32.start.end [1/1] (short) (narrow) %v1734_v3, 8 }
 0x7a5   :  { %1809 = vxpose.xlu0.b32.start.end [1/1] (short) (narrow) %v1738_v4, 8 }
 0x7bb   :  { %1045 = vxpose.xlu1.b32.start.end [1/1] (short) (narrow) %v1004_v63, 8 }
 0x7c2   :  { %v983_v5 = vpop.xlane.xlu0 %982 }
 0x7c3   :  { %13186 = vrcp.f32 %v983_v5 }
 0x7ca   :  { %v1736_v6 = vpop.permute.xlu1 %1735 }
 0x7cb   :  { %1777 = vxpose.xlu1.b32.start.end [1/1] (short) (narrow) %v1736_v6, 8 }
 0x7cd   :  { %v13187_v7 = vpop.eup %13186 }
 0x7ce   :  { %v997_v8 = vmul.f32 %v13187_v7, %v13179_v43 }
 0x7d0   :  { %12454 = vmatpush3.xpose.msk.msra.mxu0 %vm655_vm5, %v997_v8 }
 0x7d1   :  { %12463 = vmatprep.subr.mxu0 %v13660_v15 }
 0x7d2   :  { %v1740_v9 = vpop.permute.xlu1 %1739 }
 0x7d3   :  { %1841 = vxpose.xlu1.b32.start.end [1/1] (short) (narrow) %v1740_v9, 8 }
 0x7f5   :  { %v989_v10 = vpop.xlane.xlu0 %988 }
 0x7f6   :  { %13188 = vrcp.f32 %v989_v10 }
 0x800   :  { %v13189_v12 = vpop.eup %13188 }
 0x801   :  { %v999_v19 = vmul.f32 %v13189_v12, %v13181_v52 }
 0x811   :  { %v986_v11 = vpop.xlane.xlu1 %985 }
 0x812   :  { %13190 = vrcp.f32 %v986_v11 }
 0x815   :  { %v1029_v13 = vpop.trf.xlu0  ;;  %v992_v25 = vpop.xlane.xlu1 %991 }
 0x816   :  { %12456 = vmatmul.mubr.msk.f32.vlgmr.msra.gmra.mrb[4].mxu0 %vm655_vm5, %v1029_v13  ;;  %13192 = vrcp.f32 %v992_v25 }
 0x817   :  { %12464 = vmatpush3.xpose.msk.msra.mxu0 %vm655_vm5, %v999_v19  ;;  %12465 = vmatprep.mubr.msk.f32.mxu0 %vm13665_vm4, %v13660_v15 }
 0x818   :  { %12473 = vmatprep.subr.mxu0 %v13660_v15 }
 0x819   :  { %v1093_v20 = vpop.trf.xlu0 }
 0x81a   :  { %12466 = vmatmul.mubr.msk.f32.vlgmr.msra.gmra.mrb[6].mxu0 %vm655_vm5, %v1093_v20 }
 0x81b   :  { %12475 = vmatprep.mubr.msk.f32.mxu0 %vm13665_vm4, %v13660_v15 }
 0x81c   :  { %v13191_v21 = vpop.eup %13190 }
 0x81d   :  { %v1125_v22 = vpop.trf.xlu0  ;;  %v998_v23 = vmul.f32 %v13191_v21, %v13183_v58 }
 0x81f   :  { %12459 = vmatpush3.xpose.msk.msra.mxu1 %vm655_vm5, %v998_v23 }
 0x820   :  { %12468 = vmatprep.subr.mxu1 %v13660_v15  ;;  %v13193_v17 = vpop.eup %13192 }
 0x821   :  { %v1761_v16 = vpop.trf.xlu0  ;;  %v1000_v29 = vmul.f32 %v13193_v17, %v13185_v60 }
 0x822   :  { %12474 = vmatpush3.msra.mxu0 %v1761_v16 }
 0x823   :  { %12476 = vmatmul.mubr.msk.f32.vlgmr.msra.gmra.mrb[8].mxu0 %vm655_vm5, %v14077_v0  ;;  %12483 = vmatprep.subr.mxu0 %v13660_v15 }
 0x824   :  { %12485 = vmatprep.mubr.msk.f32.mxu0 %vm13665_vm4, %v13660_v15 }
 0x825   :  { %v1825_v24 = vpop.trf.xlu0 }
 0x826   :  { %12484 = vmatpush3.msra.mxu0 %v1825_v24 }
 0x827   :  { %12486 = vmatmul.mubr.msk.f32.vlgmr.msra.gmra.mrb[10].mxu0 %vm655_vm5, %v14162_v40  ;;  %12493 = vmatprep.subr.mxu0 %v13660_v15 }
 0x828   :  { %12495 = vmatprep.mubr.msk.f32.mxu0 %vm13665_vm4, %v13660_v15 }
 0x83b   :  { %v1061_v28 = vpop.trf.xlu1 }
 0x83c   :  { %12461 = vmatmul.mubr.msk.f32.vlgmr.msra.gmra.mrb[8].mxu1 %vm655_vm5, %v1061_v28 }
 0x83d   :  { %12469 = vmatpush3.xpose.msk.msra.mxu1 %vm655_vm5, %v1000_v29  ;;  %12470 = vmatprep.mubr.msk.f32.mxu1 %vm13665_vm4, %v13660_v15 }
 0x83e   :  { %12478 = vmatprep.subr.mxu1 %v13660_v15 }
 0x840   :  { %12471 = vmatmul.mubr.msk.f32.vlgmr.msra.gmra.mrb[10].mxu1 %vm655_vm5, %v1125_v22 }
 0x841   :  { %12480 = vmatprep.mubr.msk.f32.mxu1 %vm13665_vm4, %v13660_v15 }
 0x84b   :  { %v1793_v30 = vpop.trf.xlu1 }
 0x84c   :  { %12479 = vmatpush3.msra.mxu1 %v1793_v30 }
 0x84d   :  { %12481 = vmatmul.mubr.msk.f32.vlgmr.msra.gmra.mrb[12].mxu1 %vm655_vm5, %v14167_v46  ;;  %12488 = vmatprep.subr.mxu1 %v13660_v15 }
 0x84e   :  { %12490 = vmatprep.mubr.msk.f32.mxu1 %vm13665_vm4, %v13660_v15 }
 0x853   :  { %v1857_v31 = vpop.trf.xlu1 }
 0x854   :  { %12489 = vmatpush3.msra.mxu1 %v1857_v31 }
 0x855   :  { %12491 = vmatmul.mubr.msk.f32.vlgmr.msra.gmra.mrb[14].mxu1 %vm655_vm5, %v14171_v51  ;;  %12498 = vmatprep.subr.mxu1 %v13660_v15 }
 0x856   :  { %12500 = vmatprep.mubr.msk.f32.mxu1 %vm13665_vm4, %v13660_v15 }
 0x8e9   :  { %v14218_v32 = vpop.f32.mrb[4].mxu0 }
 0x8ea   :  { %v12457_v33 = vpop.f32.mrb[5].mxu0 }
 0x8ed   :  { %v14220_v34 = vpop.f32.mrb[6].mxu0 }
 0x8ee   :  { %v12467_v35 = vpop.f32.mrb[7].mxu0 }
 0x8f6   :  { %v1941_v36 = vpop.f32.mrb[8].mxu0 }
 0x8f7   :  { %v2161_v37 = vmul.f32 0.35355338, %v1941_v36  ;;  %v12477_v38 = vpop.f32.mrb[9].mxu0 }
 0x8f9   :  { %v2165_v39 = vsel %vm14130_vm6, %v2161_v37, -1e+30 }
 0x8fa   :  { %v2085_v41 = vpop.f32.mrb[10].mxu0  ;;  %v2169_v42 = vsel %vm655_vm5, %v2165_v39, -inf }
 0x8fb   :  { %2170 = vmax.xlane.f32.xlu0 %v2169_v42  ;;  %v12487_v43 = vpop.f32.mrb[11].mxu0  ;;  %v2163_v50 = vmul.f32 0.35355338, %v2085_v41  ;;  %v13667_v42 = vmov 1983009808  }
 0x8fc   :  { %v1576_v43 = vunpack.c.l.s4 %v13667_v42 }
 0x8fd   :  { %v2167_v56 = vsel %vm14130_vm6, %v2163_v50, -1e+30 }
 0x8fe   :  { %v2175_v58 = vsel %vm655_vm5, %v2167_v56, -inf }
 0x90f   :  { %v1289_v44 = vpop.f32.mrb[8].mxu1 }
 0x910   :  { %v12462_v45 = vpop.f32.mrb[9].mxu1 }
 0x913   :  { %v1441_v47 = vpop.f32.mrb[10].mxu1 }
 0x914   :  { %v12472_v48 = vpop.f32.mrb[11].mxu1 }
 0x920   :  { %v2013_v49 = vpop.f32.mrb[12].mxu1 }
 0x921   :  { %v2162_v52 = vmul.f32 0.35355338, %v2013_v49  ;;  %v12482_v53 = vpop.f32.mrb[13].mxu1 }
 0x923   :  { %v2166_v54 = vsel %vm14130_vm6, %v2162_v52, -1e+30  ;;  %v13668_v52 = vmov 1934713408  }
 0x924   :  { %v2172_v55 = vsel %vm655_vm5, %v2166_v54, -inf  ;;  %v1608_v53 = vunpack.c.l.s4 %v13668_v52 }
 0x925   :  { %2173 = vmax.xlane.f32.xlu1 %v2172_v55 }
 0x928   :  { %v2157_v57 = vpop.f32.mrb[14].mxu1 }
 0x929   :  { %v2164_v59 = vmul.f32 0.35355338, %v2157_v57  ;;  %2176 = vmax.xlane.f32.xlu1 %v2175_v58  ;;  %v12492_v60 = vpop.f32.mrb[15].mxu1  ;;  %v1609_v58 = vunpack.c.0.s8 %v1608_v53 }
 0x92b   :  { %v2168_v61 = vsel %vm14130_vm6, %v2164_v59, -1e+30 }
 0x92c   :  { %v2178_v62 = vsel %vm655_vm5, %v2168_v61, -inf }
 0x92d   :  { %2179 = vmax.xlane.f32.xlu0 %v2178_v62 }
 0x93a   :  { %2213 = vrot.lane.b32.xlu1 %v14077_v0, %s13666_s11 }
 0x93e   :  { %2217 = vrot.lane.b32.xlu1 %v14162_v40, %s13666_s11 }
 0x942   :  { %2219 = vrot.lane.b32.xlu1 %v14171_v51, %s13666_s11 }
 0x943   :  { %2215 = vrot.lane.b32.xlu0 %v14167_v46, %s13666_s11 }
 0x988   :  { %v2171_v63 = vpop.xlane.xlu0 %2170 }
 0x989   :  { %v2181_v1 = vsub.f32 %v2165_v39, %v2171_v63  ;;  %v14270_v63 = vsub.s32 %v1609_v58, %v14126_v14 }
 0x98b   :  { %v2185_v2 = vmul.f32 1.442695, %v2181_v1 }
 0x98d   :  { %13194 = vpow2.f32 %v2185_v2 }
 0x997   :  { %v13195_v3 = vpop.eup %13194 }
 0x998   :  { %v2193_v4 = vsel %vm655_vm5, %v13195_v3, 0.0 }
 0x999   :  { %2194 = vadd.xlane.f32.xlu0 %v2193_v4 }
 0x9b2   :  { %v2174_v5 = vpop.xlane.xlu1 %2173 }
 0x9b3   :  { %v2182_v6 = vsub.f32 %v2166_v54, %v2174_v5 }
 0x9b5   :  { %v2187_v0 = vmul.f32 1.442695, %v2182_v6 }
 0x9b6   :  { %v2177_v7 = vpop.xlane.xlu1 %2176 }
 0x9b7   :  { %13196 = vpow2.f32 %v2187_v0  ;;  %v2183_v40 = vsub.f32 %v2167_v56, %v2177_v7 }
 0x9b9   :  { %v2189_v8 = vmul.f32 1.442695, %v2183_v40 }
 0x9ba   :  { %v2180_v9 = vpop.xlane.xlu0 %2179  ;;  %v2214_v21 = vpop.permute.xlu1 %2213 }
 0x9bb   :  { %13198 = vpow2.f32 %v2189_v8  ;;  %v2184_v51 = vsub.f32 %v2168_v61, %v2180_v9 }
 0x9bd   :  { %v2191_v10 = vmul.f32 1.442695, %v2184_v51 }
 0x9be   :  { %v2218_v22 = vpop.permute.xlu1 %2217  ;;  %v2216_v23 = vpop.permute.xlu0 %2215 }
 0x9bf   :  { %13200 = vpow2.f32 %v2191_v10 }
 0x9c1   :  { %v13197_v46 = vpop.eup %13196 }
 0x9c2   :  { %v2196_v11 = vsel %vm655_vm5, %v13197_v46, 0.0  ;;  %v2220_v16 = vpop.permute.xlu1 %2219 }
 0x9c3   :  { %2197 = vadd.xlane.f32.xlu1 %v2196_v11 }
 0x9c5   :  { %v13199_v12 = vpop.eup %13198 }
 0x9c6   :  { %v2199_v13 = vsel %vm655_vm5, %v13199_v12, 0.0 }
 0x9c7   :  { %2200 = vadd.xlane.f32.xlu0 %v2199_v13 }
 0x9c9   :  { %v13201_v19 = vpop.eup %13200 }
 0x9ca   :  { %v2202_v20 = vsel %vm655_vm5, %v13201_v19, 0.0 }
 0x9cb   :  { %2203 = vadd.xlane.f32.xlu0 %v2202_v20 }
 0x9f6   :  { %2225 = vxpose.xlu1.b32.start.end [1/1] (short) (narrow) %v2214_v21, 8 }
 0x9f8   :  { %2257 = vxpose.xlu0.b32.start.end [1/1] (short) (narrow) %v2216_v23, 8 }
 0x9fa   :  { %2321 = vxpose.xlu1.b32.start.end [1/1] (short) (narrow) %v2220_v16, 8 }
 0x9fc   :  { %2289 = vxpose.xlu0.b32.start.end [1/1] (short) (narrow) %v2218_v22, 8 }
 0x9fe   :  { %1477 = vxpose.xlu1.b32.start.end [1/1] (short) (narrow) %v1289_v44, 8 }
 0xa00   :  { %1445 = vxpose.xlu0.b32.start.end [1/1] (short) (narrow) %v14218_v32, 8 }
 0xa02   :  { %1541 = vxpose.xlu1.b32.start.end [1/1] (short) (narrow) %v1441_v47, 8  ;;  %v1577_v47 = vunpack.c.0.s8 %v1576_v43 }
 0xa04   :  { %1509 = vxpose.xlu0.b32.start.end [1/1] (short) (narrow) %v14220_v34, 8  ;;  %v14263_v50 = vsub.s32 %v1577_v47, %v14126_v14 }
 0xa26   :  { %v2195_v24 = vpop.xlane.xlu0 %2194 }
 0xa27   :  { %13202 = vrcp.f32 %v2195_v24 }
 0xa31   :  { %v13203_v25 = vpop.eup %13202 }
 0xa32   :  { %v2209_v17 = vmul.f32 %v13203_v25, %v13195_v3 }
 0xa34   :  { %12494 = vmatpush3.xpose.msk.msra.mxu0 %vm655_vm5, %v2209_v17 }
 0xa35   :  { %12503 = vmatprep.subr.mxu0 %v13660_v15 }
 0xa50   :  { %v2198_v28 = vpop.xlane.xlu1 %2197 }
 0xa51   :  { %13204 = vrcp.f32 %v2198_v28 }
 0xa54   :  { %v2201_v31 = vpop.xlane.xlu0 %2200 }
 0xa55   :  { %13206 = vrcp.f32 %v2201_v31 }
 0xa58   :  { %v2204_v32 = vpop.xlane.xlu0 %2203 }
 0xa59   :  { %13208 = vrcp.f32 %v2204_v32 }
 0xa5b   :  { %v13205_v29 = vpop.eup %13204 }
 0xa5c   :  { %v2210_v30 = vmul.f32 %v13205_v29, %v13197_v46 }
 0xa5e   :  { %12499 = vmatpush3.xpose.msk.msra.mxu1 %vm655_vm5, %v2210_v30 }
 0xa5f   :  { %12508 = vmatprep.subr.mxu1 %v13660_v15  ;;  %v13207_v33 = vpop.eup %13206 }
 0xa60   :  { %v2211_v36 = vmul.f32 %v13207_v33, %v13199_v12 }
 0xa63   :  { %v13209_v34 = vpop.eup %13208 }
 0xa64   :  { %v2212_v38 = vmul.f32 %v13209_v34, %v13201_v19 }
 0xa76   :  { %v2241_v35 = vpop.trf.xlu1 }
 0xa77   :  { %12496 = vmatmul.mubr.msk.f32.vlgmr.msra.gmra.mrb[12].mxu0 %vm655_vm5, %v2241_v35 }
 0xa78   :  { %12504 = vmatpush3.xpose.msk.msra.mxu0 %vm655_vm5, %v2211_v36  ;;  %v2273_v37 = vpop.trf.xlu0  ;;  %12505 = vmatprep.mubr.msk.f32.mxu0 %vm13665_vm4, %v13660_v15  ;;  %v2936_v36 = vld [vmem:[%s15471_s28] sm:$0xff] }
 0xa79   :  { %12501 = vmatmul.mubr.msk.f32.vlgmr.msra.gmra.mrb[16].mxu1 %vm655_vm5, %v2273_v37  ;;  %v2937_v37 = vld [vmem:[%s15471_s28 + $0x8] sm:$0xff] }
 0xa7a   :  { %12509 = vmatpush3.xpose.msk.msra.mxu1 %vm655_vm5, %v2212_v38  ;;  %12510 = vmatprep.mubr.msk.f32.mxu1 %vm13665_vm4, %v13660_v15  ;;  %v2337_v39 = vpop.trf.xlu1  ;;  %v12985_v38 = vpack.c.bf16 %v2937_v37, %v2936_v36 }
 0xa7c   :  { %v2305_v41 = vpop.trf.xlu0  ;;  %12986 = vmatprep.subr.bf16.mxu0 %v12985_v38 }
 0xa7d   :  { %12506 = vmatmul.mubr.msk.f32.vlgmr.msra.gmra.mrb[14].mxu0 %vm655_vm5, %v2305_v41  ;;  %12511 = vmatmul.mubr.msk.f32.vlgmr.msra.gmra.mrb[18].mxu1 %vm655_vm5, %v2337_v39 }
 0xa7e   :  { %v1493_v45 = vpop.trf.xlu1  ;;  %12988 = vmatpush3.bf16.msra.mxu0 %v12985_v38 }
 0xa80   :  { %v1461_v44 = vpop.trf.xlu0 }
 0xa82   :  { %v1557_v49 = vpop.trf.xlu1 }
 0xa83   :  { %v1589_v56 = vcombine.low %v1493_v45, %v1557_v49  ;;  %v1590_v57 = vcombine.high %v1493_v45, %v1557_v49 }
 0xa84   :  { %v1525_v48 = vpop.trf.xlu0 }
 0xa85   :  { %v1573_v54 = vcombine.low %v1461_v44, %v1525_v48  ;;  %v1574_v55 = vcombine.high %v1461_v44, %v1525_v48  ;;  %v1597_v61 = vrot.slane %v1589_v56, %v14263_v50  ;;  %v1604_v62 = vrot.slane %v1590_v57, %v14263_v50 }
 0xa87   :  { %v1581_v59 = vrot.slane %v1573_v54, %v14263_v50  ;;  %v1588_v60 = vrot.slane %v1574_v55, %v14263_v50 }
 0xa89   :  { %v1605_v1 = vcombine.low %v1581_v59, %v1597_v61  ;;  %v1606_v2 = vcombine.high %v1581_v59, %v1597_v61  ;;  %v1621_v3 = vcombine.low %v1588_v60, %v1604_v62  ;;  %v1622_v4 = vcombine.high %v1588_v60, %v1604_v62  ;;  %v2938_v60 = vld [vmem:[%s15471_s28 + $0x10] sm:$0xff]  ;;  %v2939_v61 = vld [vmem:[%s15471_s28 + $0x18] sm:$0xff] }
 0xa8a   :  { %v12989_v62 = vpack.c.bf16 %v2939_v61, %v2938_v60  ;;  %v3078_v60 = vld [vmem:[%s15412_s12 + $0x10] sm:$0xff] }
 0xa8b   :  { %v1613_v5 = vrot.slane %v1605_v1, %v14270_v63  ;;  %v1620_v6 = vrot.slane %v1606_v2, %v14270_v63  ;;  %v1629_v0 = vrot.slane %v1621_v3, %v14270_v63  ;;  %v1636_v7 = vrot.slane %v1622_v4, %v14270_v63 }
 0xa8c   :  { %12990 = vmatprep.subr.bf16.mxu0 %v12989_v62 }
 0xa8d   :  { %v1641_v40 = vcombine.low %v1613_v5, %v1620_v6  ;;  %v11951_v8 = vcombine.high %v1613_v5, %v1620_v6  ;;  %v1657_v9 = vcombine.low %v1629_v0, %v1636_v7  ;;  %v11952_v51 = vcombine.high %v1629_v0, %v1636_v7  ;;  %12992 = vmatpush3.bf16.msra.mxu0 %v12989_v62  ;;  %v3079_v62 = vld [vmem:[%s15412_s12 + $0x18] sm:$0xff] }
 0xa8e   :  { %12564 = vmatprep.subr.mxu0 %v13660_v15 }
 0xa8f   :  { %v1648_v10 = vrot.slane %v1641_v40, %v14263_v50  ;;  %v1656_v14 = vrot.slane %v11951_v8, %v14263_v50  ;;  %v1664_v46 = vrot.slane %v1657_v9, %v14263_v50  ;;  %v1672_v11 = vrot.slane %v11952_v51, %v14263_v50 }
 0xa91   :  { %v1673_v12 = vcombine.low %v1648_v10, %v1656_v14  ;;  %v1689_v13 = vcombine.low %v1664_v46, %v1672_v11  ;;  %v1674_v30 = vcombine.high %v1648_v10, %v1656_v14  ;;  %v1690_v31 = vcombine.high %v1664_v46, %v1672_v11 }
 0xa93   :  { %v14281_v19 = vrot.slane %v1673_v12, %v14270_v63  ;;  %v14284_v20 = vrot.slane %v1689_v13, %v14270_v63  ;;  %v1688_v32 = vrot.slane %v1674_v30, %v14270_v63  ;;  %v1704_v33 = vrot.slane %v1690_v31, %v14270_v63 }
 0xa95   :  { %v1705_v21 = vcombine.low %v14281_v19, %v14284_v20  ;;  %v1707_v34 = vcombine.low %v1688_v32, %v1704_v33  ;;  %v1708_v35 = vcombine.high %v1688_v32, %v1704_v33  ;;  %v1706_v39 = vcombine.high %v14281_v19, %v14284_v20  ;;  %v11969_v20 = vld [vmem:[#allocation4] ss:$0 sm:$0xff] }
 0xb4a   :  { %v2425_v22 = vpop.f32.mrb[12].mxu0 }
 0xb4b   :  { %v12497_v23 = vpop.f32.mrb[13].mxu0  ;;  %2657 = vxpose.xlu0.b32.start.end [1/1] (short) (narrow) %v2425_v22, 8 }
 0xb4c   :  { %v2501_v16 = vpop.f32.mrb[16].mxu1 }
 0xb4d   :  { %2689 = vxpose.xlu1.b32.start.end [1/1] (short) (narrow) %v2501_v16, 8  ;;  %v12502_v24 = vpop.f32.mrb[17].mxu1 }
 0xb50   :  { %v2577_v25 = vpop.f32.mrb[14].mxu0  ;;  %v2653_v17 = vpop.f32.mrb[18].mxu1 }
 0xb51   :  { %2721 = vxpose.xlu0.b32.start.end [1/1] (short) (narrow) %v2577_v25, 8  ;;  %v12507_v28 = vpop.f32.mrb[15].mxu0  ;;  %2753 = vxpose.xlu1.b32.start.end [1/1] (short) (narrow) %v2653_v17, 8  ;;  %v12512_v29 = vpop.f32.mrb[19].mxu1 }
 0xb6f   :  { %1714 = vrot.lane.b32.xlu1 %v1707_v34, %s13643_s6 }
 0xb73   :  { %1718 = vrot.lane.b32.xlu1 %v1708_v35, %s13669_s0 }
 0xb7a   :  { %1710 = vrot.lane.b32.xlu0 %v1706_v39, %s13652_s3 }
 0xbcb   :  { %v2673_v41 = vpop.trf.xlu0 }
 0xbcd   :  { %v2705_v42 = vpop.trf.xlu1 }
 0xbd1   :  { %v2737_v43 = vpop.trf.xlu0  ;;  %v2769_v44 = vpop.trf.xlu1 }
 0xbd2   :  { %v2785_v45 = vcombine.low %v2673_v41, %v2737_v43  ;;  %v2786_v47 = vcombine.high %v2673_v41, %v2737_v43  ;;  %v2801_v48 = vcombine.low %v2705_v42, %v2769_v44  ;;  %v2802_v49 = vcombine.high %v2705_v42, %v2769_v44 }
 0xbd4   :  { %v2793_v52 = vrot.slane %v2785_v45, %v14263_v50  ;;  %v2800_v53 = vrot.slane %v2786_v47, %v14263_v50  ;;  %v2809_v54 = vrot.slane %v2801_v48, %v14263_v50  ;;  %v2816_v55 = vrot.slane %v2802_v49, %v14263_v50 }
 0xbd6   :  { %v2817_v56 = vcombine.low %v2793_v52, %v2809_v54  ;;  %v2818_v57 = vcombine.high %v2793_v52, %v2809_v54  ;;  %v2833_v58 = vcombine.low %v2800_v53, %v2816_v55  ;;  %v2834_v59 = vcombine.high %v2800_v53, %v2816_v55 }
 0xbd8   :  { %v2825_v1 = vrot.slane %v2817_v56, %v14270_v63  ;;  %v2832_v2 = vrot.slane %v2818_v57, %v14270_v63  ;;  %v2841_v3 = vrot.slane %v2833_v58, %v14270_v63  ;;  %v2848_v4 = vrot.slane %v2834_v59, %v14270_v63  ;;  %v3076_v58 = vld [vmem:[%s15412_s12] sm:$0xff]  ;;  %v3077_v59 = vld [vmem:[%s15412_s12 + $0x8] sm:$0xff] }
 0xbd9   :  { %v12993_v61 = vpack.c.bf16 %v3077_v59, %v3076_v58 }
 0xbda   :  { %v2853_v5 = vcombine.low %v2825_v1, %v2832_v2  ;;  %v11965_v6 = vcombine.high %v2825_v1, %v2832_v2  ;;  %v2869_v0 = vcombine.low %v2841_v3, %v2848_v4  ;;  %v11966_v7 = vcombine.high %v2841_v3, %v2848_v4  ;;  %v3168_v2 = vld [vmem:[%s15414_s14] sm:$0xff]  ;;  %v3169_v3 = vld [vmem:[%s15414_s14 + $0x8] sm:$0xff] }
 0xbdb   :  { %v12997_v1 = vpack.c.bf16 %v3079_v62, %v3078_v60  ;;  %12994 = vmatprep.subr.bf16.mxu1 %v12993_v61  ;;  %v13001_v4 = vpack.c.bf16 %v3169_v3, %v3168_v2 }
 0xbdc   :  { %v2860_v40 = vrot.slane %v2853_v5, %v14263_v50  ;;  %v2868_v8 = vrot.slane %v11965_v6, %v14263_v50  ;;  %v2876_v9 = vrot.slane %v2869_v0, %v14263_v50  ;;  %v2884_v51 = vrot.slane %v11966_v7, %v14263_v50  ;;  %12996 = vmatpush3.bf16.msra.mxu1 %v12993_v61 }
 0xbdd   :  { %12998 = vmatprep.subr.bf16.mxu1 %v12997_v1 }
 0xbde   :  { %v2886_v10 = vcombine.high %v2860_v40, %v2868_v8  ;;  %v2902_v14 = vcombine.high %v2876_v9, %v2884_v51  ;;  %v2885_v46 = vcombine.low %v2860_v40, %v2868_v8  ;;  %v2901_v11 = vcombine.low %v2876_v9, %v2884_v51  ;;  %v11970_v51 = vld [vmem:[#allocation6] ss:$0 sm:$0xff] }
 0xbe0   :  { %v2900_v12 = vrot.slane %v2886_v10, %v14270_v63  ;;  %v2916_v13 = vrot.slane %v2902_v14, %v14270_v63  ;;  %v2893_v22 = vrot.slane %v2885_v46, %v14270_v63  ;;  %v2909_v23 = vrot.slane %v2901_v11, %v14270_v63  ;;  %13000 = vmatpush3.bf16.msra.mxu1 %v12997_v1  ;;  %v11971_v14 = vld [vmem:[#allocation7] ss:$0 sm:$0xff] }
 0xbe1   :  { %v1715_v28 = vpop.permute.xlu1 %1714  ;;  %13002 = vmatprep.subr.bf16.mxu1 %v13001_v4 }
 0xbe2   :  { %v2919_v16 = vcombine.low %v2900_v12, %v2916_v13  ;;  %v2918_v24 = vcombine.high %v2893_v22, %v2909_v23  ;;  %v2917_v25 = vcombine.low %v2893_v22, %v2909_v23  ;;  %v2920_v17 = vcombine.high %v2900_v12, %v2916_v13  ;;  %v3170_v22 = vld [vmem:[%s15414_s14 + $0x10] sm:$0xff]  ;;  %v3171_v23 = vld [vmem:[%s15414_s14 + $0x18] sm:$0xff] }
 0xbe4   :  { %2926 = vrot.lane.b32.xlu0 %v2919_v16, %s13643_s6  ;;  %2922 = vrot.lane.b32.xlu1 %v2918_v24, %s13652_s3 }
 0xbe5   :  { %v1719_v30 = vpop.permute.xlu1 %1718 }
 0xbe8   :  { %2930 = vrot.lane.b32.xlu1 %v2920_v17, %s13669_s0  ;;  %v366_v17 = vld [vmem:[#allocation2] sm:$0xff] }
 0xbec   :  { %v1711_v29 = vpop.permute.xlu0 %1710 }
 0xbed   :  { %v1721_v31 = vsel %vm655_vm5, %v1705_v21, %v1711_v29  ;;  %v11972_v29 = vld [vmem:[#allocation9] ss:$0 sm:$0xff] }
 0xbee   :  { %v1723_v32 = vsel %vm1722_vm7, %v1721_v31, %v1715_v28  ;;  %v367_v28 = vld [vmem:[#allocation2 + $0x8] sm:$0xff] }
 0xbef   :  { %v1725_v33 = vsel %vm1724_vm8, %v1723_v32, %v1719_v30 }
 0xbf0   :  { %12521 = vmatprep.mubr.msk.f32.mxu0 %vm372_vm3, %v1725_v33  ;;  %v14385_v33 = vld [vmem:[#allocation10] ss:$0 sm:$0xff] }
 0xc56   :  { %v2923_v34 = vpop.permute.xlu1 %2922  ;;  %v2927_v35 = vpop.permute.xlu0 %2926 }
 0xc57   :  { %v2933_v36 = vsel %vm655_vm5, %v2917_v25, %v2923_v34  ;;  %v13005_v25 = vpack.c.bf16 %v3171_v23, %v3170_v22 }
 0xc58   :  { %v2934_v37 = vsel %vm1722_vm7, %v2933_v36, %v2927_v35 }
 0xc5a   :  { %v2931_v38 = vpop.permute.xlu1 %2930 }
 0xc5b   :  { %v2935_v39 = vsel %vm1724_vm8, %v2934_v37, %v2931_v38 }
 0xc5c   :  { %12522 = vmatmul.mubr.msk.f32.vlgmr.msra.gmra.mrb[16].mxu0 %vm372_vm3, %v2935_v39  ;;  %v368_v39 = vld [vmem:[#allocation2 + $0x10] sm:$0xff] }
 0xc5d   :  { %12566 = vmatprep.mubr.msk.f32.mxu0 %vm13665_vm4, %v13660_v15 }
 0xd2f   :  { %v12523_v19 = vpop.f32.mrb[16].mxu0 }
 0xd30   :  { %v3022_v21 = vadd.f32 %v12523_v19, %v14043_v27  ;;  %v3012_v41 = vpop.f32.mrb[17].mxu0  ;;  %v369_v19 = vld [vmem:[#allocation2 + $0x18] sm:$0xff] }
 0xd31   :  { %v3021_v42 = vadd.f32 %v3012_v41, %v14041_v26 }
 0xd32   :  { %v14342_v43 = vadd.f32 %v11969_v20, %v3022_v21 }
 0xd33   :  { %v14344_v44 = vadd.f32 %v11969_v20, %v3021_v42 }
 0xd34   :  { %v3037_v45 = vsel %vm372_vm3, %v14342_v43, 0.0 }
 0xd35   :  { %3038 = vadd.xlane.f32.xlu1 %v3037_v45  ;;  %v3034_v47 = vsel %vm372_vm3, %v14344_v44, 0.0 }
 0xd36   :  { %3035 = vadd.xlane.f32.xlu0 %v3034_v47 }
 0xdc2   :  { %v3039_v48 = vpop.xlane.xlu1 %3038 }
 0xdc3   :  { %v3041_v49 = vmul.f32 0.03125, %v3039_v48  ;;  %v3036_v52 = vpop.xlane.xlu0 %3035 }
 0xdc4   :  { %v3040_v53 = vmul.f32 0.03125, %v3036_v52 }
 0xdc5   :  { %v3043_v27 = vsub.f32 %v14342_v43, %v3041_v49 }
 0xdc6   :  { %v3042_v26 = vsub.f32 %v14344_v44, %v3040_v53 }
 0xdc7   :  { %v3045_v56 = vmul.f32 %v3043_v27, %v3043_v27 }
 0xdc8   :  { %v3044_v54 = vmul.f32 %v3042_v26, %v3042_v26 }
 0xdc9   :  { %v3049_v57 = vsel %vm372_vm3, %v3045_v56, 0.0 }
 0xdca   :  { %v3046_v55 = vsel %vm372_vm3, %v3044_v54, 0.0 }
 0xdcb   :  { %3047 = vadd.xlane.f32.xlu0 %v3046_v55 }
 0xdcf   :  { %3050 = vadd.xlane.f32.xlu0 %v3049_v57 }
 0xe58   :  { %v3048_v5 = vpop.xlane.xlu0 %3047 }
 0xe59   :  { %v3052_v6 = vmul.f32 0.03125, %v3048_v5 }
 0xe5b   :  { %v3054_v0 = vadd.f32 1e-05, %v3052_v6 }
 0xe5c   :  { %v3051_v7 = vpop.xlane.xlu0 %3050 }
 0xe5d   :  { %13210 = vrsqrt.f32 %v3054_v0  ;;  %v3053_v40 = vmul.f32 0.03125, %v3051_v7 }
 0xe5f   :  { %v3055_v8 = vadd.f32 1e-05, %v3053_v40 }
 0xe61   :  { %13212 = vrsqrt.f32 %v3055_v8 }
 0xe67   :  { %v13211_v9 = vpop.eup %13210 }
 0xe68   :  { %v3058_v10 = vmul.f32 %v13211_v9, %v3042_v26 }
 0xe6a   :  { %v3066_v46 = vmul.f32 %v11970_v51, %v3058_v10 }
 0xe6b   :  { %v13213_v11 = vpop.eup %13212 }
 0xe6c   :  { %v3059_v12 = vmul.f32 %v13213_v11, %v3043_v27  ;;  %v3074_v13 = vadd.f32 %v11971_v14, %v3066_v46 }
 0xe6e   :  { %v3067_v16 = vmul.f32 %v11970_v51, %v3059_v12  ;;  %12532 = vmatprep.mubr.msk.f32.mxu1 %vm372_vm3, %v3074_v13 }
 0xe70   :  { %v3075_v24 = vadd.f32 %v11971_v14, %v3067_v16 }
 0xe72   :  { %12533 = vmatmul.mubr.msk.f32.vlgmr.msra.gmra.mrb[20].mxu1 %vm372_vm3, %v3075_v24 }
 0xe73   :  { %13004 = vmatpush3.bf16.msra.mxu1 %v13001_v4  ;;  %12543 = vmatprep.mubr.msk.f32.mxu1 %vm372_vm3, %v366_v17 }
 0xe74   :  { %13006 = vmatprep.subr.bf16.mxu1 %v13005_v25 }
 0xe77   :  { %13008 = vmatpush3.bf16.msra.mxu1 %v13005_v25 }
 0xe78   :  { %12549 = vmatprep.subr.mxu1 %v13660_v15 }
 0xe7a   :  { %12544 = vmatmul.mubr.msk.f32.vlgmr.msra.gmra.mrb[22].mxu1 %vm372_vm3, %v367_v28 }
 0xe7b   :  { %12546 = vmatprep.mubr.msk.f32.mxu1 %vm372_vm3, %v368_v39 }
 0xe7e   :  { %12547 = vmatmul.mubr.msk.f32.gmra.mrb[24].mxu1 %vm372_vm3, %v369_v19 }
 0xe7f   :  { %12551 = vmatprep.mubr.msk.f32.mxu1 %vm13665_vm4, %v13660_v15 }
 0xf45   :  { %v12534_v30 = vpop.f32.mrb[20].mxu1 }
 0xf46   :  { %v14383_v31 = vadd.f32 %v12534_v30, %v11972_v29  ;;  %v3159_v32 = vpop.f32.mrb[21].mxu1 }
 0xf47   :  { %v3160_v38 = vadd.f32 %v11972_v29, %v3159_v32 }
 0xf4d   :  { %v12545_v34 = vpop.f32.mrb[22].mxu1 }
 0xf4e   :  { %v3263_v35 = vadd.f32 %v12545_v34, %v14385_v33  ;;  %v3257_v36 = vpop.f32.mrb[23].mxu1 }
 0xf4f   :  { %v3258_v37 = vadd.f32 %v14385_v33, %v3257_v36 }
 0xf50   :  { %3287 = vrot.lane.b32.xlu0 %v3263_v35, %s13661_s17 }
 0xf51   :  { %3285 = vrot.lane.b32.xlu1 %v3258_v37, %s13661_s17  ;;  %v12548_v55 = vpop.f32.mrb[24].mxu1 }
 0xf52   :  { %v3267_v56 = vpop.f32.mrb[25].mxu1  ;;  %v14439_v46 = vadd.f32 %v12548_v55, %v14385_v33 }
 0xf53   :  { %v14444_v11 = vadd.f32 %v14385_v33, %v3267_v56 }
 0xf54   :  { %3293 = vrot.lane.b32.xlu0 %v3263_v35, %s13662_s1 }
 0xf55   :  { %3291 = vrot.lane.b32.xlu1 %v3258_v37, %s13662_s1 }
 0xf58   :  { %3277 = vrot.lane.b32.xlu0 %v3160_v38, %s13661_s17 }
 0xf59   :  { %3297 = vrot.lane.b32.xlu1 %v3258_v37, %s13663_s15 }
 0xf5c   :  { %3281 = vrot.lane.b32.xlu0 %v3160_v38, %s13663_s15 }
 0xf5d   :  { %3299 = vrot.lane.b32.xlu1 %v3263_v35, %s13663_s15 }
 0xf61   :  { %3279 = vrot.lane.b32.xlu1 %v3160_v38, %s13662_s1 }
 0xf8a   :  { %3303 = vxpose.xlu1.b32.start [1/2] (short) (narrow) %v3258_v37, 8 }
 0xf8e   :  { %3304 = vxpose.xlu1.b32.end [2/2] (short) (narrow) %v3263_v35, 8 }
 0xfc2   :  { %v3288_v21 = vpop.permute.xlu0 %3287 }
 0xfc3   :  { %v3286_v20 = vpop.permute.xlu1 %3285 }
 0xfc4   :  { %3335 = vxpose.xlu0.b32.start [1/2] (short) (narrow) %v3286_v20, 8 }
 0xfc6   :  { %v3294_v45 = vpop.permute.xlu0 %3293 }
 0xfc7   :  { %v14402_v41 = vpop.permute.xlu1 %3291 }
 0xfc8   :  { %3336 = vxpose.xlu0.b32.end [2/2] (short) (narrow) %v3288_v21, 8 }
 0xfca   :  { %v3278_v52 = vpop.permute.xlu0 %3277 }
 0xfcb   :  { %v14404_v42 = vpop.permute.xlu1 %3297 }
 0xfcc   :  { %3399 = vxpose.xlu1.b32.start [1/2] (short) (narrow) %v14404_v42, 8  ;;  %3367 = vxpose.xlu0.b32.start [1/2] (short) (narrow) %v14402_v41, 8 }
 0xfce   :  { %v3282_v53 = vpop.permute.xlu0 %3281 }
 0xfcf   :  { %v14408_v47 = vpop.permute.xlu1 %3299 }
 0xfd0   :  { %3400 = vxpose.xlu1.b32.end [2/2] (short) (narrow) %v14408_v47, 8  ;;  %3368 = vxpose.xlu0.b32.end [2/2] (short) (narrow) %v3294_v45, 8 }
 0xfd3   :  { %v3280_v48 = vpop.permute.xlu1 %3279 }
 0xfee   :  { %3771 = vrot.lane.b32.xlu1 %v3286_v20, %s13664_s23 }
 0xff2   :  { %3769 = vrot.lane.b32.xlu1 %v3263_v35, %s13664_s23 }
 0xff9   :  { %3767 = vrot.lane.b32.xlu0 %v3258_v37, %s13664_s23 }
 0xffd   :  { %3773 = vrot.lane.b32.xlu0 %v3288_v21, %s13664_s23 }
0x100a   :  { %v3319_v49 = vpop.trf.xlu1 }
0x100b   :  { %12550 = vmatpush3.msra.mxu1 %v3319_v49 }
0x100c   :  { %12552 = vmatmul.mubr.msk.f32.vlgmr.msra.gmra.mrb[26].mxu1 %vm655_vm5, %v3160_v38  ;;  %12554 = vmatprep.subr.mxu1 %v13660_v15 }
0x100d   :  { %12556 = vmatprep.mubr.msk.f32.mxu1 %vm13665_vm4, %v13660_v15 }
0x1044   :  { %v3351_v27 = vpop.trf.xlu0 }
0x1045   :  { %12555 = vmatpush3.msra.mxu1 %v3351_v27 }
0x1046   :  { %12557 = vmatmul.mubr.msk.f32.vlgmr.msra.gmra.mrb[28].mxu1 %vm655_vm5, %v3278_v52  ;;  %12559 = vmatprep.subr.mxu1 %v13660_v15 }
0x1047   :  { %12561 = vmatprep.mubr.msk.f32.mxu1 %vm13665_vm4, %v13660_v15 }
0x104c   :  { %v3415_v26 = vpop.trf.xlu1  ;;  %v3383_v54 = vpop.trf.xlu0 }
0x104d   :  { %12560 = vmatpush3.msra.mxu1 %v3383_v54  ;;  %12565 = vmatpush3.msra.mxu0 %v3415_v26 }
0x104e   :  { %12562 = vmatmul.mubr.msk.f32.vlgmr.msra.gmra.mrb[30].mxu1 %vm655_vm5, %v3280_v48  ;;  %12567 = vmatmul.mubr.msk.f32.vlgmr.msra.gmra.mrb[18].mxu0 %vm655_vm5, %v3282_v53 }
0x104f   :  { %12569 = vmatprep.subr.mxu1 %v13660_v15  ;;  %12571 = vmatprep.mubr.msk.f32.mxu1 %vm13665_vm4, %v13660_v15 }
0x1050   :  { %12574 = vmatprep.subr.mxu0 %v13660_v15  ;;  %12576 = vmatprep.mubr.msk.f32.mxu0 %vm13665_vm4, %v13660_v15 }
0x1060   :  { %v3772_v57 = vpop.permute.xlu1 %3771 }
0x1064   :  { %v3770_v59 = vpop.permute.xlu1 %3769 }
0x106b   :  { %v3768_v58 = vpop.permute.xlu0 %3767 }
0x106c   :  { %3791 = vxpose.xlu0.b32.start [1/2] (short) (narrow) %v3768_v58, 8 }
0x106f   :  { %v3774_v14 = vpop.permute.xlu0 %3773 }
0x1070   :  { %3792 = vxpose.xlu0.b32.end [2/2] (short) (narrow) %v3770_v59, 8 }
0x10df   :  { %v3499_v60 = vpop.f32.mrb[26].mxu1 }
0x10e0   :  { %v3719_v61 = vmul.f32 0.35355338, %v3499_v60  ;;  %v12553_v62 = vpop.f32.mrb[27].mxu1 }
0x10e2   :  { %v3723_v1 = vsel %vm1722_vm7, %v3719_v61, -inf }
0x10e3   :  { %3724 = vmax.xlane.f32.xlu0 %v3723_v1 }
0x10ec   :  { %v3807_v12 = vpop.trf.xlu0 }
0x1119   :  { %v3571_v2 = vpop.f32.mrb[28].mxu1 }
0x111a   :  { %v3720_v3 = vmul.f32 0.35355338, %v3571_v2  ;;  %v12558_v4 = vpop.f32.mrb[29].mxu1 }
0x111c   :  { %v3726_v5 = vsel %vm1722_vm7, %v3720_v3, -inf }
0x111d   :  { %3727 = vmax.xlane.f32.xlu1 %v3726_v5 }
0x1121   :  { %v3643_v6 = vpop.f32.mrb[30].mxu1  ;;  %v3715_v0 = vpop.f32.mrb[18].mxu0 }
0x1122   :  { %v3721_v7 = vmul.f32 0.35355338, %v3643_v6  ;;  %v3722_v40 = vmul.f32 0.35355338, %v3715_v0  ;;  %v12563_v8 = vpop.f32.mrb[31].mxu1  ;;  %v12568_v9 = vpop.f32.mrb[19].mxu0 }
0x1124   :  { %v3732_v51 = vsel %vm1722_vm7, %v3722_v40, -inf  ;;  %v3729_v10 = vsel %vm1722_vm7, %v3721_v7, -inf }
0x1125   :  { %3733 = vmax.xlane.f32.xlu1 %v3732_v51  ;;  %3730 = vmax.xlane.f32.xlu0 %v3729_v10 }
0x1158   :  { %3823 = vxpose.xlu1.b32.start [1/2] (short) (narrow) %v3772_v57, 8 }
0x115c   :  { %3824 = vxpose.xlu1.b32.end [2/2] (short) (narrow) %v3774_v14, 8 }
0x1170   :  { %v3725_v13 = vpop.xlane.xlu0 %3724 }
0x1171   :  { %v3735_v22 = vsub.f32 %v3719_v61, %v3725_v13 }
0x1173   :  { %v3739_v23 = vmul.f32 1.442695, %v3735_v22 }
0x1175   :  { %13214 = vpow2.f32 %v3739_v23 }
0x117a   :  { %3775 = vrot.lane.b32.xlu1 %v14402_v41, %s13664_s23 }
0x117e   :  { %3777 = vrot.lane.b32.xlu1 %v3294_v45, %s13664_s23 }
0x117f   :  { %v13215_v16 = vpop.eup %13214 }
0x1180   :  { %v3747_v28 = vsel %vm1722_vm7, %v13215_v16, 0.0 }
0x1182   :  { %4513 = vrot.lane.b32.xlu1 %v14439_v46, %s13661_s17 }
0x1186   :  { %4523 = vrot.lane.b32.xlu1 %v14444_v11, %s13663_s15 }
0x118a   :  { %4519 = vrot.lane.b32.xlu1 %v14439_v46, %s13662_s1 }
0x118e   :  { %4503 = vrot.lane.b32.xlu1 %v14383_v31, %s13661_s17 }
0x1192   :  { %4507 = vrot.lane.b32.xlu1 %v14383_v31, %s13663_s15 }
0x11aa   :  { %v3728_v32 = vpop.xlane.xlu1 %3727 }
0x11ab   :  { %v3736_v19 = vsub.f32 %v3720_v3, %v3728_v32 }
0x11ad   :  { %v3741_v21 = vmul.f32 1.442695, %v3736_v19 }
0x11b2   :  { %v3731_v24 = vpop.xlane.xlu0 %3730  ;;  %v3734_v33 = vpop.xlane.xlu1 %3733 }
0x11b3   :  { %v3737_v25 = vsub.f32 %v3721_v7, %v3731_v24  ;;  %v3738_v41 = vsub.f32 %v3722_v40, %v3734_v33 }
0x11b5   :  { %v3743_v17 = vmul.f32 1.442695, %v3737_v25 }
0x11b6   :  { %3748 = vadd.xlane.f32.xlu1 %v3747_v28 }
0x11b7   :  { %13216 = vpow2.f32 %v3743_v17 }
0x11b8   :  { %13218 = vpow2.f32 %v3741_v21 }
0x11c1   :  { %v13217_v29 = vpop.eup %13216 }
0x11c2   :  { %v3753_v30 = vsel %vm1722_vm7, %v13217_v29, 0.0  ;;  %v13219_v48 = vpop.eup %13218 }
0x11c3   :  { %3754 = vadd.xlane.f32.xlu1 %v3753_v30  ;;  %v3750_v49 = vsel %vm1722_vm7, %v13219_v48, 0.0 }
0x11d8   :  { %v14456_v34 = vpop.trf.xlu1 }
0x11ec   :  { %v3776_v35 = vpop.permute.xlu1 %3775 }
0x11ed   :  { %3855 = vxpose.xlu0.b32.start [1/2] (short) (narrow) %v3776_v35, 8 }
0x11f0   :  { %v3778_v36 = vpop.permute.xlu1 %3777 }
0x11f1   :  { %3856 = vxpose.xlu0.b32.end [2/2] (short) (narrow) %v3778_v36, 8 }
0x11f4   :  { %v14468_v37 = vpop.permute.xlu1 %4513 }
0x11f6   :  { %4529 = vxpose.xlu1.b32.start [1/2] (short) (narrow) %v14444_v11, 8 }
0x11f8   :  { %v14472_v38 = vpop.permute.xlu1 %4523 }
0x11fa   :  { %4530 = vxpose.xlu1.b32.end [2/2] (short) (narrow) %v14439_v46, 8 }
0x11fc   :  { %v14476_v39 = vpop.permute.xlu1 %4519 }
0x1200   :  { %v14478_v20 = vpop.permute.xlu1 %4503 }
0x1204   :  { %v14480_v45 = vpop.permute.xlu1 %4507 }
0x121a   :  { %3779 = vrot.lane.b32.xlu0 %v14404_v42, %s13664_s23  ;;  %v3745_v42 = vmul.f32 1.442695, %v3738_v41 }
0x121c   :  { %13220 = vpow2.f32 %v3745_v42 }
0x121e   :  { %3781 = vrot.lane.b32.xlu0 %v14408_v47, %s13664_s23 }
0x1222   :  { %4511 = vrot.lane.b32.xlu0 %v14444_v11, %s13661_s17 }
0x1226   :  { %4517 = vrot.lane.b32.xlu0 %v14444_v11, %s13662_s1  ;;  %v13221_v52 = vpop.eup %13220 }
0x1227   :  { %v3756_v26 = vsel %vm1722_vm7, %v13221_v52, 0.0 }
0x122a   :  { %4525 = vrot.lane.b32.xlu0 %v14439_v46, %s13663_s15 }
0x122e   :  { %4505 = vrot.lane.b32.xlu0 %v14383_v31, %s13662_s1 }
0x1243   :  { %v3749_v47 = vpop.xlane.xlu1 %3748 }
0x1244   :  { %13222 = vrcp.f32 %v3749_v47 }
0x124d   :  { %3751 = vadd.xlane.f32.xlu0 %v3750_v49 }
0x124e   :  { %v13223_v53 = vpop.eup %13222 }
0x124f   :  { %v3763_v27 = vmul.f32 %v13223_v53, %v13215_v16 }
0x1250   :  { %v3755_v54 = vpop.xlane.xlu1 %3754 }
0x1251   :  { %3757 = vadd.xlane.f32.xlu0 %v3756_v26  ;;  %12570 = vmatpush3.xpose.msk.msra.mxu1 %vm1722_vm7, %v3763_v27  ;;  %13224 = vrcp.f32 %v3755_v54 }
0x1252   :  { %12579 = vmatprep.subr.mxu1 %v13660_v15 }
0x1254   :  { %12572 = vmatmul.mubr.msk.f32.vlgmr.msra.gmra.mrb[32].mxu1 %vm1722_vm7, %v3807_v12 }
0x1255   :  { %12581 = vmatprep.mubr.msk.f32.mxu1 %vm13665_vm4, %v13660_v15 }
0x125b   :  { %v13225_v55 = vpop.eup %13224 }
0x125c   :  { %v3765_v56 = vmul.f32 %v13225_v55, %v13217_v29 }
0x125e   :  { %12580 = vmatpush3.xpose.msk.msra.mxu1 %vm1722_vm7, %v3765_v56 }
0x125f   :  { %12589 = vmatprep.subr.mxu1 %v13660_v15 }
0x126d   :  { %v3871_v57 = vpop.trf.xlu0 }
0x126e   :  { %12582 = vmatmul.mubr.msk.f32.vlgmr.msra.gmra.mrb[34].mxu1 %vm1722_vm7, %v3871_v57 }
0x126f   :  { %12591 = vmatprep.mubr.msk.f32.mxu1 %vm13665_vm4, %v13660_v15 }
0x1276   :  { %v4545_v58 = vpop.trf.xlu1 }
0x1277   :  { %12590 = vmatpush3.msra.mxu1 %v4545_v58 }
0x1278   :  { %12592 = vmatmul.mubr.msk.f32.vlgmr.msra.gmra.mrb[36].mxu1 %vm655_vm5, %v14383_v31  ;;  %12599 = vmatprep.subr.mxu1 %v13660_v15 }
0x1279   :  { %12601 = vmatprep.mubr.msk.f32.mxu1 %vm13665_vm4, %v13660_v15 }
0x128c   :  { %v3780_v59 = vpop.permute.xlu0 %3779 }
0x128d   :  { %3887 = vxpose.xlu0.b32.start [1/2] (short) (narrow) %v3780_v59, 8 }
0x1290   :  { %v3782_v60 = vpop.permute.xlu0 %3781 }
0x1291   :  { %3888 = vxpose.xlu0.b32.end [2/2] (short) (narrow) %v3782_v60, 8 }
0x1294   :  { %v14499_v61 = vpop.permute.xlu0 %4511 }
0x1295   :  { %4561 = vxpose.xlu0.b32.start [1/2] (short) (narrow) %v14499_v61, 8 }
0x1298   :  { %v14502_v62 = vpop.permute.xlu0 %4517 }
0x1299   :  { %4562 = vxpose.xlu0.b32.end [2/2] (short) (narrow) %v14468_v37, 8  ;;  %4593 = vxpose.xlu1.b32.start [1/2] (short) (narrow) %v14502_v62, 8 }
0x129c   :  { %v14508_v31 = vpop.permute.xlu0 %4525 }
0x129d   :  { %4625 = vxpose.xlu0.b32.start [1/2] (short) (narrow) %v14472_v38, 8  ;;  %4594 = vxpose.xlu1.b32.end [2/2] (short) (narrow) %v14476_v39, 8 }
0x12a0   :  { %v4506_v1 = vpop.permute.xlu0 %4505 }
0x12a1   :  { %4626 = vxpose.xlu0.b32.end [2/2] (short) (narrow) %v14508_v31, 8 }
0x12da   :  { %v3752_v2 = vpop.xlane.xlu0 %3751 }
0x12db   :  { %13226 = vrcp.f32 %v3752_v2 }
0x12de   :  { %v3758_v3 = vpop.xlane.xlu0 %3757 }
0x12df   :  { %13228 = vrcp.f32 %v3758_v3 }
0x12e5   :  { %v13227_v4 = vpop.eup %13226 }
0x12e6   :  { %v3764_v5 = vmul.f32 %v13227_v4, %v13219_v48 }
0x12e8   :  { %12575 = vmatpush3.xpose.msk.msra.mxu0 %vm1722_vm7, %v3764_v5 }
0x12e9   :  { %v13229_v6 = vpop.eup %13228  ;;  %12584 = vmatprep.subr.mxu0 %v13660_v15 }
0x12ea   :  { %v3766_v0 = vmul.f32 %v13229_v6, %v13221_v52 }
0x12eb   :  { %12577 = vmatmul.mubr.msk.f32.vlgmr.msra.gmra.mrb[20].mxu0 %vm1722_vm7, %v14456_v34 }
0x12ec   :  { %12585 = vmatpush3.xpose.msk.msra.mxu0 %vm1722_vm7, %v3766_v0  ;;  %12586 = vmatprep.mubr.msk.f32.mxu0 %vm13665_vm4, %v13660_v15 }
0x12ed   :  { %12594 = vmatprep.subr.mxu0 %v13660_v15 }
0x130d   :  { %v3903_v7 = vpop.trf.xlu0 }
0x130e   :  { %12587 = vmatmul.mubr.msk.f32.vlgmr.msra.gmra.mrb[22].mxu0 %vm1722_vm7, %v3903_v7 }
0x130f   :  { %12596 = vmatprep.mubr.msk.f32.mxu0 %vm13665_vm4, %v13660_v15 }
0x1315   :  { %v4577_v40 = vpop.trf.xlu0 }
0x1316   :  { %12595 = vmatpush3.msra.mxu0 %v4577_v40 }
0x1317   :  { %12597 = vmatmul.mubr.msk.f32.vlgmr.msra.gmra.mrb[24].mxu0 %vm655_vm5, %v14478_v20  ;;  %12604 = vmatprep.subr.mxu0 %v13660_v15 }
0x1318   :  { %12606 = vmatprep.mubr.msk.f32.mxu0 %vm13665_vm4, %v13660_v15 }
0x1319   :  { %v4609_v8 = vpop.trf.xlu1 }
0x131a   :  { %12600 = vmatpush3.msra.mxu1 %v4609_v8 }
0x131b   :  { %12602 = vmatmul.mubr.msk.f32.vlgmr.msra.gmra.mrb[38].mxu1 %vm655_vm5, %v4506_v1  ;;  %12609 = vmatprep.subr.mxu1 %v13660_v15 }
0x131c   :  { %12611 = vmatprep.mubr.msk.f32.mxu1 %vm13665_vm4, %v13660_v15 }
0x131d   :  { %v4641_v9 = vpop.trf.xlu0 }
0x131e   :  { %12605 = vmatpush3.msra.mxu0 %v4641_v9 }
0x131f   :  { %12607 = vmatmul.mubr.msk.f32.vlgmr.msra.gmra.mrb[26].mxu0 %vm655_vm5, %v14480_v45  ;;  %12614 = vmatprep.subr.mxu0 %v13660_v15 }
0x1320   :  { %12616 = vmatprep.mubr.msk.f32.mxu0 %vm13665_vm4, %v13660_v15 }
0x1327   :  { %v14536_v51 = vpop.f32.mrb[32].mxu1 }
0x1328   :  { %v12573_v10 = vpop.f32.mrb[33].mxu1 }
0x1341   :  { %v14538_v14 = vpop.f32.mrb[34].mxu1 }
0x1342   :  { %v12583_v12 = vpop.f32.mrb[35].mxu1 }
0x134b   :  { %v4725_v13 = vpop.f32.mrb[36].mxu1 }
0x134c   :  { %v4945_v22 = vmul.f32 0.35355338, %v4725_v13  ;;  %v12593_v23 = vpop.f32.mrb[37].mxu1 }
0x134e   :  { %v4949_v16 = vsel %vm1722_vm7, %v4945_v22, -inf }
0x134f   :  { %4950 = vmax.xlane.f32.xlu1 %v4949_v16 }
0x13be   :  { %v14541_v24 = vpop.f32.mrb[20].mxu0 }
0x13bf   :  { %v12578_v25 = vpop.f32.mrb[21].mxu0 }
0x13dc   :  { %v4951_v45 = vpop.xlane.xlu1 %4950 }
0x13dd   :  { %v4961_v47 = vsub.f32 %v4945_v22, %v4951_v45 }
0x13e1   :  { %v14543_v17 = vpop.f32.mrb[22].mxu0 }
0x13e2   :  { %v12588_v28 = vpop.f32.mrb[23].mxu0 }
0x13ea   :  { %v4797_v29 = vpop.f32.mrb[24].mxu0 }
0x13eb   :  { %v4946_v30 = vmul.f32 0.35355338, %v4797_v29  ;;  %v12598_v32 = vpop.f32.mrb[25].mxu0 }
0x13ed   :  { %v4952_v33 = vsel %vm1722_vm7, %v4946_v30, -inf }
0x13ee   :  { %v4869_v34 = vpop.f32.mrb[38].mxu1  ;;  %4953 = vmax.xlane.f32.xlu0 %v4952_v33 }
0x13ef   :  { %v4947_v35 = vmul.f32 0.35355338, %v4869_v34  ;;  %v12603_v36 = vpop.f32.mrb[39].mxu1 }
0x13f1   :  { %v4955_v19 = vsel %vm1722_vm7, %v4947_v35, -inf }
0x13f2   :  { %4956 = vmax.xlane.f32.xlu1 %v4955_v19  ;;  %v4941_v20 = vpop.f32.mrb[26].mxu0 }
0x13f3   :  { %v4948_v21 = vmul.f32 0.35355338, %v4941_v20  ;;  %v12608_v41 = vpop.f32.mrb[27].mxu0 }
0x13f5   :  { %v4958_v42 = vsel %vm1722_vm7, %v4948_v21, -inf }
0x13f6   :  { %4959 = vmax.xlane.f32.xlu1 %v4958_v42 }
0x1404   :  { %4997 = vrot.lane.b32.xlu0 %v14499_v61, %s13664_s23 }
0x1407   :  { %4993 = vrot.lane.b32.xlu1 %v14444_v11, %s13664_s23  ;;  %v4965_v11 = vmul.f32 1.442695, %v4961_v47 }
0x1408   :  { %5001 = vrot.lane.b32.xlu0 %v14502_v62, %s13664_s23 }
0x1409   :  { %13230 = vpow2.f32 %v4965_v11 }
0x140b   :  { %4995 = vrot.lane.b32.xlu1 %v14439_v46, %s13664_s23 }
0x140c   :  { %5003 = vrot.lane.b32.xlu0 %v14476_v39, %s13664_s23 }
0x140f   :  { %4999 = vrot.lane.b32.xlu1 %v14468_v37, %s13664_s23 }
0x1413   :  { %5005 = vrot.lane.b32.xlu1 %v14472_v38, %s13664_s23  ;;  %v13231_v48 = vpop.eup %13230 }
0x1414   :  { %v4973_v49 = vsel %vm1722_vm7, %v13231_v48, 0.0 }
0x1417   :  { %5007 = vrot.lane.b32.xlu1 %v14508_v31, %s13664_s23 }
0x142b   :  { %4974 = vadd.xlane.f32.xlu0 %v4973_v49 }
0x147b   :  { %v4954_v46 = vpop.xlane.xlu0 %4953 }
0x147c   :  { %v4962_v52 = vsub.f32 %v4946_v30, %v4954_v46 }
0x147e   :  { %v4967_v39 = vmul.f32 1.442695, %v4962_v52 }
0x147f   :  { %v4957_v53 = vpop.xlane.xlu1 %4956  ;;  %v4998_v61 = vpop.permute.xlu0 %4997 }
0x1480   :  { %13232 = vpow2.f32 %v4967_v39  ;;  %v4963_v37 = vsub.f32 %v4947_v35, %v4957_v53 }
0x1482   :  { %v4969_v27 = vmul.f32 1.442695, %v4963_v37 }
0x1483   :  { %v4960_v26 = vpop.xlane.xlu1 %4959  ;;  %v5002_v62 = vpop.permute.xlu0 %5001 }
0x1484   :  { %13234 = vpow2.f32 %v4969_v27  ;;  %v4964_v38 = vsub.f32 %v4948_v21, %v4960_v26 }
0x1486   :  { %v4971_v54 = vmul.f32 1.442695, %v4964_v38 }
0x1487   :  { %v4994_v31 = vpop.permute.xlu1 %4993  ;;  %v5004_v1 = vpop.permute.xlu0 %5003 }
0x1488   :  { %13236 = vpow2.f32 %v4971_v54 }
0x148a   :  { %v13233_v55 = vpop.eup %13232 }
0x148b   :  { %v4976_v56 = vsel %vm1722_vm7, %v13233_v55, 0.0  ;;  %v4996_v2 = vpop.permute.xlu1 %4995 }
0x148c   :  { %4977 = vadd.xlane.f32.xlu1 %v4976_v56 }
0x148e   :  { %v13235_v57 = vpop.eup %13234 }
0x148f   :  { %v4979_v58 = vsel %vm1722_vm7, %v13235_v57, 0.0  ;;  %v5000_v4 = vpop.permute.xlu1 %4999 }
0x1490   :  { %4980 = vadd.xlane.f32.xlu0 %v4979_v58 }
0x1492   :  { %v13237_v59 = vpop.eup %13236 }
0x1493   :  { %v4982_v60 = vsel %vm1722_vm7, %v13237_v59, 0.0  ;;  %v5006_v6 = vpop.permute.xlu1 %5005 }
0x1494   :  { %4983 = vadd.xlane.f32.xlu0 %v4982_v60 }
0x1497   :  { %v5008_v7 = vpop.permute.xlu1 %5007 }
0x14b8   :  { %v4975_v3 = vpop.xlane.xlu0 %4974 }
0x14b9   :  { %13238 = vrcp.f32 %v4975_v3 }
0x14bf   :  { %5017 = vxpose.xlu1.b32.start [1/2] (short) (narrow) %v4994_v31, 8 }
0x14c1   :  { %5049 = vxpose.xlu0.b32.start [1/2] (short) (narrow) %v4998_v61, 8 }
0x14c3   :  { %v13239_v5 = vpop.eup %13238  ;;  %5018 = vxpose.xlu1.b32.end [2/2] (short) (narrow) %v4996_v2, 8 }
0x14c4   :  { %v4989_v0 = vmul.f32 %v13239_v5, %v13231_v48 }
0x14c5   :  { %5050 = vxpose.xlu0.b32.end [2/2] (short) (narrow) %v5000_v4, 8 }
0x14c6   :  { %12610 = vmatpush3.xpose.msk.msra.mxu1 %vm1722_vm7, %v4989_v0 }
0x14c7   :  { %5113 = vxpose.xlu1.b32.start [1/2] (short) (narrow) %v5006_v6, 8  ;;  %12619 = vmatprep.subr.mxu1 %v13660_v15 }
0x14c9   :  { %5081 = vxpose.xlu0.b32.start [1/2] (short) (narrow) %v5002_v62, 8 }
0x14cb   :  { %5114 = vxpose.xlu1.b32.end [2/2] (short) (narrow) %v5008_v7, 8  ;;  %v5728_v7 = vld [vmem:[%s15416_s16] sm:$0xff] }
0x14cd   :  { %5082 = vxpose.xlu0.b32.end [2/2] (short) (narrow) %v5004_v1, 8 }
0x14cf   :  { %4255 = vxpose.xlu1.b32.start.end [1/1] (short) (narrow) %v14541_v24, 8 }
0x14d1   :  { %4223 = vxpose.xlu0.b32.start.end [1/1] (short) (narrow) %v14536_v51, 8 }
0x14d3   :  { %4319 = vxpose.xlu1.b32.start.end [1/1] (short) (narrow) %v14543_v17, 8 }
0x14d5   :  { %4287 = vxpose.xlu0.b32.start.end [1/1] (short) (narrow) %v14538_v14, 8 }
0x1519   :  { %v4978_v40 = vpop.xlane.xlu1 %4977 }
0x151a   :  { %13240 = vrcp.f32 %v4978_v40  ;;  %v5729_v40 = vld [vmem:[%s15416_s16 + $0x8] sm:$0xff] }
0x151d   :  { %v4981_v10 = vpop.xlane.xlu0 %4980 }
0x151e   :  { %13242 = vrcp.f32 %v4981_v10 }
0x1521   :  { %v4984_v12 = vpop.xlane.xlu0 %4983 }
0x1522   :  { %13244 = vrcp.f32 %v4984_v12 }
0x1524   :  { %v13241_v8 = vpop.eup %13240 }
0x1525   :  { %v4990_v9 = vmul.f32 %v13241_v8, %v13233_v55  ;;  %v13009_v8 = vpack.c.bf16 %v5729_v40, %v5728_v7 }
0x1527   :  { %12615 = vmatpush3.xpose.msk.msra.mxu0 %vm1722_vm7, %v4990_v9 }
0x1528   :  { %12624 = vmatprep.subr.mxu0 %v13660_v15  ;;  %v13243_v13 = vpop.eup %13242 }
0x1529   :  { %v4991_v51 = vmul.f32 %v13243_v13, %v13235_v57 }
0x152c   :  { %v13245_v22 = vpop.eup %13244 }
0x152d   :  { %v4992_v16 = vmul.f32 %v13245_v22, %v13237_v59 }
0x153f   :  { %v5033_v23 = vpop.trf.xlu1 }
0x1540   :  { %12612 = vmatmul.mubr.msk.f32.vlgmr.msra.gmra.mrb[40].mxu1 %vm1722_vm7, %v5033_v23 }
0x1541   :  { %12620 = vmatpush3.xpose.msk.msra.mxu1 %vm1722_vm7, %v4991_v51  ;;  %v5065_v14 = vpop.trf.xlu0  ;;  %12621 = vmatprep.mubr.msk.f32.mxu1 %vm13665_vm4, %v13660_v15 }
0x1542   :  { %12617 = vmatmul.mubr.msk.f32.vlgmr.msra.gmra.mrb[28].mxu0 %vm1722_vm7, %v5065_v14  ;;  %13010 = vmatprep.subr.bf16.mxu1 %v13009_v8 }
0x1543   :  { %12625 = vmatpush3.xpose.msk.msra.mxu0 %vm1722_vm7, %v4992_v16  ;;  %12626 = vmatprep.mubr.msk.f32.mxu0 %vm13665_vm4, %v13660_v15 }
0x1547   :  { %v5129_v24 = vpop.trf.xlu1 }
0x1548   :  { %12627 = vmatmul.mubr.msk.f32.vlgmr.msra.gmra.mrb[30].mxu0 %vm1722_vm7, %v5129_v24 }
0x1549   :  { %v5097_v25 = vpop.trf.xlu0 }
0x154a   :  { %12622 = vmatmul.mubr.msk.f32.vlgmr.msra.gmra.mrb[42].mxu1 %vm1722_vm7, %v5097_v25 }
0x154b   :  { %13012 = vmatpush3.bf16.msra.mxu1 %v13009_v8 }
0x154f   :  { %v4271_v17 = vpop.trf.xlu1 }
0x1551   :  { %v4239_v28 = vpop.trf.xlu0 }
0x1553   :  { %v4335_v29 = vpop.trf.xlu1 }
0x1554   :  { %v4367_v36 = vcombine.low %v4271_v17, %v4335_v29  ;;  %v4368_v19 = vcombine.high %v4271_v17, %v4335_v29 }
0x1555   :  { %v4303_v32 = vpop.trf.xlu0 }
0x1556   :  { %v4351_v20 = vcombine.low %v4239_v28, %v4303_v32  ;;  %v4352_v21 = vcombine.high %v4239_v28, %v4303_v32  ;;  %v4375_v41 = vrot.slane %v4367_v36, %v14263_v50  ;;  %v4382_v42 = vrot.slane %v4368_v19, %v14263_v50  ;;  %v5730_v36 = vld [vmem:[%s15416_s16 + $0x10] sm:$0xff]  ;;  %v5731_v19 = vld [vmem:[%s15416_s16 + $0x18] sm:$0xff] }
0x1558   :  { %v4359_v45 = vrot.slane %v4351_v20, %v14263_v50  ;;  %v4366_v47 = vrot.slane %v4352_v21, %v14263_v50  ;;  %v13013_v20 = vpack.c.bf16 %v5731_v19, %v5730_v36  ;;  %v5869_v36 = vld [vmem:[%s15420_s20 + $0x8] sm:$0xff]  ;;  %v5870_v19 = vld [vmem:[%s15420_s20 + $0x10] sm:$0xff] }
0x155a   :  { %v4383_v52 = vcombine.low %v4359_v45, %v4375_v41  ;;  %v4384_v39 = vcombine.high %v4359_v45, %v4375_v41  ;;  %v4399_v53 = vcombine.low %v4366_v47, %v4382_v42  ;;  %v4400_v37 = vcombine.high %v4366_v47, %v4382_v42  ;;  %13014 = vmatprep.subr.bf16.mxu1 %v13013_v20 }
0x155b   :  { %13016 = vmatpush3.bf16.msra.mxu1 %v13013_v20 }
0x155c   :  { %v4391_v27 = vrot.slane %v4383_v52, %v14270_v63  ;;  %v4398_v26 = vrot.slane %v4384_v39, %v14270_v63  ;;  %v4407_v38 = vrot.slane %v4399_v53, %v14270_v63  ;;  %v4414_v54 = vrot.slane %v4400_v37, %v14270_v63 }
0x155e   :  { %v4419_v55 = vcombine.low %v4391_v27, %v4398_v26  ;;  %v11992_v56 = vcombine.high %v4391_v27, %v4398_v26  ;;  %v4435_v57 = vcombine.low %v4407_v38, %v4414_v54  ;;  %v11993_v58 = vcombine.high %v4407_v38, %v4414_v54 }
0x1560   :  { %v4426_v59 = vrot.slane %v4419_v55, %v14263_v50  ;;  %v4434_v60 = vrot.slane %v11992_v56, %v14263_v50  ;;  %v4442_v61 = vrot.slane %v4435_v57, %v14263_v50  ;;  %v4450_v62 = vrot.slane %v11993_v58, %v14263_v50 }
0x1562   :  { %v4452_v31 = vcombine.high %v4426_v59, %v4434_v60  ;;  %v4468_v1 = vcombine.high %v4442_v61, %v4450_v62  ;;  %v4451_v6 = vcombine.low %v4426_v59, %v4434_v60  ;;  %v4467_v0 = vcombine.low %v4442_v61, %v4450_v62 }
0x1564   :  { %v4466_v2 = vrot.slane %v4452_v31, %v14270_v63  ;;  %v4482_v3 = vrot.slane %v4468_v1, %v14270_v63  ;;  %v4459_v9 = vrot.slane %v4451_v6, %v14270_v63  ;;  %v4475_v10 = vrot.slane %v4467_v0, %v14270_v63 }
0x1566   :  { %v4485_v4 = vcombine.low %v4466_v2, %v4482_v3  ;;  %v4486_v5 = vcombine.high %v4466_v2, %v4482_v3  ;;  %v4484_v12 = vcombine.high %v4459_v9, %v4475_v10  ;;  %v4483_v31 = vcombine.low %v4459_v9, %v4475_v10  ;;  %v12010_v10 = vld [vmem:[#allocation12] ss:$0 sm:$0xff] }
0x1613   :  { %v5217_v30 = vpop.f32.mrb[40].mxu1 }
0x1614   :  { %v12613_v33 = vpop.f32.mrb[41].mxu1  ;;  %5449 = vxpose.xlu0.b32.start.end [1/1] (short) (narrow) %v5217_v30, 8 }
0x1615   :  { %v5293_v34 = vpop.f32.mrb[28].mxu0 }
0x1616   :  { %5481 = vxpose.xlu1.b32.start.end [1/1] (short) (narrow) %v5293_v34, 8  ;;  %v12618_v35 = vpop.f32.mrb[29].mxu0 }
0x161b   :  { %v5445_v11 = vpop.f32.mrb[30].mxu0 }
0x161c   :  { %5545 = vxpose.xlu1.b32.start.end [1/1] (short) (narrow) %v5445_v11, 8  ;;  %v12628_v48 = vpop.f32.mrb[31].mxu0 }
0x161d   :  { %v5369_v49 = vpop.f32.mrb[42].mxu1 }
0x161e   :  { %5513 = vxpose.xlu0.b32.start.end [1/1] (short) (narrow) %v5369_v49, 8  ;;  %v12623_v46 = vpop.f32.mrb[43].mxu1 }
0x163a   :  { %4492 = vrot.lane.b32.xlu1 %v4485_v4, %s13643_s6 }
0x163e   :  { %4496 = vrot.lane.b32.xlu1 %v4486_v5, %s13669_s0 }
0x1647   :  { %4488 = vrot.lane.b32.xlu0 %v4484_v12, %s13652_s3 }
0x1694   :  { %v5465_v22 = vpop.trf.xlu0 }
0x1696   :  { %v5497_v13 = vpop.trf.xlu1 }
0x169c   :  { %v5561_v23 = vpop.trf.xlu1 }
0x169d   :  { %v5593_v51 = vcombine.low %v5497_v13, %v5561_v23  ;;  %v5594_v14 = vcombine.high %v5497_v13, %v5561_v23 }
0x169e   :  { %v5529_v16 = vpop.trf.xlu0 }
0x169f   :  { %v5577_v24 = vcombine.low %v5465_v22, %v5529_v16  ;;  %v5578_v25 = vcombine.high %v5465_v22, %v5529_v16  ;;  %v5601_v17 = vrot.slane %v5593_v51, %v14263_v50  ;;  %v5608_v28 = vrot.slane %v5594_v14, %v14263_v50 }
0x16a1   :  { %v5585_v29 = vrot.slane %v5577_v24, %v14263_v50  ;;  %v5592_v30 = vrot.slane %v5578_v25, %v14263_v50 }
0x16a3   :  { %v5609_v32 = vcombine.low %v5585_v29, %v5601_v17  ;;  %v5610_v33 = vcombine.high %v5585_v29, %v5601_v17  ;;  %v5625_v34 = vcombine.low %v5592_v30, %v5608_v28  ;;  %v5626_v35 = vcombine.high %v5592_v30, %v5608_v28 }
0x16a5   :  { %v5617_v21 = vrot.slane %v5609_v32, %v14270_v63  ;;  %v5624_v41 = vrot.slane %v5610_v33, %v14270_v63  ;;  %v5633_v42 = vrot.slane %v5625_v34, %v14270_v63  ;;  %v5640_v45 = vrot.slane %v5626_v35, %v14270_v63  ;;  %v5868_v35 = vld [vmem:[%s15420_s20] sm:$0xff] }
0x16a6   :  { %v13017_v20 = vpack.c.bf16 %v5869_v36, %v5868_v35 }
0x16a7   :  { %v5645_v47 = vcombine.low %v5617_v21, %v5624_v41  ;;  %v12006_v11 = vcombine.high %v5617_v21, %v5624_v41  ;;  %v5661_v48 = vcombine.low %v5633_v42, %v5640_v45  ;;  %v12007_v49 = vcombine.high %v5633_v42, %v5640_v45  ;;  %v5871_v21 = vld [vmem:[%s15420_s20 + $0x18] sm:$0xff] }
0x16a8   :  { %v13021_v41 = vpack.c.bf16 %v5871_v21, %v5870_v19  ;;  %13018 = vmatprep.subr.bf16.mxu0 %v13017_v20 }
0x16a9   :  { %v5652_v46 = vrot.slane %v5645_v47, %v14263_v50  ;;  %v5660_v52 = vrot.slane %v12006_v11, %v14263_v50  ;;  %v5668_v39 = vrot.slane %v5661_v48, %v14263_v50  ;;  %v5676_v53 = vrot.slane %v12007_v49, %v14263_v50  ;;  %13020 = vmatpush3.bf16.msra.mxu0 %v13017_v20 }
0x16aa   :  { %13022 = vmatprep.subr.bf16.mxu0 %v13021_v41 }
0x16ab   :  { %v5678_v37 = vcombine.high %v5652_v46, %v5660_v52  ;;  %v5694_v27 = vcombine.high %v5668_v39, %v5676_v53  ;;  %v5677_v26 = vcombine.low %v5652_v46, %v5660_v52  ;;  %v5693_v38 = vcombine.low %v5668_v39, %v5676_v53  ;;  %v12011_v52 = vld [vmem:[#allocation13] ss:$0 sm:$0xff]  ;;  %v12012_v53 = vld [vmem:[#allocation15] ss:$0 sm:$0xff] }
0x16ac   :  { %v4493_v62 = vpop.permute.xlu1 %4492 }
0x16ad   :  { %v5692_v54 = vrot.slane %v5678_v37, %v14270_v63  ;;  %v5708_v55 = vrot.slane %v5694_v27, %v14270_v63  ;;  %v5685_v56 = vrot.slane %v5677_v26, %v14270_v63  ;;  %v5701_v57 = vrot.slane %v5693_v38, %v14270_v63  ;;  %13024 = vmatpush3.bf16.msra.mxu0 %v13021_v41 }
0x16af   :  { %v5711_v58 = vcombine.low %v5692_v54, %v5708_v55  ;;  %v5710_v59 = vcombine.high %v5685_v56, %v5701_v57  ;;  %v5709_v60 = vcombine.low %v5685_v56, %v5701_v57  ;;  %v5712_v61 = vcombine.high %v5692_v54, %v5708_v55  ;;  %v5978_v56 = vld [vmem:[%s15472_s30] sm:$0xff]  ;;  %v5979_v57 = vld [vmem:[%s15472_s30 + $0x8] sm:$0xff] }
0x16b0   :  { %v4497_v2 = vpop.permute.xlu1 %4496 }
0x16b1   :  { %5718 = vrot.lane.b32.xlu0 %v5711_v58, %s13643_s6  ;;  %5714 = vrot.lane.b32.xlu1 %v5710_v59, %s13652_s3  ;;  %v13025_v58 = vpack.c.bf16 %v5979_v57, %v5978_v56  ;;  %v5980_v59 = vld [vmem:[%s15472_s30 + $0x10] sm:$0xff] }
0x16b3   :  { %13026 = vmatprep.subr.bf16.mxu1 %v13025_v58 }
0x16b5   :  { %5722 = vrot.lane.b32.xlu1 %v5712_v61, %s13669_s0 }
0x16b9   :  { %v4489_v1 = vpop.permute.xlu0 %4488 }
0x16ba   :  { %v4499_v3 = vsel %vm655_vm5, %v4483_v31, %v4489_v1  ;;  %v5983_v31 = vld [vmem:[%s15472_s30 + $0x28] sm:$0xff] }
0x16bb   :  { %v4500_v4 = vsel %vm1722_vm7, %v4499_v3, %v4493_v62  ;;  %v5982_v62 = vld [vmem:[%s15472_s30 + $0x20] sm:$0xff]  ;;  %v5985_v3 = vld [vmem:[%s15472_s30 + $0x38] sm:$0xff] }
0x16bc   :  { %v4501_v5 = vsel %vm1724_vm8, %v4500_v4, %v4497_v2  ;;  %v13033_v1 = vpack.c.bf16 %v5983_v31, %v5982_v62  ;;  %v5984_v2 = vld [vmem:[%s15472_s30 + $0x30] sm:$0xff]  ;;  %v12021_v62 = vld [vmem:[%s15465_s5 + $0x20] sm:$0xff]  ;;  %v12022_v31 = vld [vmem:[%s15465_s5 + $0x28] sm:$0xff] }
0x16bd   :  { %12637 = vmatprep.mubr.msk.f32.mxu1 %vm372_vm3, %v4501_v5  ;;  %v13037_v4 = vpack.c.bf16 %v5985_v3, %v5984_v2  ;;  %v5986_v5 = vld [vmem:[%s15472_s30 + $0x40] sm:$0xff]  ;;  %v13057_v2 = vpack.c.bf16 %v12022_v31, %v12021_v62  ;;  %v12024_v3 = vld [vmem:[%s15465_s5 + $0x38] sm:$0xff] }
0x16bf   :  { %13058 = vmatprep.subr.bf16.mxu0 %v13057_v2 }
0x1723   :  { %v5715_v6 = vpop.permute.xlu1 %5714  ;;  %v5719_v7 = vpop.permute.xlu0 %5718 }
0x1724   :  { %v5725_v0 = vsel %vm655_vm5, %v5709_v60, %v5715_v6  ;;  %v5981_v60 = vld [vmem:[%s15472_s30 + $0x18] sm:$0xff]  ;;  %v5987_v6 = vld [vmem:[%s15472_s30 + $0x48] sm:$0xff] }
0x1725   :  { %v5726_v40 = vsel %vm1722_vm7, %v5725_v0, %v5719_v7  ;;  %v13029_v61 = vpack.c.bf16 %v5981_v60, %v5980_v59  ;;  %v5988_v0 = vld [vmem:[%s15472_s30 + $0x50] sm:$0xff]  ;;  %v13041_v7 = vpack.c.bf16 %v5987_v6, %v5986_v5 }
0x1727   :  { %v5723_v8 = vpop.permute.xlu1 %5722 }
0x1728   :  { %v5727_v12 = vsel %vm1724_vm8, %v5726_v40, %v5723_v8  ;;  %v5989_v40 = vld [vmem:[%s15472_s30 + $0x58] sm:$0xff] }
0x1729   :  { %12638 = vmatmul.mubr.msk.f32.vlgmr.msra.gmra.mrb[44].mxu1 %vm372_vm3, %v5727_v12  ;;  %v13045_v8 = vpack.c.bf16 %v5989_v40, %v5988_v0  ;;  %v5990_v12 = vld [vmem:[%s15472_s30 + $0x60] sm:$0xff] }
0x172a   :  { %13028 = vmatpush3.bf16.msra.mxu1 %v13025_v58 }
0x172b   :  { %13030 = vmatprep.subr.bf16.mxu1 %v13029_v61 }
0x172e   :  { %13032 = vmatpush3.bf16.msra.mxu1 %v13029_v61 }
0x172f   :  { %13034 = vmatprep.subr.bf16.mxu1 %v13033_v1 }
0x1732   :  { %13036 = vmatpush3.bf16.msra.mxu1 %v13033_v1  ;;  %v12023_v1 = vld [vmem:[%s15465_s5 + $0x30] sm:$0xff] }
0x1733   :  { %13038 = vmatprep.subr.bf16.mxu1 %v13037_v4 }
0x1736   :  { %13040 = vmatpush3.bf16.msra.mxu1 %v13037_v4  ;;  %v13061_v4 = vpack.c.bf16 %v12024_v3, %v12023_v1 }
0x1737   :  { %13042 = vmatprep.subr.bf16.mxu1 %v13041_v7 }
0x173a   :  { %13044 = vmatpush3.bf16.msra.mxu1 %v13041_v7 }
0x173b   :  { %13046 = vmatprep.subr.bf16.mxu1 %v13045_v8 }
0x173e   :  { %13048 = vmatpush3.bf16.msra.mxu1 %v13045_v8 }
0x17fc   :  { %v12639_v9 = vpop.f32.mrb[44].mxu1 }
0x17fd   :  { %v5814_v13 = vadd.f32 %v12639_v9, %v14342_v43  ;;  %v5804_v22 = vpop.f32.mrb[45].mxu1  ;;  %v5991_v9 = vld [vmem:[%s15472_s30 + $0x68] sm:$0xff] }
0x17fe   :  { %v5813_v23 = vadd.f32 %v5804_v22, %v14344_v44  ;;  %v5993_v22 = vld [vmem:[%s15472_s30 + $0x78] sm:$0xff] }
0x17ff   :  { %v14646_v51 = vadd.f32 %v12010_v10, %v5814_v13  ;;  %v5992_v13 = vld [vmem:[%s15472_s30 + $0x70] sm:$0xff] }
0x1800   :  { %v14648_v14 = vadd.f32 %v12010_v10, %v5813_v23  ;;  %v13049_v10 = vpack.c.bf16 %v5991_v9, %v5990_v12  ;;  %v13053_v23 = vpack.c.bf16 %v5993_v22, %v5992_v13  ;;  %v12019_v9 = vld [vmem:[%s15466_s21 + $0x1] ss:$0 sm:$0xff] }
0x1801   :  { %v5829_v16 = vsel %vm372_vm3, %v14646_v51, 0.0 }
0x1802   :  { %5830 = vadd.xlane.f32.xlu1 %v5829_v16  ;;  %v5826_v24 = vsel %vm372_vm3, %v14648_v14, 0.0  ;;  %13050 = vmatprep.subr.bf16.mxu1 %v13049_v10  ;;  %v12013_v16 = vld [vmem:[#allocation16] ss:$0 sm:$0xff] }
0x1803   :  { %5827 = vadd.xlane.f32.xlu0 %v5826_v24  ;;  %13052 = vmatpush3.bf16.msra.mxu1 %v13049_v10 }
0x1804   :  { %13054 = vmatprep.subr.bf16.mxu1 %v13053_v23 }
0x1807   :  { %13056 = vmatpush3.bf16.msra.mxu1 %v13053_v23  ;;  %v12020_v23 = vld [vmem:[%s15467_s29 + $0x1] ss:$0 sm:$0xff] }
0x1808   :  { %12727 = vmatprep.subr.mxu1 %v13660_v15 }
0x188f   :  { %v5831_v25 = vpop.xlane.xlu1 %5830 }
0x1890   :  { %v5833_v17 = vmul.f32 0.03125, %v5831_v25  ;;  %v5828_v28 = vpop.xlane.xlu0 %5827 }
0x1891   :  { %v5832_v29 = vmul.f32 0.03125, %v5828_v28 }
0x1892   :  { %v5835_v43 = vsub.f32 %v14646_v51, %v5833_v17 }
0x1893   :  { %v5834_v44 = vsub.f32 %v14648_v14, %v5832_v29 }
0x1894   :  { %v5837_v33 = vmul.f32 %v5835_v43, %v5835_v43 }
0x1895   :  { %v5836_v30 = vmul.f32 %v5834_v44, %v5834_v44 }
0x1896   :  { %v5841_v34 = vsel %vm372_vm3, %v5837_v33, 0.0 }
0x1897   :  { %v5838_v32 = vsel %vm372_vm3, %v5836_v30, 0.0 }
0x1898   :  { %5839 = vadd.xlane.f32.xlu0 %v5838_v32 }
0x189c   :  { %5842 = vadd.xlane.f32.xlu0 %v5841_v34 }
0x1925   :  { %v5840_v42 = vpop.xlane.xlu0 %5839 }
0x1926   :  { %v5844_v45 = vmul.f32 0.03125, %v5840_v42 }
0x1928   :  { %v5846_v47 = vadd.f32 1e-05, %v5844_v45 }
0x1929   :  { %v5843_v11 = vpop.xlane.xlu0 %5842 }
0x192a   :  { %13246 = vrsqrt.f32 %v5846_v47  ;;  %v5845_v48 = vmul.f32 0.03125, %v5843_v11 }
0x192c   :  { %v5847_v49 = vadd.f32 1e-05, %v5845_v48 }
0x192e   :  { %13248 = vrsqrt.f32 %v5847_v49 }
0x1934   :  { %v13247_v46 = vpop.eup %13246 }
0x1935   :  { %v5850_v39 = vmul.f32 %v13247_v46, %v5834_v44  ;;  %v12016_v46 = vld [vmem:[#allocation18] ss:$0 sm:$0xff] }
0x1937   :  { %v5858_v37 = vmul.f32 %v12011_v52, %v5850_v39 }
0x1938   :  { %v13249_v27 = vpop.eup %13248 }
0x1939   :  { %v5851_v26 = vmul.f32 %v13249_v27, %v5835_v43  ;;  %v5866_v38 = vadd.f32 %v12012_v53, %v5858_v37 }
0x193b   :  { %v5859_v54 = vmul.f32 %v12011_v52, %v5851_v26  ;;  %12648 = vmatprep.mubr.msk.f32.mxu0 %vm372_vm3, %v5866_v38 }
0x193d   :  { %v5867_v55 = vadd.f32 %v12012_v53, %v5859_v54 }
0x193f   :  { %12649 = vmatmul.mubr.msk.f32.vlgmr.msra.gmra.mrb[32].mxu0 %vm372_vm3, %v5867_v55 }
0x1940   :  { %13060 = vmatpush3.bf16.msra.mxu0 %v13057_v2 }
0x1941   :  { %13062 = vmatprep.subr.bf16.mxu0 %v13061_v4 }
0x1944   :  { %13064 = vmatpush3.bf16.msra.mxu0 %v13061_v4 }
0x1945   :  { %12697 = vmatprep.subr.mxu0 %v13660_v15 }
0x1a12   :  { %v12650_v24 = vpop.f32.mrb[32].mxu0 }
0x1a13   :  { %v5957_v25 = vadd.f32 %v12650_v24, %v12013_v16  ;;  %v5951_v17 = vpop.f32.mrb[33].mxu0 }
0x1a14   :  { %v5952_v28 = vadd.f32 %v12013_v16, %v5951_v17 }
0x1a15   :  { %v5961_v29 = vmul.f32 %v5957_v25, %v5957_v25 }
0x1a16   :  { %v5960_v43 = vmul.f32 %v5952_v28, %v5952_v28 }
0x1a17   :  { %v5963_v44 = vmul.f32 %v5961_v29, %v5957_v25 }
0x1a18   :  { %v5962_v30 = vmul.f32 %v5960_v43, %v5952_v28 }
0x1a19   :  { %v5965_v32 = vmul.f32 0.044715, %v5963_v44 }
0x1a1a   :  { %v5964_v33 = vmul.f32 0.044715, %v5962_v30 }
0x1a1b   :  { %v5967_v34 = vadd.f32 %v5965_v32, %v5957_v25 }
0x1a1c   :  { %v5966_v35 = vadd.f32 %v5964_v33, %v5952_v28 }
0x1a1d   :  { %v5969_v36 = vmul.f32 0.7978846, %v5967_v34 }
0x1a1e   :  { %v5968_v19 = vmul.f32 0.7978846, %v5966_v35 }
0x1a1f   :  { %13250 = vtanh.f32 %v5969_v36 }
0x1a20   :  { %13252 = vtanh.f32 %v5968_v19 }
0x1a29   :  { %v13251_v20 = vpop.eup %13250 }
0x1a2a   :  { %v13253_v21 = vpop.eup %13252  ;;  %v5973_v41 = vadd.f32 1.0, %v13251_v20 }
0x1a2b   :  { %v5972_v42 = vadd.f32 1.0, %v13253_v21 }
0x1a2c   :  { %v5975_v45 = vmul.f32 0.5, %v5973_v41 }
0x1a2d   :  { %v5974_v47 = vmul.f32 0.5, %v5972_v42 }
0x1a2e   :  { %v5977_v48 = vmul.f32 %v5975_v45, %v5957_v25 }
0x1a2f   :  { %v5976_v11 = vmul.f32 %v5974_v47, %v5952_v28  ;;  %v12026_v28 = vld [vmem:[%s15468_s26 + $0x1] ss:$0 sm:$0xff] }
0x1a31   :  { %12683 = vmatprep.mubr.f32.mxu1 %v5976_v11 }
0x1a32   :  { %12684 = vmatmul.mubr.f32.vlgmr.msra.gmra.mrb[46].mxu1 %v5977_v48 }
0x1a33   :  { %12729 = vmatprep.mubr.msk.f32.mxu1 %vm13665_vm4, %v13660_v15 }
0x1b05   :  { %v12685_v49 = vpop.f32.mrb[46].mxu1 }
0x1b06   :  { %v6070_v52 = vadd.f32 %v12685_v49, %v14646_v51  ;;  %v6060_v39 = vpop.f32.mrb[47].mxu1 }
0x1b07   :  { %v6069_v53 = vadd.f32 %v6060_v39, %v14648_v14 }
0x1b08   :  { %v14725_v37 = vadd.f32 %v12016_v46, %v6070_v52 }
0x1b09   :  { %v14727_v27 = vadd.f32 %v12016_v46, %v6069_v53 }
0x1b0a   :  { %v6087_v26 = vsel %vm372_vm3, %v14725_v37, 0.0 }
0x1b0b   :  { %6088 = vadd.xlane.f32.xlu0 %v6087_v26  ;;  %v6084_v38 = vsel %vm372_vm3, %v14727_v27, 0.0 }
0x1b0c   :  { %6085 = vadd.xlane.f32.xlu1 %v6084_v38 }
0x1b98   :  { %v6089_v54 = vpop.xlane.xlu0 %6088 }
0x1b99   :  { %v6091_v55 = vmul.f32 0.03125, %v6089_v54  ;;  %v6086_v56 = vpop.xlane.xlu1 %6085 }
0x1b9a   :  { %v6090_v57 = vmul.f32 0.03125, %v6086_v56 }
0x1b9b   :  { %v6093_v51 = vsub.f32 %v14725_v37, %v6091_v55 }
0x1b9c   :  { %v6092_v14 = vsub.f32 %v14727_v27, %v6090_v57 }
0x1b9d   :  { %v6095_v58 = vmul.f32 %v6093_v51, %v6093_v51 }
0x1b9e   :  { %v6094_v59 = vmul.f32 %v6092_v14, %v6092_v14 }
0x1b9f   :  { %v6099_v60 = vsel %vm372_vm3, %v6095_v58, 0.0 }
0x1ba0   :  { %6100 = vadd.xlane.f32.xlu0 %v6099_v60  ;;  %v6096_v61 = vsel %vm372_vm3, %v6094_v59, 0.0 }
0x1ba1   :  { %6097 = vadd.xlane.f32.xlu1 %v6096_v61 }
0x1c2d   :  { %v6101_v5 = vpop.xlane.xlu0 %6100 }
0x1c2e   :  { %v6103_v6 = vmul.f32 0.03125, %v6101_v5  ;;  %v6098_v0 = vpop.xlane.xlu1 %6097 }
0x1c2f   :  { %v6102_v7 = vmul.f32 0.03125, %v6098_v0 }
0x1c30   :  { %v6105_v40 = vadd.f32 1e-05, %v6103_v6 }
0x1c31   :  { %v6104_v8 = vadd.f32 1e-05, %v6102_v7 }
0x1c32   :  { %13254 = vrsqrt.f32 %v6105_v40 }
0x1c33   :  { %13256 = vrsqrt.f32 %v6104_v8 }
0x1c3c   :  { %v13255_v12 = vpop.eup %13254 }
0x1c3d   :  { %v13257_v10 = vpop.eup %13256  ;;  %v6109_v13 = vmul.f32 %v13255_v12, %v6093_v51 }
0x1c3e   :  { %v6108_v22 = vmul.f32 %v13257_v10, %v6092_v14 }
0x1c3f   :  { %v6117_v16 = vmul.f32 %v12019_v9, %v6109_v13 }
0x1c40   :  { %v6116_v24 = vmul.f32 %v12019_v9, %v6108_v22 }
0x1c41   :  { %v6125_v17 = vadd.f32 %v12020_v23, %v6117_v16 }
0x1c42   :  { %v6124_v25 = vadd.f32 %v12020_v23, %v6116_v24 }
0x1c44   :  { %12694 = vmatprep.mubr.msk.f32.mxu0 %vm372_vm3, %v6124_v25 }
0x1c45   :  { %12695 = vmatmul.mubr.msk.f32.vlgmr.msra.gmra.mrb[34].mxu0 %vm372_vm3, %v6125_v17 }
0x1c46   :  { %12699 = vmatprep.mubr.msk.f32.mxu0 %vm13665_vm4, %v13660_v15 }
0x1d18   :  { %v12696_v29 = vpop.f32.mrb[34].mxu0 }
0x1d19   :  { %v14763_v43 = vadd.f32 %v12696_v29, %v12026_v28  ;;  %v6211_v44 = vpop.f32.mrb[35].mxu0 }
0x1d1a   :  { %v14765_v30 = vadd.f32 %v12026_v28, %v6211_v44 }
0x1d1c   :  { %6223 = vrot.lane.b32.xlu0 %v14765_v30, %s13662_s1  ;;  %6221 = vrot.lane.b32.xlu1 %v14765_v30, %s13661_s17 }
0x1d20   :  { %6225 = vrot.lane.b32.xlu1 %v14765_v30, %s13663_s15 }
0x1d24   :  { %6227 = vrot.lane.b32.xlu1 %v14765_v30, %s13664_s23 }
0x1d8e   :  { %v6224_v32 = vpop.permute.xlu0 %6223  ;;  %v6222_v33 = vpop.permute.xlu1 %6221 }
0x1d8f   :  { %6231 = vrot.lane.b32.xlu1 %v6224_v32, %s13664_s23  ;;  %6229 = vrot.lane.b32.xlu0 %v6222_v33, %s13664_s23 }
0x1d92   :  { %v6226_v34 = vpop.permute.xlu1 %6225 }
0x1d93   :  { %6233 = vrot.lane.b32.xlu0 %v6226_v34, %s13664_s23 }
0x1d96   :  { %v6228_v35 = vpop.permute.xlu1 %6227 }
0x1db8   :  { %6239 = vxpose.xlu1.b32.start.end [1/1] (short) (narrow) %v6228_v35, 8 }
0x1dd6   :  { %7433 = vrot.lane.b32.xlu1 %v14763_v43, %s13662_s1 }
0x1e01   :  { %v6230_v36 = vpop.permute.xlu0 %6229  ;;  %v6232_v19 = vpop.permute.xlu1 %6231 }
0x1e02   :  { %6271 = vxpose.xlu0.b32.start.end [1/1] (short) (narrow) %v6230_v36, 8 }
0x1e05   :  { %v6234_v20 = vpop.permute.xlu0 %6233 }
0x1e06   :  { %6303 = vxpose.xlu0.b32.start.end [1/1] (short) (narrow) %v6232_v19, 8 }
0x1e0a   :  { %6335 = vxpose.xlu0.b32.start.end [1/1] (short) (narrow) %v6234_v20, 8 }
0x1e33   :  { %7431 = vrot.lane.b32.xlu0 %v14763_v43, %s13661_s17 }
0x1e38   :  { %v6255_v21 = vpop.trf.xlu1 }
0x1e39   :  { %12698 = vmatpush3.msra.mxu0 %v6255_v21 }
0x1e3a   :  { %12700 = vmatmul.mubr.msk.f32.vlgmr.msra.gmra.mrb[36].mxu0 %vm655_vm5, %v14765_v30  ;;  %12702 = vmatprep.subr.mxu0 %v13660_v15 }
0x1e3b   :  { %12704 = vmatprep.mubr.msk.f32.mxu0 %vm13665_vm4, %v13660_v15 }
0x1e48   :  { %v14822_v31 = vpop.permute.xlu1 %7433 }
0x1e82   :  { %v6287_v41 = vpop.trf.xlu0 }
0x1e83   :  { %12703 = vmatpush3.msra.mxu0 %v6287_v41 }
0x1e84   :  { %12705 = vmatmul.mubr.msk.f32.vlgmr.msra.gmra.mrb[38].mxu0 %vm655_vm5, %v6222_v33  ;;  %12707 = vmatprep.subr.mxu0 %v13660_v15 }
0x1e85   :  { %12709 = vmatprep.mubr.msk.f32.mxu0 %vm13665_vm4, %v13660_v15 }
0x1e86   :  { %v6319_v42 = vpop.trf.xlu0 }
0x1e87   :  { %12708 = vmatpush3.msra.mxu0 %v6319_v42 }
0x1e88   :  { %12710 = vmatmul.mubr.msk.f32.vlgmr.msra.gmra.mrb[40].mxu0 %vm655_vm5, %v6224_v32  ;;  %12712 = vmatprep.subr.mxu0 %v13660_v15 }
0x1e89   :  { %12714 = vmatprep.mubr.msk.f32.mxu0 %vm13665_vm4, %v13660_v15 }
0x1e8a   :  { %v6351_v45 = vpop.trf.xlu0 }
0x1e8b   :  { %12713 = vmatpush3.msra.mxu0 %v6351_v45 }
0x1e8c   :  { %12715 = vmatmul.mubr.msk.f32.vlgmr.msra.gmra.mrb[42].mxu0 %vm655_vm5, %v6226_v34  ;;  %12717 = vmatprep.subr.mxu0 %v13660_v15 }
0x1e8d   :  { %12719 = vmatprep.mubr.msk.f32.mxu0 %vm13665_vm4, %v13660_v15 }
0x1ea5   :  { %v14818_v62 = vpop.permute.xlu0 %7431 }
0x1f0d   :  { %v6435_v47 = vpop.f32.mrb[36].mxu0 }
0x1f0e   :  { %v6655_v11 = vmul.f32 0.35355338, %v6435_v47  ;;  %v12701_v48 = vpop.f32.mrb[37].mxu0 }
0x1f10   :  { %v6659_v49 = vsel %vm14130_vm6, %v6655_v11, -1e+30 }
0x1f11   :  { %v6663_v46 = vsel %vm655_vm5, %v6659_v49, -inf }
0x1f12   :  { %6664 = vmax.xlane.f32.xlu1 %v6663_v46 }
0x1f57   :  { %v6507_v52 = vpop.f32.mrb[38].mxu0 }
0x1f58   :  { %v6656_v39 = vmul.f32 0.35355338, %v6507_v52  ;;  %v12706_v53 = vpop.f32.mrb[39].mxu0 }
0x1f5a   :  { %v6660_v26 = vsel %vm14130_vm6, %v6656_v39, -1e+30 }
0x1f5b   :  { %v6579_v38 = vpop.f32.mrb[40].mxu0  ;;  %v6666_v54 = vsel %vm655_vm5, %v6660_v26, -inf }
0x1f5c   :  { %v6657_v55 = vmul.f32 0.35355338, %v6579_v38  ;;  %6667 = vmax.xlane.f32.xlu0 %v6666_v54  ;;  %v12711_v56 = vpop.f32.mrb[41].mxu0 }
0x1f5e   :  { %v6661_v57 = vsel %vm14130_vm6, %v6657_v55, -1e+30 }
0x1f5f   :  { %v6651_v51 = vpop.f32.mrb[42].mxu0  ;;  %v6669_v14 = vsel %vm655_vm5, %v6661_v57, -inf }
0x1f60   :  { %v6658_v58 = vmul.f32 0.35355338, %v6651_v51  ;;  %6670 = vmax.xlane.f32.xlu1 %v6669_v14  ;;  %v12716_v59 = vpop.f32.mrb[43].mxu0 }
0x1f62   :  { %v6662_v60 = vsel %vm14130_vm6, %v6658_v58, -1e+30 }
0x1f63   :  { %v6672_v61 = vsel %vm655_vm5, %v6662_v60, -inf }
0x1f64   :  { %6673 = vmax.xlane.f32.xlu1 %v6672_v61 }
0x1f72   :  { %6707 = vrot.lane.b32.xlu0 %v14765_v30, %s13666_s11 }
0x1f75   :  { %7435 = vrot.lane.b32.xlu1 %v14763_v43, %s13663_s15 }
0x1f79   :  { %6709 = vrot.lane.b32.xlu1 %v6222_v33, %s13666_s11 }
0x1f7d   :  { %6711 = vrot.lane.b32.xlu1 %v6224_v32, %s13666_s11 }
0x1f81   :  { %6713 = vrot.lane.b32.xlu1 %v6226_v34, %s13666_s11 }
0x1f85   :  { %7439 = vrot.lane.b32.xlu1 %v14818_v62, %s13664_s23 }
0x1f9f   :  { %v6665_v1 = vpop.xlane.xlu1 %6664 }
0x1fa0   :  { %v6675_v22 = vsub.f32 %v6659_v49, %v6665_v1 }
0x1fa2   :  { %v6679_v23 = vmul.f32 1.442695, %v6675_v22 }
0x1fe9   :  { %v6668_v2 = vpop.xlane.xlu0 %6667 }
0x1fea   :  { %v6676_v0 = vsub.f32 %v6660_v26, %v6668_v2 }
0x1fec   :  { %v6681_v7 = vmul.f32 1.442695, %v6676_v0 }
0x1fed   :  { %v6708_v3 = vpop.permute.xlu0 %6707  ;;  %v6671_v4 = vpop.xlane.xlu1 %6670 }
0x1fee   :  { %6719 = vxpose.xlu0.b32.start.end [1/1] (short) (narrow) %v6708_v3, 8  ;;  %13258 = vpow2.f32 %v6681_v7  ;;  %v6677_v17 = vsub.f32 %v6661_v57, %v6671_v4 }
0x1ff0   :  { %v6683_v29 = vmul.f32 1.442695, %v6677_v17 }
0x1ff1   :  { %v6674_v5 = vpop.xlane.xlu1 %6673 }
0x1ff2   :  { %v6678_v40 = vsub.f32 %v6662_v60, %v6674_v5 }
0x1ff4   :  { %v6685_v8 = vmul.f32 1.442695, %v6678_v40 }
0x1ff5   :  { %v14824_v6 = vpop.permute.xlu1 %7435 }
0x1ff6   :  { %7443 = vrot.lane.b32.xlu1 %v14824_v6, %s13664_s23  ;;  %13260 = vpow2.f32 %v6685_v8 }
0x1ff7   :  { %13262 = vpow2.f32 %v6679_v23 }
0x1ff8   :  { %v13259_v12 = vpop.eup %13258  ;;  %13264 = vpow2.f32 %v6683_v29 }
0x1ff9   :  { %v6690_v9 = vsel %vm655_vm5, %v13259_v12, 0.0  ;;  %v6710_v25 = vpop.permute.xlu1 %6709 }
0x1ffd   :  { %v6712_v28 = vpop.permute.xlu1 %6711 }
0x2000   :  { %v13261_v10 = vpop.eup %13260 }
0x2001   :  { %v6696_v13 = vsel %vm655_vm5, %v13261_v10, 0.0  ;;  %v13263_v16 = vpop.eup %13262  ;;  %v6714_v44 = vpop.permute.xlu1 %6713 }
0x2002   :  { %v6687_v24 = vsel %vm655_vm5, %v13263_v16, 0.0  ;;  %v13265_v32 = vpop.eup %13264 }
0x2003   :  { %v6693_v34 = vsel %vm655_vm5, %v13265_v32, 0.0 }
0x2005   :  { %v7440_v30 = vpop.permute.xlu1 %7439 }
0x2017   :  { %7437 = vrot.lane.b32.xlu0 %v14763_v43, %s13664_s23 }
0x201a   :  { %6691 = vadd.xlane.f32.xlu1 %v6690_v9 }
0x201e   :  { %6697 = vadd.xlane.f32.xlu1 %v6696_v13 }
0x2036   :  { %6688 = vadd.xlane.f32.xlu0 %v6687_v24 }
0x204c   :  { %7441 = vrot.lane.b32.xlu0 %v14822_v31, %s13664_s23 }
0x2051   :  { %6751 = vxpose.xlu1.b32.start.end [1/1] (short) (narrow) %v6710_v25, 8 }
0x2068   :  { %v7444_v33 = vpop.permute.xlu1 %7443 }
0x2069   :  { %7545 = vxpose.xlu1.b32.start.end [1/1] (short) (narrow) %v7444_v33, 8 }
0x206b   :  { %6694 = vadd.xlane.f32.xlu0 %v6693_v34 }
0x206e   :  { %v6735_v35 = vpop.trf.xlu0 }
0x2089   :  { %v7438_v36 = vpop.permute.xlu0 %7437 }
0x2098   :  { %6783 = vxpose.xlu0.b32.start.end [1/1] (short) (narrow) %v6712_v28, 8 }
0x209c   :  { %6815 = vxpose.xlu0.b32.start.end [1/1] (short) (narrow) %v6714_v44, 8 }
0x20a0   :  { %7449 = vxpose.xlu0.b32.start.end [1/1] (short) (narrow) %v7438_v36, 8 }
0x20a4   :  { %7481 = vxpose.xlu0.b32.start.end [1/1] (short) (narrow) %v7440_v30, 8 }
0x20a7   :  { %v6692_v19 = vpop.xlane.xlu1 %6691 }
0x20ab   :  { %v6698_v21 = vpop.xlane.xlu1 %6697 }
0x20c3   :  { %v6689_v20 = vpop.xlane.xlu0 %6688 }
0x20c4   :  { %13266 = vrcp.f32 %v6689_v20 }
0x20c5   :  { %13268 = vrcp.f32 %v6692_v19 }
0x20c6   :  { %13270 = vrcp.f32 %v6698_v21 }
0x20c7   :  { %v7442_v41 = vpop.permute.xlu0 %7441 }
0x20c8   :  { %7513 = vxpose.xlu0.b32.start.end [1/1] (short) (narrow) %v7442_v41, 8 }
0x20ce   :  { %v13267_v42 = vpop.eup %13266 }
0x20cf   :  { %v6703_v45 = vmul.f32 %v13267_v42, %v13263_v16  ;;  %v13269_v47 = vpop.eup %13268 }
0x20d0   :  { %v6704_v11 = vmul.f32 %v13269_v47, %v13259_v12  ;;  %v13271_v48 = vpop.eup %13270 }
0x20d1   :  { %12718 = vmatpush3.xpose.msk.msra.mxu0 %vm655_vm5, %v6703_v45  ;;  %v6767_v49 = vpop.trf.xlu1  ;;  %v6706_v46 = vmul.f32 %v13271_v48, %v13261_v10 }
0x20d2   :  { %12722 = vmatprep.subr.mxu0 %v13660_v15 }
0x20d4   :  { %12720 = vmatmul.mubr.msk.f32.vlgmr.msra.gmra.mrb[44].mxu0 %vm655_vm5, %v6735_v35 }
0x20d5   :  { %12723 = vmatpush3.xpose.msk.msra.mxu0 %vm655_vm5, %v6704_v11  ;;  %12724 = vmatprep.mubr.msk.f32.mxu0 %vm13665_vm4, %v13660_v15 }
0x20d6   :  { %12732 = vmatprep.subr.mxu0 %v13660_v15 }
0x20d8   :  { %12725 = vmatmul.mubr.msk.f32.vlgmr.msra.gmra.mrb[46].mxu0 %vm655_vm5, %v6767_v49 }
0x20d9   :  { %12733 = vmatpush3.xpose.msk.msra.mxu0 %vm655_vm5, %v6706_v46  ;;  %12734 = vmatprep.mubr.msk.f32.mxu0 %vm13665_vm4, %v13660_v15 }
0x20da   :  { %12742 = vmatprep.subr.mxu0 %v13660_v15 }
0x20e9   :  { %v7561_v56 = vpop.trf.xlu1 }
0x20f8   :  { %v6695_v52 = vpop.xlane.xlu0 %6694 }
0x20f9   :  { %13272 = vrcp.f32 %v6695_v52 }
0x2103   :  { %v13273_v39 = vpop.eup %13272 }
0x2104   :  { %v6705_v53 = vmul.f32 %v13273_v39, %v13265_v32 }
0x2106   :  { %12728 = vmatpush3.xpose.msk.msra.mxu1 %vm655_vm5, %v6705_v53 }
0x2107   :  { %12737 = vmatprep.subr.mxu1 %v13660_v15 }
0x2118   :  { %v6799_v26 = vpop.trf.xlu0 }
0x2119   :  { %12730 = vmatmul.mubr.msk.f32.vlgmr.msra.gmra.mrb[48].mxu1 %vm655_vm5, %v6799_v26 }
0x211a   :  { %12739 = vmatprep.mubr.msk.f32.mxu1 %vm13665_vm4, %v13660_v15 }
0x211c   :  { %v6831_v38 = vpop.trf.xlu0 }
0x211d   :  { %12735 = vmatmul.mubr.msk.f32.vlgmr.msra.gmra.mrb[48].mxu0 %vm655_vm5, %v6831_v38 }
0x211e   :  { %12744 = vmatprep.mubr.msk.f32.mxu0 %vm13665_vm4, %v13660_v15 }
0x2120   :  { %v7465_v54 = vpop.trf.xlu0 }
0x2121   :  { %12738 = vmatpush3.msra.mxu1 %v7465_v54 }
0x2122   :  { %12740 = vmatmul.mubr.msk.f32.vlgmr.msra.gmra.mrb[50].mxu1 %vm655_vm5, %v14763_v43  ;;  %12747 = vmatprep.subr.mxu1 %v13660_v15 }
0x2123   :  { %12749 = vmatprep.mubr.msk.f32.mxu1 %vm13665_vm4, %v13660_v15 }
0x2124   :  { %v7497_v55 = vpop.trf.xlu0 }
0x2125   :  { %12743 = vmatpush3.msra.mxu0 %v7497_v55 }
0x2126   :  { %12745 = vmatmul.mubr.msk.f32.vlgmr.msra.gmra.mrb[50].mxu0 %vm655_vm5, %v14818_v62  ;;  %12752 = vmatprep.subr.mxu0 %v13660_v15 }
0x2127   :  { %12753 = vmatpush3.msra.mxu0 %v7561_v56  ;;  %12754 = vmatprep.mubr.msk.f32.mxu0 %vm13665_vm4, %v13660_v15 }
0x2128   :  { %12762 = vmatprep.subr.mxu0 %v13660_v15 }
0x212a   :  { %12755 = vmatmul.mubr.msk.f32.vlgmr.msra.gmra.mrb[52].mxu0 %vm655_vm5, %v14824_v6 }
0x212b   :  { %12764 = vmatprep.mubr.msk.f32.mxu0 %vm13665_vm4, %v13660_v15 }
0x2148   :  { %v7529_v57 = vpop.trf.xlu0 }
0x2149   :  { %12748 = vmatpush3.msra.mxu1 %v7529_v57 }
0x214a   :  { %12750 = vmatmul.mubr.msk.f32.vlgmr.msra.gmra.mrb[52].mxu1 %vm655_vm5, %v14822_v31  ;;  %12757 = vmatprep.subr.mxu1 %v13660_v15 }
0x214b   :  { %12759 = vmatprep.mubr.msk.f32.mxu1 %vm13665_vm4, %v13660_v15 }
0x21a7   :  { %v14876_v51 = vpop.f32.mrb[44].mxu0 }
0x21a8   :  { %v12721_v14 = vpop.f32.mrb[45].mxu0 }
0x21ab   :  { %v14878_v58 = vpop.f32.mrb[46].mxu0 }
0x21ac   :  { %v12726_v59 = vpop.f32.mrb[47].mxu0 }
0x21ec   :  { %v14880_v60 = vpop.f32.mrb[48].mxu1 }
0x21ed   :  { %v12731_v61 = vpop.f32.mrb[49].mxu1 }
0x21f0   :  { %v14882_v1 = vpop.f32.mrb[48].mxu0 }
0x21f1   :  { %v12736_v2 = vpop.f32.mrb[49].mxu0 }
0x21f5   :  { %v7645_v3 = vpop.f32.mrb[50].mxu1 }
0x21f6   :  { %v7865_v4 = vmul.f32 0.35355338, %v7645_v3  ;;  %v12741_v5 = vpop.f32.mrb[51].mxu1 }
0x21f8   :  { %v7869_v0 = vsel %vm14130_vm6, %v7865_v4, -1e+30 }
0x21f9   :  { %v7717_v7 = vpop.f32.mrb[50].mxu0  ;;  %v7873_v40 = vsel %vm655_vm5, %v7869_v0, -inf }
0x21fa   :  { %v7866_v8 = vmul.f32 0.35355338, %v7717_v7  ;;  %7874 = vmax.xlane.f32.xlu0 %v7873_v40  ;;  %v12746_v12 = vpop.f32.mrb[51].mxu0 }
0x21fc   :  { %v7870_v9 = vsel %vm14130_vm6, %v7866_v8, -1e+30 }
0x21fd   :  { %v7861_v10 = vpop.f32.mrb[52].mxu0  ;;  %v7876_v13 = vsel %vm655_vm5, %v7870_v9, -inf }
0x21fe   :  { %v7868_v22 = vmul.f32 0.35355338, %v7861_v10  ;;  %7877 = vmax.xlane.f32.xlu1 %v7876_v13  ;;  %v12756_v23 = vpop.f32.mrb[53].mxu0 }
0x2200   :  { %v7872_v16 = vsel %vm14130_vm6, %v7868_v22, -1e+30 }
0x2201   :  { %v7882_v24 = vsel %vm655_vm5, %v7872_v16, -inf }
0x2202   :  { %7883 = vmax.xlane.f32.xlu0 %v7882_v24 }
0x2218   :  { %7919 = vrot.lane.b32.xlu0 %v14818_v62, %s13666_s11 }
0x221d   :  { %v7789_v25 = vpop.f32.mrb[52].mxu1 }
0x221e   :  { %v7867_v17 = vmul.f32 0.35355338, %v7789_v25  ;;  %v12751_v28 = vpop.f32.mrb[53].mxu1 }
0x2220   :  { %v7871_v29 = vsel %vm14130_vm6, %v7867_v17, -1e+30 }
0x2221   :  { %v7879_v44 = vsel %vm655_vm5, %v7871_v29, -inf }
0x2222   :  { %7880 = vmax.xlane.f32.xlu1 %v7879_v44 }
0x2233   :  { %7917 = vrot.lane.b32.xlu1 %v14763_v43, %s13666_s11 }
0x2237   :  { %7921 = vrot.lane.b32.xlu1 %v14822_v31, %s13666_s11 }
0x223b   :  { %7923 = vrot.lane.b32.xlu1 %v14824_v6, %s13666_s11  ;;  %s15474_s11 = sld [smem:[#allocation43_spill]] }
0x2287   :  { %v7875_v30 = vpop.xlane.xlu0 %7874 }
0x2288   :  { %v7885_v62 = vsub.f32 %v7869_v0, %v7875_v30 }
0x228a   :  { %v7889_v32 = vmul.f32 1.442695, %v7885_v62 }
0x228b   :  { %v7878_v33 = vpop.xlane.xlu1 %7877 }
0x228c   :  { %13274 = vpow2.f32 %v7889_v32  ;;  %v7886_v34 = vsub.f32 %v7870_v9, %v7878_v33 }
0x228e   :  { %v7891_v18 = vmul.f32 1.442695, %v7886_v34 }
0x228f   :  { %v7884_v31 = vpop.xlane.xlu0 %7883 }
0x2290   :  { %13276 = vpow2.f32 %v7891_v18  ;;  %v7888_v20 = vsub.f32 %v7872_v16, %v7884_v31 }
0x2292   :  { %v7895_v41 = vmul.f32 1.442695, %v7888_v20 }
0x2293   :  { %v7920_v39 = vpop.permute.xlu0 %7919 }
0x2296   :  { %v13275_v35 = vpop.eup %13274 }
0x2297   :  { %v7897_v36 = vsel %vm655_vm5, %v13275_v35, 0.0 }
0x2298   :  { %7898 = vadd.xlane.f32.xlu0 %v7897_v36 }
0x229a   :  { %v13277_v19 = vpop.eup %13276 }
0x229b   :  { %v7900_v43 = vsel %vm655_vm5, %v13277_v19, 0.0 }
0x229c   :  { %7901 = vadd.xlane.f32.xlu1 %v7900_v43 }
0x22af   :  { %v7881_v21 = vpop.xlane.xlu1 %7880 }
0x22b0   :  { %v7887_v6 = vsub.f32 %v7871_v29, %v7881_v21 }
0x22b2   :  { %v7893_v42 = vmul.f32 1.442695, %v7887_v6 }
0x22b3   :  { %v7918_v49 = vpop.permute.xlu1 %7917 }
0x22b4   :  { %13278 = vpow2.f32 %v7893_v42 }
0x22b5   :  { %13280 = vpow2.f32 %v7895_v41 }
0x22b7   :  { %v7922_v46 = vpop.permute.xlu1 %7921 }
0x22bb   :  { %v7924_v52 = vpop.permute.xlu1 %7923 }
0x22be   :  { %v13279_v45 = vpop.eup %13278 }
0x22bf   :  { %v7903_v47 = vsel %vm655_vm5, %v13279_v45, 0.0  ;;  %v13281_v11 = vpop.eup %13280 }
0x22c0   :  { %7904 = vadd.xlane.f32.xlu0 %v7903_v47  ;;  %v7906_v48 = vsel %vm655_vm5, %v13281_v11, 0.0 }
0x22c4   :  { %7907 = vadd.xlane.f32.xlu0 %v7906_v48 }
0x22cf   :  { %7929 = vxpose.xlu1.b32.start.end [1/1] (short) (narrow) %v7918_v49, 8 }
0x22d3   :  { %8025 = vxpose.xlu1.b32.start.end [1/1] (short) (narrow) %v7924_v52, 8 }
0x22d7   :  { %7183 = vxpose.xlu1.b32.start.end [1/1] (short) (narrow) %v14878_v58, 8 }
0x22db   :  { %7247 = vxpose.xlu1.b32.start.end [1/1] (short) (narrow) %v14882_v1, 8 }
0x22f1   :  { %7961 = vxpose.xlu0.b32.start.end [1/1] (short) (narrow) %v7920_v39, 8 }
0x22f5   :  { %7993 = vxpose.xlu0.b32.start.end [1/1] (short) (narrow) %v7922_v46, 8 }
0x22f9   :  { %7151 = vxpose.xlu0.b32.start.end [1/1] (short) (narrow) %v14876_v51, 8 }
0x22fd   :  { %7215 = vxpose.xlu0.b32.start.end [1/1] (short) (narrow) %v14880_v60, 8 }
0x2325   :  { %v7899_v53 = vpop.xlane.xlu0 %7898 }
0x2326   :  { %13282 = vrcp.f32 %v7899_v53 }
0x2329   :  { %v7902_v26 = vpop.xlane.xlu1 %7901 }
0x232a   :  { %13284 = vrcp.f32 %v7902_v26  ;;  %v12057_v26 = vld [vmem:[%s15471_s28 + $0x20] sm:$0xff] }
0x2330   :  { %v13283_v38 = vpop.eup %13282 }
0x2331   :  { %v7913_v54 = vmul.f32 %v13283_v38, %v13275_v35  ;;  %v12058_v38 = vld [vmem:[%s15471_s28 + $0x28] sm:$0xff] }
0x2333   :  { %12758 = vmatpush3.xpose.msk.msra.mxu1 %vm655_vm5, %v7913_v54  ;;  %v13065_v54 = vpack.c.bf16 %v12058_v38, %v12057_v26 }
0x2334   :  { %v13285_v55 = vpop.eup %13284  ;;  %12767 = vmatprep.subr.mxu1 %v13660_v15 }
0x2335   :  { %v7914_v56 = vmul.f32 %v13285_v55, %v13277_v19 }
0x2337   :  { %12763 = vmatpush3.xpose.msk.msra.mxu0 %vm655_vm5, %v7914_v56 }
0x2338   :  { %12772 = vmatprep.subr.mxu0 %v13660_v15 }
0x234d   :  { %v7905_v57 = vpop.xlane.xlu0 %7904 }
0x234e   :  { %13286 = vrcp.f32 %v7905_v57 }
0x234f   :  { %v7945_v51 = vpop.trf.xlu1 }
0x2350   :  { %12760 = vmatmul.mubr.msk.f32.vlgmr.msra.gmra.mrb[54].mxu1 %vm655_vm5, %v7945_v51 }
0x2351   :  { %12769 = vmatprep.mubr.msk.f32.mxu1 %vm13665_vm4, %v13660_v15  ;;  %v7908_v59 = vpop.xlane.xlu0 %7907 }
0x2352   :  { %13288 = vrcp.f32 %v7908_v59 }
0x2353   :  { %v8041_v2 = vpop.trf.xlu1 }
0x2357   :  { %v7199_v7 = vpop.trf.xlu1 }
0x2358   :  { %v13287_v14 = vpop.eup %13286 }
0x2359   :  { %v7915_v58 = vmul.f32 %v13287_v14, %v13279_v45 }
0x235b   :  { %12768 = vmatpush3.xpose.msk.msra.mxu1 %vm655_vm5, %v7915_v58  ;;  %v7263_v8 = vpop.trf.xlu1 }
0x235c   :  { %v13289_v60 = vpop.eup %13288  ;;  %v7295_v10 = vcombine.low %v7199_v7, %v7263_v8  ;;  %v7296_v13 = vcombine.high %v7199_v7, %v7263_v8  ;;  %13066 = vmatprep.subr.bf16.mxu1 %v13065_v54 }
0x235d   :  { %v7916_v1 = vmul.f32 %v13289_v60, %v13281_v11 }
0x235e   :  { %v7303_v25 = vrot.slane %v7295_v10, %v14263_v50  ;;  %v7310_v17 = vrot.slane %v7296_v13, %v14263_v50  ;;  %v12060_v10 = vld [vmem:[%s15471_s28 + $0x38] sm:$0xff] }
0x2371   :  { %v7977_v61 = vpop.trf.xlu0 }
0x2372   :  { %12765 = vmatmul.mubr.msk.f32.vlgmr.msra.gmra.mrb[54].mxu0 %vm655_vm5, %v7977_v61 }
0x2373   :  { %12773 = vmatpush3.xpose.msk.msra.mxu0 %vm655_vm5, %v7916_v1  ;;  %12774 = vmatprep.mubr.msk.f32.mxu0 %vm13665_vm4, %v13660_v15 }
0x2375   :  { %v8009_v3 = vpop.trf.xlu0 }
0x2376   :  { %12770 = vmatmul.mubr.msk.f32.vlgmr.msra.gmra.mrb[56].mxu1 %vm655_vm5, %v8009_v3  ;;  %12775 = vmatmul.mubr.msk.f32.vlgmr.msra.gmra.mrb[56].mxu0 %vm655_vm5, %v8041_v2 }
0x2377   :  { %13068 = vmatpush3.bf16.msra.mxu1 %v13065_v54 }
0x2379   :  { %v7167_v0 = vpop.trf.xlu0 }
0x237d   :  { %v7231_v40 = vpop.trf.xlu0 }
0x237e   :  { %v7279_v12 = vcombine.low %v7167_v0, %v7231_v40  ;;  %v7280_v9 = vcombine.high %v7167_v0, %v7231_v40 }
0x2380   :  { %v7287_v16 = vrot.slane %v7279_v12, %v14263_v50  ;;  %v7294_v24 = vrot.slane %v7280_v9, %v14263_v50  ;;  %v12059_v9 = vld [vmem:[%s15471_s28 + $0x30] sm:$0xff] }
0x2381   :  { %v13069_v13 = vpack.c.bf16 %v12060_v10, %v12059_v9 }
0x2382   :  { %v7311_v62 = vcombine.low %v7287_v16, %v7303_v25  ;;  %v7312_v32 = vcombine.high %v7287_v16, %v7303_v25  ;;  %v7327_v33 = vcombine.low %v7294_v24, %v7310_v17  ;;  %v7328_v34 = vcombine.high %v7294_v24, %v7310_v17 }
0x2383   :  { %13070 = vmatprep.subr.bf16.mxu1 %v13069_v13 }
0x2384   :  { %v7319_v18 = vrot.slane %v7311_v62, %v14270_v63  ;;  %v7326_v35 = vrot.slane %v7312_v32, %v14270_v63  ;;  %v7335_v36 = vrot.slane %v7327_v33, %v14270_v63  ;;  %v7342_v19 = vrot.slane %v7328_v34, %v14270_v63  ;;  %13072 = vmatpush3.bf16.msra.mxu1 %v13069_v13 }
0x2386   :  { %v7347_v43 = vcombine.low %v7319_v18, %v7326_v35  ;;  %v12041_v31 = vcombine.high %v7319_v18, %v7326_v35  ;;  %v7363_v20 = vcombine.low %v7335_v36, %v7342_v19  ;;  %v12042_v21 = vcombine.high %v7335_v36, %v7342_v19 }
0x2388   :  { %v7354_v6 = vrot.slane %v7347_v43, %v14263_v50  ;;  %v7362_v41 = vrot.slane %v12041_v31, %v14263_v50  ;;  %v7370_v42 = vrot.slane %v7363_v20, %v14263_v50  ;;  %v7378_v45 = vrot.slane %v12042_v21, %v14263_v50 }
0x238a   :  { %v7380_v47 = vcombine.high %v7354_v6, %v7362_v41  ;;  %v7396_v11 = vcombine.high %v7370_v42, %v7378_v45  ;;  %v7379_v52 = vcombine.low %v7354_v6, %v7362_v41  ;;  %v7395_v39 = vcombine.low %v7370_v42, %v7378_v45 }
0x238c   :  { %v7394_v48 = vrot.slane %v7380_v47, %v14270_v63  ;;  %v7410_v49 = vrot.slane %v7396_v11, %v14270_v63  ;;  %v7387_v55 = vrot.slane %v7379_v52, %v14270_v63  ;;  %v7403_v56 = vrot.slane %v7395_v39, %v14270_v63 }
0x238e   :  { %v7413_v46 = vcombine.low %v7394_v48, %v7410_v49  ;;  %v7414_v53 = vcombine.high %v7394_v48, %v7410_v49  ;;  %v7412_v57 = vcombine.high %v7387_v55, %v7403_v56  ;;  %v7411_v45 = vcombine.low %v7387_v55, %v7403_v56  ;;  %v13338_v55 = vld [vmem:[#allocation2] sm:$0xff] }
0x238f   :  { %v12073_v56 = vld [vmem:[%s15414_s14 + $0x20] sm:$0xff] }
0x2423   :  { %v8129_v4 = vpop.f32.mrb[54].mxu1 }
0x2424   :  { %v12761_v5 = vpop.f32.mrb[55].mxu1  ;;  %8361 = vxpose.xlu0.b32.start.end [1/1] (short) (narrow) %v8129_v4, 8 }
0x2445   :  { %v8205_v22 = vpop.f32.mrb[54].mxu0 }
0x2446   :  { %8393 = vxpose.xlu1.b32.start.end [1/1] (short) (narrow) %v8205_v22, 8  ;;  %v12766_v23 = vpop.f32.mrb[55].mxu0 }
0x2449   :  { %v8281_v28 = vpop.f32.mrb[56].mxu1  ;;  %v8357_v29 = vpop.f32.mrb[56].mxu0 }
0x244a   :  { %8425 = vxpose.xlu0.b32.start.end [1/1] (short) (narrow) %v8281_v28, 8  ;;  %v12771_v44 = vpop.f32.mrb[57].mxu1  ;;  %8457 = vxpose.xlu1.b32.start.end [1/1] (short) (narrow) %v8357_v29, 8  ;;  %v12776_v30 = vpop.f32.mrb[57].mxu0 }
0x2468   :  { %7420 = vrot.lane.b32.xlu1 %v7413_v46, %s13643_s6 }
0x246c   :  { %7424 = vrot.lane.b32.xlu1 %v7414_v53, %s13669_s0 }
0x2473   :  { %7416 = vrot.lane.b32.xlu0 %v7412_v57, %s13652_s3  ;;  %v12074_v57 = vld [vmem:[%s15414_s14 + $0x28] sm:$0xff] }
0x24a4   :  { %v8377_v51 = vpop.trf.xlu0 }
0x24c6   :  { %v8409_v14 = vpop.trf.xlu1 }
0x24ca   :  { %v8441_v58 = vpop.trf.xlu0  ;;  %v8473_v59 = vpop.trf.xlu1 }
0x24cb   :  { %v8489_v60 = vcombine.low %v8377_v51, %v8441_v58  ;;  %v8490_v61 = vcombine.high %v8377_v51, %v8441_v58  ;;  %v8505_v1 = vcombine.low %v8409_v14, %v8473_v59  ;;  %v8506_v2 = vcombine.high %v8409_v14, %v8473_v59  ;;  %v12075_v51 = vld [vmem:[%s15414_s14 + $0x30] sm:$0xff]  ;;  %v12076_v58 = vld [vmem:[%s15414_s14 + $0x38] sm:$0xff] }
0x24cc   :  { %v13081_v14 = vpack.c.bf16 %v12074_v57, %v12073_v56  ;;  %v13085_v59 = vpack.c.bf16 %v12076_v58, %v12075_v51  ;;  %v12070_v56 = vld [vmem:[#allocation9 + $0x1] ss:$0 sm:$0xff] }
0x24cd   :  { %v8497_v3 = vrot.slane %v8489_v60, %v14263_v50  ;;  %v8504_v4 = vrot.slane %v8490_v61, %v14263_v50  ;;  %v8513_v5 = vrot.slane %v8505_v1, %v14263_v50  ;;  %v8520_v0 = vrot.slane %v8506_v2, %v14263_v50  ;;  %v13339_v60 = vld [vmem:[#allocation2 + $0x8] sm:$0xff]  ;;  %v13340_v61 = vld [vmem:[#allocation2 + $0x10] sm:$0xff]  ;;  %v13341_v1 = vld [vmem:[#allocation2 + $0x18] sm:$0xff] }
0x24ce   :  { %13082 = vmatprep.subr.bf16.mxu1 %v13081_v14 }
0x24cf   :  { %v8521_v7 = vcombine.low %v8497_v3, %v8513_v5  ;;  %v8522_v40 = vcombine.high %v8497_v3, %v8513_v5  ;;  %v8537_v8 = vcombine.low %v8504_v4, %v8520_v0  ;;  %v8538_v12 = vcombine.high %v8504_v4, %v8520_v0  ;;  %v12063_v3 = vld [vmem:[#allocation4 + $0x1] ss:$0 sm:$0xff] }
0x24d1   :  { %v8529_v22 = vrot.slane %v8521_v7, %v14270_v63  ;;  %v8536_v23 = vrot.slane %v8522_v40, %v14270_v63  ;;  %v8545_v16 = vrot.slane %v8537_v8, %v14270_v63  ;;  %v8552_v24 = vrot.slane %v8538_v12, %v14270_v63 }
0x24d3   :  { %v8557_v25 = vcombine.low %v8529_v22, %v8536_v23  ;;  %v12055_v17 = vcombine.high %v8529_v22, %v8536_v23  ;;  %v8573_v28 = vcombine.low %v8545_v16, %v8552_v24  ;;  %v12056_v29 = vcombine.high %v8545_v16, %v8552_v24 }
0x24d5   :  { %v8564_v44 = vrot.slane %v8557_v25, %v14263_v50  ;;  %v8572_v30 = vrot.slane %v12055_v17, %v14263_v50  ;;  %v8580_v62 = vrot.slane %v8573_v28, %v14263_v50  ;;  %v8588_v32 = vrot.slane %v12056_v29, %v14263_v50  ;;  %v12066_v17 = vld [vmem:[%s15412_s12 + $0x20] sm:$0xff]  ;;  %v12067_v28 = vld [vmem:[%s15412_s12 + $0x28] sm:$0xff] }
0x24d6   :  { %v13073_v29 = vpack.c.bf16 %v12067_v28, %v12066_v17 }
0x24d7   :  { %v8590_v33 = vcombine.high %v8564_v44, %v8572_v30  ;;  %v8606_v34 = vcombine.high %v8580_v62, %v8588_v32  ;;  %v8589_v18 = vcombine.low %v8564_v44, %v8572_v30  ;;  %v8605_v35 = vcombine.low %v8580_v62, %v8588_v32  ;;  %v12068_v44 = vld [vmem:[%s15412_s12 + $0x30] sm:$0xff]  ;;  %v12069_v30 = vld [vmem:[%s15412_s12 + $0x38] sm:$0xff] }
0x24d8   :  { %13074 = vmatprep.subr.bf16.mxu0 %v13073_v29  ;;  %v13077_v62 = vpack.c.bf16 %v12069_v30, %v12068_v44 }
0x24d9   :  { %v8604_v36 = vrot.slane %v8590_v33, %v14270_v63  ;;  %v8620_v19 = vrot.slane %v8606_v34, %v14270_v63  ;;  %v8597_v43 = vrot.slane %v8589_v18, %v14270_v63  ;;  %v8613_v31 = vrot.slane %v8605_v35, %v14270_v63  ;;  %13076 = vmatpush3.bf16.msra.mxu0 %v13073_v29  ;;  %v15030_v33 = vld [vmem:[#allocation10 + $0x1] ss:$0 sm:$0xff] }
0x24da   :  { %v7421_v42 = vpop.permute.xlu1 %7420  ;;  %13078 = vmatprep.subr.bf16.mxu0 %v13077_v62 }
0x24db   :  { %v8623_v20 = vcombine.low %v8604_v36, %v8620_v19  ;;  %v8622_v21 = vcombine.high %v8597_v43, %v8613_v31  ;;  %v8621_v6 = vcombine.low %v8597_v43, %v8613_v31  ;;  %v8624_v41 = vcombine.high %v8604_v36, %v8620_v19 }
0x24dd   :  { %8630 = vrot.lane.b32.xlu0 %v8623_v20, %s13643_s6  ;;  %8626 = vrot.lane.b32.xlu1 %v8622_v21, %s13652_s3 }
0x24de   :  { %v7425_v11 = vpop.permute.xlu1 %7424  ;;  %13080 = vmatpush3.bf16.msra.mxu0 %v13077_v62 }
0x24df   :  { %12813 = vmatprep.subr.mxu0 %v13660_v15 }
0x24e1   :  { %8634 = vrot.lane.b32.xlu1 %v8624_v41, %s13669_s0  ;;  %v12064_v41 = vld [vmem:[#allocation6 + $0x1] ss:$0 sm:$0xff] }
0x24e5   :  { %v7417_v47 = vpop.permute.xlu0 %7416 }
0x24e6   :  { %v7427_v48 = vsel %vm655_vm5, %v7411_v45, %v7417_v47  ;;  %v12065_v47 = vld [vmem:[#allocation7 + $0x1] ss:$0 sm:$0xff] }
0x24e7   :  { %v7428_v49 = vsel %vm1722_vm7, %v7427_v48, %v7421_v42 }
0x24e8   :  { %v7429_v46 = vsel %vm1724_vm8, %v7428_v49, %v7425_v11 }
0x24e9   :  { %12785 = vmatprep.mubr.msk.f32.mxu1 %vm372_vm3, %v7429_v46 }
0x254f   :  { %v8627_v52 = vpop.permute.xlu1 %8626  ;;  %v8631_v39 = vpop.permute.xlu0 %8630 }
0x2550   :  { %v8637_v53 = vsel %vm655_vm5, %v8621_v6, %v8627_v52 }
0x2551   :  { %v8638_v26 = vsel %vm1722_vm7, %v8637_v53, %v8631_v39 }
0x2553   :  { %v8635_v38 = vpop.permute.xlu1 %8634 }
0x2554   :  { %v8639_v54 = vsel %vm1724_vm8, %v8638_v26, %v8635_v38 }
0x2555   :  { %12786 = vmatmul.mubr.msk.f32.vlgmr.msra.gmra.mrb[58].mxu1 %vm372_vm3, %v8639_v54 }
0x2556   :  { %12807 = vmatprep.mubr.msk.f32.mxu1 %vm372_vm3, %v13338_v55  ;;  %13084 = vmatpush3.bf16.msra.mxu1 %v13081_v14 }
0x2557   :  { %13086 = vmatprep.subr.bf16.mxu1 %v13085_v59 }
0x255a   :  { %13088 = vmatpush3.bf16.msra.mxu1 %v13085_v59 }
0x255b   :  { %12828 = vmatprep.subr.mxu1 %v13660_v15 }
0x255d   :  { %12808 = vmatmul.mubr.msk.f32.vlgmr.msra.gmra.mrb[60].mxu1 %vm372_vm3, %v13339_v60 }
0x255e   :  { %12810 = vmatprep.mubr.msk.f32.mxu1 %vm372_vm3, %v13340_v61 }
0x2561   :  { %12811 = vmatmul.mubr.msk.f32.gmra.mrb[62].mxu1 %vm372_vm3, %v13341_v1 }
0x2562   :  { %12830 = vmatprep.mubr.msk.f32.mxu1 %vm13665_vm4, %v13660_v15 }
0x2628   :  { %v12787_v2 = vpop.f32.mrb[58].mxu1 }
0x2629   :  { %v8727_v4 = vadd.f32 %v12787_v2, %v14725_v37  ;;  %v8717_v5 = vpop.f32.mrb[59].mxu1 }
0x262a   :  { %v8726_v0 = vadd.f32 %v8717_v5, %v14727_v27 }
0x262b   :  { %v15005_v7 = vadd.f32 %v12063_v3, %v8727_v4 }
0x262c   :  { %v15007_v40 = vadd.f32 %v12063_v3, %v8726_v0 }
0x262d   :  { %v8745_v8 = vsel %vm372_vm3, %v15005_v7, 0.0 }
0x262e   :  { %8746 = vadd.xlane.f32.xlu1 %v8745_v8  ;;  %v8742_v12 = vsel %vm372_vm3, %v15007_v40, 0.0 }
0x262f   :  { %8743 = vadd.xlane.f32.xlu0 %v8742_v12 }
0x2630   :  { %v12809_v32 = vpop.f32.mrb[60].mxu1 }
0x2631   :  { %v8963_v34 = vadd.f32 %v12809_v32, %v15030_v33  ;;  %v8957_v18 = vpop.f32.mrb[61].mxu1 }
0x2632   :  { %v8958_v35 = vadd.f32 %v15030_v33, %v8957_v18 }
0x263f   :  { %8985 = vrot.lane.b32.xlu1 %v8958_v35, %s13661_s17 }
0x2643   :  { %8991 = vrot.lane.b32.xlu1 %v8958_v35, %s13662_s1 }
0x2647   :  { %8997 = vrot.lane.b32.xlu1 %v8958_v35, %s13663_s15 }
0x264b   :  { %8999 = vrot.lane.b32.xlu1 %v8963_v34, %s13663_s15 }
0x2674   :  { %9003 = vxpose.xlu1.b32.start [1/2] (short) (narrow) %v8958_v35, 8 }
0x2678   :  { %9004 = vxpose.xlu1.b32.end [2/2] (short) (narrow) %v8963_v34, 8 }
0x26bb   :  { %v8747_v9 = vpop.xlane.xlu1 %8746 }
0x26bc   :  { %v8749_v10 = vmul.f32 0.03125, %v8747_v9  ;;  %v8744_v13 = vpop.xlane.xlu0 %8743 }
0x26bd   :  { %v8748_v22 = vmul.f32 0.03125, %v8744_v13 }
0x26be   :  { %v8751_v37 = vsub.f32 %v15005_v7, %v8749_v10  ;;  %v12812_v10 = vpop.f32.mrb[62].mxu1 }
0x26bf   :  { %v8750_v27 = vsub.f32 %v15007_v40, %v8748_v22  ;;  %v8986_v45 = vpop.permute.xlu1 %8985  ;;  %v8967_v13 = vpop.f32.mrb[63].mxu1 }
0x26c0   :  { %v8753_v24 = vmul.f32 %v8751_v37, %v8751_v37 }
0x26c1   :  { %v8752_v23 = vmul.f32 %v8750_v27, %v8750_v27 }
0x26c2   :  { %v8757_v25 = vsel %vm372_vm3, %v8753_v24, 0.0 }
0x26c3   :  { %v8754_v16 = vsel %vm372_vm3, %v8752_v23, 0.0  ;;  %v15044_v26 = vpop.permute.xlu1 %8991 }
0x26c4   :  { %8755 = vadd.xlane.f32.xlu0 %v8754_v16 }
0x26c7   :  { %v15046_v38 = vpop.permute.xlu1 %8997 }
0x26c8   :  { %8758 = vadd.xlane.f32.xlu0 %v8757_v25 }
0x26cb   :  { %v15048_v54 = vpop.permute.xlu1 %8999 }
0x26de   :  { %8987 = vrot.lane.b32.xlu0 %v8963_v34, %s13661_s17 }
0x26e2   :  { %8993 = vrot.lane.b32.xlu0 %v8963_v34, %s13662_s1 }
0x26f4   :  { %v9019_v55 = vpop.trf.xlu1 }
0x2700   :  { %9035 = vxpose.xlu0.b32.start [1/2] (short) (narrow) %v8986_v45, 8 }
0x2751   :  { %v8756_v36 = vpop.xlane.xlu0 %8755 }
0x2752   :  { %v8760_v19 = vmul.f32 0.03125, %v8756_v36  ;;  %v15097_v36 = vadd.f32 %v15030_v33, %v8967_v13 }
0x2754   :  { %v8762_v43 = vadd.f32 1e-05, %v8760_v19 }
0x2755   :  { %v8759_v31 = vpop.xlane.xlu0 %8758 }
0x2756   :  { %13290 = vrsqrt.f32 %v8762_v43  ;;  %v8761_v20 = vmul.f32 0.03125, %v8759_v31 }
0x2758   :  { %v8763_v21 = vadd.f32 1e-05, %v8761_v20 }
0x2759   :  { %v8988_v48 = vpop.permute.xlu0 %8987 }
0x275a   :  { %13292 = vrsqrt.f32 %v8763_v21  ;;  %9036 = vxpose.xlu0.b32.end [2/2] (short) (narrow) %v8988_v48, 8 }
0x275d   :  { %v15051_v51 = vpop.permute.xlu0 %8993 }
0x2760   :  { %v13291_v6 = vpop.eup %13290 }
0x2761   :  { %v8766_v42 = vmul.f32 %v13291_v6, %v8750_v27 }
0x2763   :  { %v8774_v11 = vmul.f32 %v12064_v41, %v8766_v42 }
0x2764   :  { %v13293_v49 = vpop.eup %13292 }
0x2765   :  { %v8767_v46 = vmul.f32 %v13293_v49, %v8751_v37  ;;  %v8782_v52 = vadd.f32 %v12065_v47, %v8774_v11 }
0x2767   :  { %v8775_v39 = vmul.f32 %v12064_v41, %v8767_v46  ;;  %12796 = vmatprep.mubr.msk.f32.mxu0 %vm372_vm3, %v8782_v52 }
0x2769   :  { %v8783_v53 = vadd.f32 %v12065_v47, %v8775_v39 }
0x276b   :  { %12797 = vmatmul.mubr.msk.f32.vlgmr.msra.gmra.mrb[58].mxu0 %vm372_vm3, %v8783_v53 }
0x276c   :  { %12815 = vmatprep.mubr.msk.f32.mxu0 %vm13665_vm4, %v13660_v15  ;;  %12814 = vmatpush3.msra.mxu0 %v9019_v55 }
0x276d   :  { %12818 = vmatprep.subr.mxu0 %v13660_v15 }
0x27d6   :  { %v9051_v60 = vpop.trf.xlu0 }
0x283e   :  { %v12798_v57 = vpop.f32.mrb[58].mxu0 }
0x283f   :  { %v15053_v14 = vadd.f32 %v12798_v57, %v12070_v56  ;;  %v8869_v58 = vpop.f32.mrb[59].mxu0 }
0x2840   :  { %v8870_v59 = vadd.f32 %v12070_v56, %v8869_v58 }
0x2842   :  { %8979 = vrot.lane.b32.xlu1 %v8870_v59, %s13662_s1  ;;  %12816 = vmatmul.mubr.msk.f32.vlgmr.msra.gmra.mrb[60].mxu0 %vm655_vm5, %v8870_v59 }
0x2843   :  { %8977 = vrot.lane.b32.xlu0 %v8870_v59, %s13661_s17  ;;  %12819 = vmatpush3.msra.mxu0 %v9051_v60 }
0x2844   :  { %12820 = vmatprep.mubr.msk.f32.mxu0 %vm13665_vm4, %v13660_v15  ;;  %12823 = vmatprep.subr.mxu0 %v13660_v15 }
0x2847   :  { %8981 = vrot.lane.b32.xlu0 %v8870_v59, %s13663_s15 }
0x2865   :  { %9067 = vxpose.xlu0.b32.start [1/2] (short) (narrow) %v15044_v26, 8 }
0x2869   :  { %9068 = vxpose.xlu0.b32.end [2/2] (short) (narrow) %v15051_v51, 8 }
0x286b   :  { %9099 = vxpose.xlu1.b32.start [1/2] (short) (narrow) %v15046_v38, 8 }
0x286f   :  { %9100 = vxpose.xlu1.b32.end [2/2] (short) (narrow) %v15048_v54, 8 }
0x288d   :  { %9471 = vrot.lane.b32.xlu1 %v8986_v45, %s13664_s23 }
0x2891   :  { %9469 = vrot.lane.b32.xlu1 %v8963_v34, %s13664_s23 }
0x2892   :  { %9467 = vrot.lane.b32.xlu0 %v8958_v35, %s13664_s23  ;;  %v15092_v35 = vadd.f32 %v12812_v10, %v15030_v33 }
0x28b4   :  { %v8980_v3 = vpop.permute.xlu1 %8979 }
0x28b5   :  { %v8978_v61 = vpop.permute.xlu0 %8977 }
0x28b6   :  { %12821 = vmatmul.mubr.msk.f32.vlgmr.msra.gmra.mrb[62].mxu0 %vm655_vm5, %v8978_v61 }
0x28b7   :  { %12825 = vmatprep.mubr.msk.f32.mxu0 %vm13665_vm4, %v13660_v15 }
0x28b9   :  { %v8982_v1 = vpop.permute.xlu0 %8981 }
0x28e5   :  { %v9083_v2 = vpop.trf.xlu0 }
0x28e6   :  { %12824 = vmatpush3.msra.mxu0 %v9083_v2 }
0x28e7   :  { %12826 = vmatmul.mubr.msk.f32.vlgmr.msra.gmra.mrb[64].mxu0 %vm655_vm5, %v8980_v3  ;;  %12833 = vmatprep.subr.mxu0 %v13660_v15 }
0x28e8   :  { %12835 = vmatprep.mubr.msk.f32.mxu0 %vm13665_vm4, %v13660_v15 }
0x28eb   :  { %v9115_v4 = vpop.trf.xlu1 }
0x28ec   :  { %12829 = vmatpush3.msra.mxu1 %v9115_v4 }
0x28ed   :  { %12831 = vmatmul.mubr.msk.f32.vlgmr.msra.gmra.mrb[64].mxu1 %vm655_vm5, %v8982_v1  ;;  %12838 = vmatprep.subr.mxu1 %v13660_v15 }
0x28ee   :  { %12840 = vmatprep.mubr.msk.f32.mxu1 %vm13665_vm4, %v13660_v15 }
0x28ff   :  { %v9472_v5 = vpop.permute.xlu1 %9471 }
0x2903   :  { %v9470_v8 = vpop.permute.xlu1 %9469 }
0x2904   :  { %v9468_v0 = vpop.permute.xlu0 %9467 }
0x2905   :  { %9491 = vxpose.xlu0.b32.start [1/2] (short) (narrow) %v9468_v0, 8 }
0x2909   :  { %9492 = vxpose.xlu0.b32.end [2/2] (short) (narrow) %v9470_v8, 8 }
0x2915   :  { %v9199_v12 = vpop.f32.mrb[60].mxu0 }
0x2916   :  { %v12817_v9 = vpop.f32.mrb[61].mxu0  ;;  %v9419_v22 = vmul.f32 0.35355338, %v9199_v12 }
0x2918   :  { %v9423_v37 = vsel %vm1722_vm7, %v9419_v22, -inf }
0x2932   :  { %9473 = vrot.lane.b32.xlu0 %v8988_v48, %s13664_s23 }
0x2951   :  { %9424 = vmax.xlane.f32.xlu0 %v9423_v37 }
0x2985   :  { %v15085_v34 = vpop.trf.xlu0 }
0x2989   :  { %v9271_v27 = vpop.f32.mrb[62].mxu0 }
0x298a   :  { %v9420_v23 = vmul.f32 0.35355338, %v9271_v27  ;;  %v12822_v16 = vpop.f32.mrb[63].mxu0 }
0x298c   :  { %v9426_v24 = vsel %vm1722_vm7, %v9420_v23, -inf }
0x298d   :  { %9427 = vmax.xlane.f32.xlu1 %v9426_v24 }
0x29a4   :  { %v9474_v18 = vpop.permute.xlu0 %9473 }
0x29ba   :  { %v9343_v25 = vpop.f32.mrb[64].mxu0 }
0x29bb   :  { %v9421_v17 = vmul.f32 0.35355338, %v9343_v25  ;;  %v12827_v28 = vpop.f32.mrb[65].mxu0 }
0x29bd   :  { %v9429_v29 = vsel %vm1722_vm7, %v9421_v17, -inf }
0x29be   :  { %9430 = vmax.xlane.f32.xlu0 %v9429_v29 }
0x29c0   :  { %v9415_v44 = vpop.f32.mrb[64].mxu1 }
0x29c1   :  { %v9422_v30 = vmul.f32 0.35355338, %v9415_v44  ;;  %v12832_v62 = vpop.f32.mrb[65].mxu1 }
0x29c3   :  { %v9432_v32 = vsel %vm1722_vm7, %v9422_v30, -inf }
0x29c4   :  { %9433 = vmax.xlane.f32.xlu1 %v9432_v32 }
0x29de   :  { %v9425_v19 = vpop.xlane.xlu0 %9424 }
0x29df   :  { %v9435_v43 = vsub.f32 %v9419_v22, %v9425_v19 }
0x29e1   :  { %v9439_v31 = vmul.f32 1.442695, %v9435_v43 }
0x29e3   :  { %13294 = vpow2.f32 %v9439_v31 }
0x29ed   :  { %v13295_v6 = vpop.eup %13294 }
0x29ee   :  { %v9447_v41 = vsel %vm1722_vm7, %v13295_v6, 0.0 }
0x29f7   :  { %9523 = vxpose.xlu1.b32.start [1/2] (short) (narrow) %v9472_v5, 8 }
0x29fb   :  { %9524 = vxpose.xlu1.b32.end [2/2] (short) (narrow) %v9474_v18, 8 }
0x2a19   :  { %9475 = vrot.lane.b32.xlu1 %v15044_v26, %s13664_s23 }
0x2a1a   :  { %v9428_v47 = vpop.xlane.xlu1 %9427 }
0x2a1b   :  { %v9436_v26 = vsub.f32 %v9420_v23, %v9428_v47 }
0x2a1d   :  { %9477 = vrot.lane.b32.xlu1 %v15051_v51, %s13664_s23 }
0x2a21   :  { %10213 = vrot.lane.b32.xlu1 %v15092_v35, %s13661_s17 }
0x2a25   :  { %10223 = vrot.lane.b32.xlu1 %v15097_v36, %s13663_s15 }
0x2a29   :  { %10219 = vrot.lane.b32.xlu1 %v15092_v35, %s13662_s1 }
0x2a2d   :  { %10203 = vrot.lane.b32.xlu1 %v15053_v14, %s13661_s17 }
0x2a31   :  { %10207 = vrot.lane.b32.xlu1 %v15053_v14, %s13663_s15 }
0x2a4b   :  { %v9431_v20 = vpop.xlane.xlu0 %9430 }
0x2a4c   :  { %v9437_v21 = vsub.f32 %v9421_v17, %v9431_v20 }
0x2a4e   :  { %v9443_v33 = vmul.f32 1.442695, %v9437_v21 }
0x2a50   :  { %13296 = vpow2.f32 %v9443_v33 }
0x2a51   :  { %v9434_v11 = vpop.xlane.xlu1 %9433 }
0x2a52   :  { %v9438_v55 = vsub.f32 %v9422_v30, %v9434_v11 }
0x2a54   :  { %v9445_v56 = vmul.f32 1.442695, %v9438_v55 }
0x2a55   :  { %9448 = vadd.xlane.f32.xlu1 %v9447_v41 }
0x2a5a   :  { %v13297_v42 = vpop.eup %13296 }
0x2a5b   :  { %v9453_v45 = vsel %vm1722_vm7, %v13297_v42, 0.0 }
0x2a5c   :  { %9454 = vadd.xlane.f32.xlu1 %v9453_v45 }
0x2a77   :  { %v15109_v48 = vpop.trf.xlu1 }
0x2a8b   :  { %v9476_v49 = vpop.permute.xlu1 %9475 }
0x2a8c   :  { %9555 = vxpose.xlu0.b32.start [1/2] (short) (narrow) %v9476_v49, 8 }
0x2a8f   :  { %10229 = vxpose.xlu1.b32.start [1/2] (short) (narrow) %v15097_v36, 8  ;;  %v9478_v46 = vpop.permute.xlu1 %9477 }
0x2a90   :  { %9556 = vxpose.xlu0.b32.end [2/2] (short) (narrow) %v9478_v46, 8 }
0x2a93   :  { %10230 = vxpose.xlu1.b32.end [2/2] (short) (narrow) %v15092_v35, 8  ;;  %v15121_v52 = vpop.permute.xlu1 %10213 }
0x2a97   :  { %v15125_v39 = vpop.permute.xlu1 %10223 }
0x2a9b   :  { %v15129_v53 = vpop.permute.xlu1 %10219 }
0x2ab9   :  { %9479 = vrot.lane.b32.xlu0 %v15046_v38, %s13664_s23  ;;  %v15131_v38 = vpop.permute.xlu1 %10203 }
0x2abd   :  { %9481 = vrot.lane.b32.xlu0 %v15048_v54, %s13664_s23  ;;  %v9441_v54 = vmul.f32 1.442695, %v9436_v26  ;;  %v15133_v57 = vpop.permute.xlu1 %10207 }
0x2abf   :  { %13298 = vpow2.f32 %v9441_v54 }
0x2ac0   :  { %13300 = vpow2.f32 %v9445_v56 }
0x2ac1   :  { %10211 = vrot.lane.b32.xlu0 %v15097_v36, %s13661_s17 }
0x2ac5   :  { %10217 = vrot.lane.b32.xlu0 %v15097_v36, %s13662_s1 }
0x2ac9   :  { %10225 = vrot.lane.b32.xlu0 %v15092_v35, %s13663_s15  ;;  %v13299_v58 = vpop.eup %13298 }
0x2aca   :  { %v9450_v60 = vsel %vm1722_vm7, %v13299_v58, 0.0  ;;  %v13301_v61 = vpop.eup %13300 }
0x2acb   :  { %v9456_v3 = vsel %vm1722_vm7, %v13301_v61, 0.0 }
0x2acd   :  { %10205 = vrot.lane.b32.xlu0 %v15053_v14, %s13662_s1 }
0x2ae2   :  { %v9449_v51 = vpop.xlane.xlu1 %9448 }
0x2ae3   :  { %13302 = vrcp.f32 %v9449_v51 }
0x2ae9   :  { %v9455_v59 = vpop.xlane.xlu1 %9454 }
0x2aea   :  { %13304 = vrcp.f32 %v9455_v59 }
0x2aec   :  { %9451 = vadd.xlane.f32.xlu0 %v9450_v60 }
0x2aed   :  { %v13303_v1 = vpop.eup %13302 }
0x2aee   :  { %v9463_v2 = vmul.f32 %v13303_v1, %v13295_v6 }
0x2af0   :  { %9457 = vadd.xlane.f32.xlu0 %v9456_v3  ;;  %12834 = vmatpush3.xpose.msk.msra.mxu0 %vm1722_vm7, %v9463_v2 }
0x2af1   :  { %12843 = vmatprep.subr.mxu0 %v13660_v15 }
0x2af3   :  { %12836 = vmatmul.mubr.msk.f32.vlgmr.msra.gmra.mrb[66].mxu0 %vm1722_vm7, %v15085_v34 }
0x2af4   :  { %v13305_v4 = vpop.eup %13304  ;;  %12845 = vmatprep.mubr.msk.f32.mxu0 %vm13665_vm4, %v13660_v15 }
0x2af5   :  { %v9465_v5 = vmul.f32 %v13305_v4, %v13297_v42 }
0x2af7   :  { %12844 = vmatpush3.xpose.msk.msra.mxu0 %vm1722_vm7, %v9465_v5 }
0x2af8   :  { %12853 = vmatprep.subr.mxu0 %v13660_v15 }
0x2b0c   :  { %v9571_v0 = vpop.trf.xlu0 }
0x2b0d   :  { %12846 = vmatmul.mubr.msk.f32.vlgmr.msra.gmra.mrb[68].mxu0 %vm1722_vm7, %v9571_v0 }
0x2b0e   :  { %12855 = vmatprep.mubr.msk.f32.mxu0 %vm13665_vm4, %v13660_v15 }
0x2b0f   :  { %v10245_v8 = vpop.trf.xlu1 }
0x2b10   :  { %12854 = vmatpush3.msra.mxu0 %v10245_v8 }
0x2b11   :  { %12856 = vmatmul.mubr.msk.f32.vlgmr.msra.gmra.mrb[70].mxu0 %vm655_vm5, %v15053_v14  ;;  %12863 = vmatprep.subr.mxu0 %v13660_v15 }
0x2b12   :  { %12865 = vmatprep.mubr.msk.f32.mxu0 %vm13665_vm4, %v13660_v15 }
0x2b2b   :  { %v9480_v12 = vpop.permute.xlu0 %9479 }
0x2b2c   :  { %9587 = vxpose.xlu0.b32.start [1/2] (short) (narrow) %v9480_v12, 8 }
0x2b2f   :  { %v9482_v9 = vpop.permute.xlu0 %9481 }
0x2b30   :  { %9588 = vxpose.xlu0.b32.end [2/2] (short) (narrow) %v9482_v9, 8 }
0x2b33   :  { %v15153_v10 = vpop.permute.xlu0 %10211 }
0x2b34   :  { %10261 = vxpose.xlu0.b32.start [1/2] (short) (narrow) %v15153_v10, 8 }
0x2b37   :  { %v15156_v13 = vpop.permute.xlu0 %10217 }
0x2b38   :  { %10262 = vxpose.xlu0.b32.end [2/2] (short) (narrow) %v15121_v52, 8  ;;  %10293 = vxpose.xlu1.b32.start [1/2] (short) (narrow) %v15156_v13, 8 }
0x2b3b   :  { %v15162_v14 = vpop.permute.xlu0 %10225 }
0x2b3c   :  { %10325 = vxpose.xlu0.b32.start [1/2] (short) (narrow) %v15125_v39, 8  ;;  %10294 = vxpose.xlu1.b32.end [2/2] (short) (narrow) %v15129_v53, 8 }
0x2b3f   :  { %v10206_v22 = vpop.permute.xlu0 %10205 }
0x2b40   :  { %10326 = vxpose.xlu0.b32.end [2/2] (short) (narrow) %v15162_v14, 8 }
0x2b79   :  { %v9452_v37 = vpop.xlane.xlu0 %9451 }
0x2b7a   :  { %13306 = vrcp.f32 %v9452_v37 }
0x2b7d   :  { %v9458_v27 = vpop.xlane.xlu0 %9457 }
0x2b7e   :  { %13308 = vrcp.f32 %v9458_v27 }
0x2b84   :  { %v13307_v23 = vpop.eup %13306 }
0x2b85   :  { %v9464_v16 = vmul.f32 %v13307_v23, %v13299_v58 }
0x2b87   :  { %12839 = vmatpush3.xpose.msk.msra.mxu1 %vm1722_vm7, %v9464_v16 }
0x2b88   :  { %v13309_v24 = vpop.eup %13308  ;;  %12848 = vmatprep.subr.mxu1 %v13660_v15 }
0x2b89   :  { %v9466_v25 = vmul.f32 %v13309_v24, %v13301_v61 }
0x2b8a   :  { %12841 = vmatmul.mubr.msk.f32.vlgmr.msra.gmra.mrb[66].mxu1 %vm1722_vm7, %v15109_v48 }
0x2b8b   :  { %12849 = vmatpush3.xpose.msk.msra.mxu1 %vm1722_vm7, %v9466_v25  ;;  %12850 = vmatprep.mubr.msk.f32.mxu1 %vm13665_vm4, %v13660_v15 }
0x2b8c   :  { %12858 = vmatprep.subr.mxu1 %v13660_v15 }
0x2bac   :  { %v9603_v17 = vpop.trf.xlu0 }
0x2bad   :  { %12851 = vmatmul.mubr.msk.f32.vlgmr.msra.gmra.mrb[68].mxu1 %vm1722_vm7, %v9603_v17 }
0x2bae   :  { %12860 = vmatprep.mubr.msk.f32.mxu1 %vm13665_vm4, %v13660_v15 }
0x2bb4   :  { %v10277_v28 = vpop.trf.xlu0 }
0x2bb5   :  { %12859 = vmatpush3.msra.mxu1 %v10277_v28 }
0x2bb6   :  { %12861 = vmatmul.mubr.msk.f32.vlgmr.msra.gmra.mrb[70].mxu1 %vm655_vm5, %v15131_v38  ;;  %12868 = vmatprep.subr.mxu1 %v13660_v15 }
0x2bb7   :  { %12870 = vmatprep.mubr.msk.f32.mxu1 %vm13665_vm4, %v13660_v15 }
0x2bb8   :  { %v10309_v29 = vpop.trf.xlu1 }
0x2bb9   :  { %12864 = vmatpush3.msra.mxu0 %v10309_v29 }
0x2bba   :  { %12866 = vmatmul.mubr.msk.f32.vlgmr.msra.gmra.mrb[72].mxu0 %vm655_vm5, %v10206_v22  ;;  %12873 = vmatprep.subr.mxu0 %v13660_v15 }
0x2bbb   :  { %12875 = vmatprep.mubr.msk.f32.mxu0 %vm13665_vm4, %v13660_v15 }
0x2bbc   :  { %v10341_v44 = vpop.trf.xlu0 }
0x2bbd   :  { %12869 = vmatpush3.msra.mxu1 %v10341_v44 }
0x2bbe   :  { %12871 = vmatmul.mubr.msk.f32.vlgmr.msra.gmra.mrb[72].mxu1 %vm655_vm5, %v15133_v57  ;;  %12878 = vmatprep.subr.mxu1 %v13660_v15 }
0x2bbf   :  { %12880 = vmatprep.mubr.msk.f32.mxu1 %vm13665_vm4, %v13660_v15 }
0x2bc6   :  { %v15190_v30 = vpop.f32.mrb[66].mxu0 }
0x2bc7   :  { %v12837_v62 = vpop.f32.mrb[67].mxu0 }
0x2be0   :  { %v15192_v32 = vpop.f32.mrb[68].mxu0 }
0x2be1   :  { %v12847_v34 = vpop.f32.mrb[69].mxu0 }
0x2be4   :  { %v10425_v18 = vpop.f32.mrb[70].mxu0 }
0x2be5   :  { %v10645_v19 = vmul.f32 0.35355338, %v10425_v18  ;;  %v12857_v43 = vpop.f32.mrb[71].mxu0 }
0x2be7   :  { %v10649_v31 = vsel %vm1722_vm7, %v10645_v19, -inf }
0x2be8   :  { %10650 = vmax.xlane.f32.xlu1 %v10649_v31 }
0x2c5d   :  { %v15195_v20 = vpop.f32.mrb[66].mxu1 }
0x2c5e   :  { %v12842_v21 = vpop.f32.mrb[67].mxu1 }
0x2c75   :  { %v10651_v56 = vpop.xlane.xlu1 %10650 }
0x2c76   :  { %v10661_v57 = vsub.f32 %v10645_v19, %v10651_v56 }
0x2c80   :  { %v15197_v33 = vpop.f32.mrb[68].mxu1 }
0x2c81   :  { %v12852_v6 = vpop.f32.mrb[69].mxu1 }
0x2c89   :  { %v10497_v41 = vpop.f32.mrb[70].mxu1 }
0x2c8a   :  { %v10646_v42 = vmul.f32 0.35355338, %v10497_v41  ;;  %v12862_v45 = vpop.f32.mrb[71].mxu1 }
0x2c8c   :  { %v10652_v47 = vsel %vm1722_vm7, %v10646_v42, -inf }
0x2c8d   :  { %v10569_v11 = vpop.f32.mrb[72].mxu0  ;;  %10653 = vmax.xlane.f32.xlu0 %v10652_v47 }
0x2c8e   :  { %v10647_v48 = vmul.f32 0.35355338, %v10569_v11  ;;  %v12867_v49 = vpop.f32.mrb[73].mxu0 }
0x2c90   :  { %v10655_v46 = vsel %vm1722_vm7, %v10647_v48, -inf }
0x2c91   :  { %10656 = vmax.xlane.f32.xlu1 %v10655_v46  ;;  %v10641_v26 = vpop.f32.mrb[72].mxu1 }
0x2c92   :  { %v10648_v38 = vmul.f32 0.35355338, %v10641_v26  ;;  %v12872_v54 = vpop.f32.mrb[73].mxu1 }
0x2c94   :  { %v10658_v55 = vsel %vm1722_vm7, %v10648_v38, -inf }
0x2c95   :  { %10659 = vmax.xlane.f32.xlu1 %v10658_v55 }
0x2ca3   :  { %10697 = vrot.lane.b32.xlu0 %v15153_v10, %s13664_s23 }
0x2ca6   :  { %10693 = vrot.lane.b32.xlu1 %v15097_v36, %s13664_s23  ;;  %v10665_v36 = vmul.f32 1.442695, %v10661_v57 }
0x2ca7   :  { %10701 = vrot.lane.b32.xlu0 %v15156_v13, %s13664_s23 }
0x2ca8   :  { %13310 = vpow2.f32 %v10665_v36 }
0x2caa   :  { %10695 = vrot.lane.b32.xlu1 %v15092_v35, %s13664_s23 }
0x2cab   :  { %10703 = vrot.lane.b32.xlu0 %v15129_v53, %s13664_s23 }
0x2cae   :  { %10699 = vrot.lane.b32.xlu1 %v15121_v52, %s13664_s23 }
0x2cb2   :  { %10705 = vrot.lane.b32.xlu1 %v15125_v39, %s13664_s23  ;;  %v13311_v51 = vpop.eup %13310 }
0x2cb3   :  { %v10673_v58 = vsel %vm1722_vm7, %v13311_v51, 0.0 }
0x2cb6   :  { %10707 = vrot.lane.b32.xlu1 %v15162_v14, %s13664_s23 }
0x2cca   :  { %10674 = vadd.xlane.f32.xlu0 %v10673_v58 }
0x2d1a   :  { %v10654_v35 = vpop.xlane.xlu0 %10653 }
0x2d1b   :  { %v10662_v59 = vsub.f32 %v10646_v42, %v10654_v35 }
0x2d1d   :  { %v10667_v53 = vmul.f32 1.442695, %v10662_v59 }
0x2d1e   :  { %v10657_v60 = vpop.xlane.xlu1 %10656  ;;  %v10698_v9 = vpop.permute.xlu0 %10697 }
0x2d1f   :  { %13312 = vpow2.f32 %v10667_v53  ;;  %v10663_v52 = vsub.f32 %v10647_v48, %v10657_v60 }
0x2d21   :  { %v10669_v61 = vmul.f32 1.442695, %v10663_v52 }
0x2d22   :  { %v10660_v1 = vpop.xlane.xlu1 %10659  ;;  %v10702_v10 = vpop.permute.xlu0 %10701 }
0x2d23   :  { %13314 = vpow2.f32 %v10669_v61  ;;  %v10664_v39 = vsub.f32 %v10648_v38, %v10660_v1 }
0x2d25   :  { %v10671_v2 = vmul.f32 1.442695, %v10664_v39 }
0x2d26   :  { %v10694_v13 = vpop.permute.xlu1 %10693  ;;  %v10704_v14 = vpop.permute.xlu0 %10703 }
0x2d27   :  { %13316 = vpow2.f32 %v10671_v2 }
0x2d29   :  { %v13313_v3 = vpop.eup %13312 }
0x2d2a   :  { %v10676_v4 = vsel %vm1722_vm7, %v13313_v3, 0.0  ;;  %v10696_v22 = vpop.permute.xlu1 %10695 }
0x2d2b   :  { %10677 = vadd.xlane.f32.xlu1 %v10676_v4 }
0x2d2d   :  { %v13315_v5 = vpop.eup %13314 }
0x2d2e   :  { %v10679_v0 = vsel %vm1722_vm7, %v13315_v5, 0.0  ;;  %v10700_v27 = vpop.permute.xlu1 %10699 }
0x2d2f   :  { %10680 = vadd.xlane.f32.xlu0 %v10679_v0 }
0x2d31   :  { %v13317_v8 = vpop.eup %13316 }
0x2d32   :  { %v10682_v12 = vsel %vm1722_vm7, %v13317_v8, 0.0  ;;  %v10706_v16 = vpop.permute.xlu1 %10705 }
0x2d33   :  { %10683 = vadd.xlane.f32.xlu0 %v10682_v12 }
0x2d36   :  { %v10708_v25 = vpop.permute.xlu1 %10707 }
0x2d57   :  { %v10675_v37 = vpop.xlane.xlu0 %10674 }
0x2d58   :  { %13318 = vrcp.f32 %v10675_v37 }
0x2d5e   :  { %10717 = vxpose.xlu1.b32.start [1/2] (short) (narrow) %v10694_v13, 8 }
0x2d60   :  { %10749 = vxpose.xlu0.b32.start [1/2] (short) (narrow) %v10698_v9, 8 }
0x2d62   :  { %v13319_v23 = vpop.eup %13318  ;;  %10718 = vxpose.xlu1.b32.end [2/2] (short) (narrow) %v10696_v22, 8 }
0x2d63   :  { %v10689_v24 = vmul.f32 %v13319_v23, %v13311_v51 }
0x2d64   :  { %10750 = vxpose.xlu0.b32.end [2/2] (short) (narrow) %v10700_v27, 8 }
0x2d65   :  { %12874 = vmatpush3.xpose.msk.msra.mxu0 %vm1722_vm7, %v10689_v24  ;;  %v12111_v24 = vld [vmem:[%s15416_s16 + $0x28] sm:$0xff] }
0x2d66   :  { %10813 = vxpose.xlu1.b32.start [1/2] (short) (narrow) %v10706_v16, 8  ;;  %12883 = vmatprep.subr.mxu0 %v13660_v15  ;;  %v12110_v16 = vld [vmem:[%s15416_s16 + $0x20] sm:$0xff] }
0x2d68   :  { %10781 = vxpose.xlu0.b32.start [1/2] (short) (narrow) %v10702_v10, 8 }
0x2d6a   :  { %10814 = vxpose.xlu1.b32.end [2/2] (short) (narrow) %v10708_v25, 8  ;;  %v13089_v25 = vpack.c.bf16 %v12111_v24, %v12110_v16  ;;  %v12116_v24 = vld [vmem:[#allocation12 + $0x1] ss:$0 sm:$0xff] }
0x2d6c   :  { %10782 = vxpose.xlu0.b32.end [2/2] (short) (narrow) %v10704_v14, 8 }
0x2d6e   :  { %9955 = vxpose.xlu1.b32.start.end [1/1] (short) (narrow) %v15195_v20, 8 }
0x2d70   :  { %9923 = vxpose.xlu0.b32.start.end [1/1] (short) (narrow) %v15190_v30, 8 }
0x2d72   :  { %10019 = vxpose.xlu1.b32.start.end [1/1] (short) (narrow) %v15197_v33, 8 }
0x2d74   :  { %9987 = vxpose.xlu0.b32.start.end [1/1] (short) (narrow) %v15192_v32, 8 }
0x2db8   :  { %v10678_v17 = vpop.xlane.xlu1 %10677 }
0x2db9   :  { %13320 = vrcp.f32 %v10678_v17 }
0x2dbc   :  { %v10681_v44 = vpop.xlane.xlu0 %10680 }
0x2dbd   :  { %13322 = vrcp.f32 %v10681_v44 }
0x2dc0   :  { %v10684_v62 = vpop.xlane.xlu0 %10683 }
0x2dc1   :  { %13324 = vrcp.f32 %v10684_v62 }
0x2dc3   :  { %v13321_v28 = vpop.eup %13320 }
0x2dc4   :  { %v10690_v29 = vmul.f32 %v13321_v28, %v13313_v3 }
0x2dc6   :  { %12879 = vmatpush3.xpose.msk.msra.mxu1 %vm1722_vm7, %v10690_v29 }
0x2dc7   :  { %12888 = vmatprep.subr.mxu1 %v13660_v15  ;;  %v13323_v34 = vpop.eup %13322 }
0x2dc8   :  { %v10691_v19 = vmul.f32 %v13323_v34, %v13315_v5 }
0x2dcb   :  { %v13325_v18 = vpop.eup %13324 }
0x2dcc   :  { %v10692_v43 = vmul.f32 %v13325_v18, %v13317_v8 }
0x2dde   :  { %v10733_v30 = vpop.trf.xlu1 }
0x2ddf   :  { %12876 = vmatmul.mubr.msk.f32.vlgmr.msra.gmra.mrb[74].mxu0 %vm1722_vm7, %v10733_v30 }
0x2de0   :  { %12884 = vmatpush3.xpose.msk.msra.mxu0 %vm1722_vm7, %v10691_v19  ;;  %v10765_v32 = vpop.trf.xlu0  ;;  %12885 = vmatprep.mubr.msk.f32.mxu0 %vm13665_vm4, %v13660_v15 }
0x2de1   :  { %12881 = vmatmul.mubr.msk.f32.vlgmr.msra.gmra.mrb[74].mxu1 %vm1722_vm7, %v10765_v32  ;;  %13090 = vmatprep.subr.bf16.mxu0 %v13089_v25 }
0x2de2   :  { %12889 = vmatpush3.xpose.msk.msra.mxu1 %vm1722_vm7, %v10692_v43  ;;  %12890 = vmatprep.mubr.msk.f32.mxu1 %vm13665_vm4, %v13660_v15 }
0x2de6   :  { %v10829_v31 = vpop.trf.xlu1 }
0x2de7   :  { %12891 = vmatmul.mubr.msk.f32.vlgmr.msra.gmra.mrb[76].mxu1 %vm1722_vm7, %v10829_v31 }
0x2de8   :  { %v10797_v20 = vpop.trf.xlu0 }
0x2de9   :  { %12886 = vmatmul.mubr.msk.f32.vlgmr.msra.gmra.mrb[76].mxu0 %vm1722_vm7, %v10797_v20 }
0x2dea   :  { %13092 = vmatpush3.bf16.msra.mxu0 %v13089_v25 }
0x2dee   :  { %v9971_v21 = vpop.trf.xlu1 }
0x2df0   :  { %v9939_v33 = vpop.trf.xlu0 }
0x2df2   :  { %v10035_v6 = vpop.trf.xlu1 }
0x2df3   :  { %v10067_v48 = vcombine.low %v9971_v21, %v10035_v6  ;;  %v10068_v49 = vcombine.high %v9971_v21, %v10035_v6 }
0x2df4   :  { %v10003_v42 = vpop.trf.xlu0 }
0x2df5   :  { %v10051_v46 = vcombine.low %v9939_v33, %v10003_v42  ;;  %v10052_v15 = vcombine.high %v9939_v33, %v10003_v42  ;;  %v10075_v26 = vrot.slane %v10067_v48, %v14263_v50  ;;  %v10082_v38 = vrot.slane %v10068_v49, %v14263_v50 }
0x2df7   :  { %v10059_v54 = vrot.slane %v10051_v46, %v14263_v50  ;;  %v10066_v55 = vrot.slane %v10052_v15, %v14263_v50 }
0x2df9   :  { %v10083_v58 = vcombine.low %v10059_v54, %v10075_v26  ;;  %v10084_v35 = vcombine.high %v10059_v54, %v10075_v26  ;;  %v10099_v59 = vcombine.low %v10066_v55, %v10082_v38  ;;  %v10100_v53 = vcombine.high %v10066_v55, %v10082_v38 }
0x2dfb   :  { %v10091_v60 = vrot.slane %v10083_v58, %v14270_v63  ;;  %v10098_v52 = vrot.slane %v10084_v35, %v14270_v63  ;;  %v10107_v61 = vrot.slane %v10099_v59, %v14270_v63  ;;  %v10114_v1 = vrot.slane %v10100_v53, %v14270_v63 }
0x2dfd   :  { %v10119_v39 = vcombine.low %v10091_v60, %v10098_v52  ;;  %v12094_v2 = vcombine.high %v10091_v60, %v10098_v52  ;;  %v10135_v3 = vcombine.low %v10107_v61, %v10114_v1  ;;  %v12095_v4 = vcombine.high %v10107_v61, %v10114_v1 }
0x2dff   :  { %v10126_v5 = vrot.slane %v10119_v39, %v14263_v50  ;;  %v10134_v0 = vrot.slane %v12094_v2, %v14263_v50  ;;  %v10142_v8 = vrot.slane %v10135_v3, %v14263_v50  ;;  %v10150_v12 = vrot.slane %v12095_v4, %v14263_v50 }
0x2e01   :  { %v10152_v9 = vcombine.high %v10126_v5, %v10134_v0  ;;  %v10168_v10 = vcombine.high %v10142_v8, %v10150_v12  ;;  %v10151_v27 = vcombine.low %v10126_v5, %v10134_v0  ;;  %v10167_v23 = vcombine.low %v10142_v8, %v10150_v12 }
0x2e03   :  { %v10166_v13 = vrot.slane %v10152_v9, %v14270_v63  ;;  %v10182_v14 = vrot.slane %v10168_v10, %v14270_v63  ;;  %v10159_v17 = vrot.slane %v10151_v27, %v14270_v63  ;;  %v10175_v28 = vrot.slane %v10167_v23, %v14270_v63 }
0x2e05   :  { %v10185_v22 = vcombine.low %v10166_v13, %v10182_v14  ;;  %v10186_v37 = vcombine.high %v10166_v13, %v10182_v14  ;;  %v10184_v29 = vcombine.high %v10159_v17, %v10175_v28  ;;  %v10183_v0 = vcombine.low %v10159_v17, %v10175_v28 }
0x2eb2   :  { %v10917_v41 = vpop.f32.mrb[74].mxu0 }
0x2eb3   :  { %11149 = vxpose.xlu0.b32.start.end [1/1] (short) (narrow) %v10917_v41, 8  ;;  %v12877_v45 = vpop.f32.mrb[75].mxu0 }
0x2eb4   :  { %v10993_v47 = vpop.f32.mrb[74].mxu1 }
0x2eb5   :  { %11181 = vxpose.xlu1.b32.start.end [1/1] (short) (narrow) %v10993_v47, 8  ;;  %v12882_v11 = vpop.f32.mrb[75].mxu1  ;;  %v12112_v47 = vld [vmem:[%s15416_s16 + $0x30] sm:$0xff] }
0x2eb6   :  { %v12113_v11 = vld [vmem:[%s15416_s16 + $0x38] sm:$0xff] }
0x2eb7   :  { %v13093_v48 = vpack.c.bf16 %v12113_v11, %v12112_v47 }
0x2eb9   :  { %13094 = vmatprep.subr.bf16.mxu0 %v13093_v48 }
0x2eba   :  { %v11145_v56 = vpop.f32.mrb[76].mxu1  ;;  %13096 = vmatpush3.bf16.msra.mxu0 %v13093_v48 }
0x2ebb   :  { %11245 = vxpose.xlu1.b32.start.end [1/1] (short) (narrow) %v11145_v56, 8  ;;  %v12892_v57 = vpop.f32.mrb[77].mxu1 }
0x2ebc   :  { %v11069_v36 = vpop.f32.mrb[76].mxu0 }
0x2ebd   :  { %11213 = vxpose.xlu0.b32.start.end [1/1] (short) (narrow) %v11069_v36, 8  ;;  %v12887_v51 = vpop.f32.mrb[77].mxu0 }
0x2ed9   :  { %10192 = vrot.lane.b32.xlu1 %v10185_v22, %s13643_s6 }
0x2edd   :  { %10196 = vrot.lane.b32.xlu1 %v10186_v37, %s13669_s0 }
0x2ee6   :  { %10188 = vrot.lane.b32.xlu0 %v10184_v29, %s13652_s3 }
0x2f33   :  { %v11165_v62 = vpop.trf.xlu0 }
0x2f35   :  { %v11197_v44 = vpop.trf.xlu1 }
0x2f3b   :  { %v11261_v34 = vpop.trf.xlu1 }
0x2f3c   :  { %v11293_v18 = vcombine.low %v11197_v44, %v11261_v34  ;;  %v11294_v19 = vcombine.high %v11197_v44, %v11261_v34 }
0x2f3d   :  { %v11229_v30 = vpop.trf.xlu0 }
0x2f3e   :  { %v11277_v43 = vcombine.low %v11165_v62, %v11229_v30  ;;  %v11278_v32 = vcombine.high %v11165_v62, %v11229_v30  ;;  %v11301_v31 = vrot.slane %v11293_v18, %v14263_v50  ;;  %v11308_v20 = vrot.slane %v11294_v19, %v14263_v50 }
0x2f40   :  { %v11285_v21 = vrot.slane %v11277_v43, %v14263_v50  ;;  %v11292_v33 = vrot.slane %v11278_v32, %v14263_v50 }
0x2f42   :  { %v11309_v6 = vcombine.low %v11285_v21, %v11301_v31  ;;  %v11310_v41 = vcombine.high %v11285_v21, %v11301_v31  ;;  %v11325_v42 = vcombine.low %v11292_v33, %v11308_v20  ;;  %v11326_v45 = vcombine.high %v11292_v33, %v11308_v20  ;;  %v12119_v33 = vld [vmem:[%s15420_s20 + $0x20] sm:$0xff] }
0x2f44   :  { %v11317_v49 = vrot.slane %v11309_v6, %v14270_v63  ;;  %v11324_v46 = vrot.slane %v11310_v41, %v14270_v63  ;;  %v11333_v15 = vrot.slane %v11325_v42, %v14270_v63  ;;  %v11340_v26 = vrot.slane %v11326_v45, %v14270_v63  ;;  %v12120_v6 = vld [vmem:[%s15420_s20 + $0x28] sm:$0xff]  ;;  %v12121_v42 = vld [vmem:[%s15420_s20 + $0x30] sm:$0xff]  ;;  %v12122_v45 = vld [vmem:[%s15420_s20 + $0x38] sm:$0xff] }
0x2f45   :  { %v13097_v41 = vpack.c.bf16 %v12120_v6, %v12119_v33  ;;  %v13101_v47 = vpack.c.bf16 %v12122_v45, %v12121_v42 }
0x2f46   :  { %v11345_v38 = vcombine.low %v11317_v49, %v11324_v46  ;;  %v12108_v54 = vcombine.high %v11317_v49, %v11324_v46  ;;  %v11361_v55 = vcombine.low %v11333_v15, %v11340_v26  ;;  %v12109_v56 = vcombine.high %v11333_v15, %v11340_v26 }
0x2f47   :  { %13098 = vmatprep.subr.bf16.mxu1 %v13097_v41 }
0x2f48   :  { %v11352_v57 = vrot.slane %v11345_v38, %v14263_v50  ;;  %v11360_v36 = vrot.slane %v12108_v54, %v14263_v50  ;;  %v11368_v51 = vrot.slane %v11361_v55, %v14263_v50  ;;  %v11376_v58 = vrot.slane %v12109_v56, %v14263_v50  ;;  %13100 = vmatpush3.bf16.msra.mxu1 %v13097_v41  ;;  %v12117_v54 = vld [vmem:[#allocation13 + $0x1] ss:$0 sm:$0xff]  ;;  %v12118_v56 = vld [vmem:[#allocation15 + $0x1] ss:$0 sm:$0xff] }
0x2f49   :  { %13102 = vmatprep.subr.bf16.mxu1 %v13101_v47 }
0x2f4a   :  { %v11377_v35 = vcombine.low %v11352_v57, %v11360_v36  ;;  %v11393_v59 = vcombine.low %v11368_v51, %v11376_v58  ;;  %v11378_v53 = vcombine.high %v11352_v57, %v11360_v36  ;;  %v11394_v60 = vcombine.high %v11368_v51, %v11376_v58 }
0x2f4b   :  { %v10193_v5 = vpop.permute.xlu1 %10192 }
0x2f4c   :  { %v11385_v52 = vrot.slane %v11377_v35, %v14270_v63  ;;  %v11401_v61 = vrot.slane %v11393_v59, %v14270_v63  ;;  %v11392_v1 = vrot.slane %v11378_v53, %v14270_v63  ;;  %v11408_v39 = vrot.slane %v11394_v60, %v14270_v63  ;;  %13104 = vmatpush3.bf16.msra.mxu1 %v13101_v47  ;;  %v12126_v53 = vld [vmem:[%s15472_s30 + $0x80] sm:$0xff]  ;;  %v12127_v60 = vld [vmem:[%s15472_s30 + $0x88] sm:$0xff] }
0x2f4e   :  { %v11410_v2 = vcombine.high %v11385_v52, %v11401_v61  ;;  %v11411_v3 = vcombine.low %v11392_v1, %v11408_v39  ;;  %v11409_v4 = vcombine.low %v11385_v52, %v11401_v61  ;;  %v11412_v50 = vcombine.high %v11392_v1, %v11408_v39  ;;  %v12128_v61 = vld [vmem:[%s15472_s30 + $0x90] sm:$0xff]  ;;  %v12129_v1 = vld [vmem:[%s15472_s30 + $0x98] sm:$0xff] }
0x2f4f   :  { %v10197_v12 = vpop.permute.xlu1 %10196  ;;  %v13105_v52 = vpack.c.bf16 %v12127_v60, %v12126_v53  ;;  %v13109_v39 = vpack.c.bf16 %v12129_v1, %v12128_v61  ;;  %v11833_v61 = vld [vmem:[%s15473_s22 + $0x8] sm:$0xff] }
0x2f50   :  { %11414 = vrot.lane.b32.xlu1 %v11410_v2, %s13652_s3  ;;  %11418 = vrot.lane.b32.xlu0 %v11411_v3, %s13643_s6  ;;  %v12130_v2 = vld [vmem:[%s15472_s30 + $0xa0] sm:$0xff]  ;;  %v12131_v3 = vld [vmem:[%s15472_s30 + $0xa8] sm:$0xff] }
0x2f51   :  { %13106 = vmatprep.subr.bf16.mxu0 %v13105_v52 }
0x2f54   :  { %11422 = vrot.lane.b32.xlu1 %v11412_v50, %s13669_s0  ;;  %v12132_v50 = vld [vmem:[%s15472_s30 + $0xb0] sm:$0xff] }
0x2f58   :  { %v10189_v8 = vpop.permute.xlu0 %10188 }
0x2f59   :  { %v10199_v9 = vsel %vm655_vm5, %v10183_v0, %v10189_v8  ;;  %v12134_v8 = vld [vmem:[%s15472_s30 + $0xc0] sm:$0xff] }
0x2f5a   :  { %v10200_v10 = vsel %vm1722_vm7, %v10199_v9, %v10193_v5  ;;  %v12133_v5 = vld [vmem:[%s15472_s30 + $0xb8] sm:$0xff]  ;;  %v12136_v9 = vld [vmem:[%s15472_s30 + $0xd0] sm:$0xff] }
0x2f5b   :  { %v10201_v63 = vsel %vm1724_vm8, %v10200_v10, %v10197_v12  ;;  %v13117_v0 = vpack.c.bf16 %v12133_v5, %v12132_v50  ;;  %v12135_v12 = vld [vmem:[%s15472_s30 + $0xc8] sm:$0xff] }
0x2f5c   :  { %12901 = vmatprep.mubr.msk.f32.mxu0 %vm372_vm3, %v10201_v63  ;;  %v13121_v10 = vpack.c.bf16 %v12135_v12, %v12134_v8  ;;  %v12137_v63 = vld [vmem:[%s15472_s30 + $0xd8] sm:$0xff] }
0x2fc2   :  { %v11415_v13 = vpop.permute.xlu1 %11414  ;;  %v11419_v22 = vpop.permute.xlu0 %11418 }
0x2fc3   :  { %v11425_v14 = vsel %vm655_vm5, %v11409_v4, %v11415_v13  ;;  %v13113_v4 = vpack.c.bf16 %v12131_v3, %v12130_v2  ;;  %v13125_v13 = vpack.c.bf16 %v12137_v63, %v12136_v9  ;;  %v11835_v2 = vld [vmem:[%s15473_s22 + $0x18] sm:$0xff] }
0x2fc4   :  { %v11426_v37 = vsel %vm1722_vm7, %v11425_v14, %v11419_v22  ;;  %v12138_v14 = vld [vmem:[%s15472_s30 + $0xe0] sm:$0xff]  ;;  %v12139_v22 = vld [vmem:[%s15472_s30 + $0xe8] sm:$0xff] }
0x2fc6   :  { %v11423_v27 = vpop.permute.xlu1 %11422 }
0x2fc7   :  { %v11427_v23 = vsel %vm1724_vm8, %v11426_v37, %v11423_v27  ;;  %v13129_v37 = vpack.c.bf16 %v12139_v22, %v12138_v14  ;;  %v12140_v27 = vld [vmem:[%s15472_s30 + $0xf0] sm:$0xff] }
0x2fc8   :  { %12902 = vmatmul.mubr.msk.f32.vlgmr.msra.gmra.mrb[78].mxu0 %vm372_vm3, %v11427_v23  ;;  %v12141_v23 = vld [vmem:[%s15472_s30 + $0xf8] sm:$0xff]  ;;  %v12144_v22 = vld [vmem:[#allocation21] ss:$0 sm:$0xff] }
0x2fc9   :  { %13108 = vmatpush3.bf16.msra.mxu0 %v13105_v52  ;;  %v11832_v52 = vld [vmem:[%s15473_s22] sm:$0xff] }
0x2fca   :  { %13110 = vmatprep.subr.bf16.mxu0 %v13109_v39  ;;  %v13137_v1 = vpack.c.bf16 %v11833_v61, %v11832_v52 }
0x2fcc   :  { %13138 = vmatprep.subr.bf16.mxu1 %v13137_v1 }
0x2fcd   :  { %13112 = vmatpush3.bf16.msra.mxu0 %v13109_v39  ;;  %v11834_v39 = vld [vmem:[%s15473_s22 + $0x10] sm:$0xff] }
0x2fce   :  { %13114 = vmatprep.subr.bf16.mxu0 %v13113_v4  ;;  %v13141_v3 = vpack.c.bf16 %v11835_v2, %v11834_v39 }
0x2fd1   :  { %13116 = vmatpush3.bf16.msra.mxu0 %v13113_v4 }
0x2fd2   :  { %13118 = vmatprep.subr.bf16.mxu0 %v13117_v0 }
0x2fd5   :  { %13120 = vmatpush3.bf16.msra.mxu0 %v13117_v0 }
0x2fd6   :  { %13122 = vmatprep.subr.bf16.mxu0 %v13121_v10 }
0x2fd9   :  { %13124 = vmatpush3.bf16.msra.mxu0 %v13121_v10  ;;  %v12143_v10 = vld [vmem:[#allocation19] ss:$0 sm:$0xff] }
0x2fda   :  { %13126 = vmatprep.subr.bf16.mxu0 %v13125_v13 }
0x2fdd   :  { %13128 = vmatpush3.bf16.msra.mxu0 %v13125_v13 }
0x2fde   :  { %13130 = vmatprep.subr.bf16.mxu0 %v13129_v37 }
0x2fe1   :  { %13132 = vmatpush3.bf16.msra.mxu0 %v13129_v37 }
0x309b   :  { %v12903_v16 = vpop.f32.mrb[78].mxu0 }
0x309c   :  { %v11515_v25 = vadd.f32 %v12903_v16, %v15005_v7  ;;  %v11505_v17 = vpop.f32.mrb[79].mxu0  ;;  %v13133_v16 = vpack.c.bf16 %v12141_v23, %v12140_v27 }
0x309d   :  { %v11514_v28 = vadd.f32 %v11505_v17, %v15007_v40 }
0x309e   :  { %v15300_v29 = vadd.f32 %v12116_v24, %v11515_v25  ;;  %13134 = vmatprep.subr.bf16.mxu0 %v13133_v16 }
0x309f   :  { %v15302_v44 = vadd.f32 %v12116_v24, %v11514_v28  ;;  %13136 = vmatpush3.bf16.msra.mxu0 %v13133_v16  ;;  %v12123_v24 = vld [vmem:[#allocation16 + $0x1] ss:$0 sm:$0xff] }
0x30a0   :  { %v11533_v62 = vsel %vm372_vm3, %v15300_v29, 0.0 }
0x30a1   :  { %11534 = vadd.xlane.f32.xlu1 %v11533_v62  ;;  %v11530_v34 = vsel %vm372_vm3, %v15302_v44, 0.0 }
0x30a2   :  { %11531 = vadd.xlane.f32.xlu0 %v11530_v34 }
0x312e   :  { %v11535_v18 = vpop.xlane.xlu1 %11534 }
0x312f   :  { %v11537_v19 = vmul.f32 0.03125, %v11535_v18  ;;  %v11532_v30 = vpop.xlane.xlu0 %11531 }
0x3130   :  { %v11536_v43 = vmul.f32 0.03125, %v11532_v30 }
0x3131   :  { %v11539_v7 = vsub.f32 %v15300_v29, %v11537_v19 }
0x3132   :  { %v11538_v40 = vsub.f32 %v15302_v44, %v11536_v43 }
0x3133   :  { %v11541_v20 = vmul.f32 %v11539_v7, %v11539_v7 }
0x3134   :  { %v11540_v32 = vmul.f32 %v11538_v40, %v11538_v40 }
0x3135   :  { %v11545_v21 = vsel %vm372_vm3, %v11541_v20, 0.0 }
0x3136   :  { %v11542_v31 = vsel %vm372_vm3, %v11540_v32, 0.0 }
0x3137   :  { %11543 = vadd.xlane.f32.xlu0 %v11542_v31 }
0x313b   :  { %11546 = vadd.xlane.f32.xlu0 %v11545_v21 }
0x31c4   :  { %v11544_v11 = vpop.xlane.xlu0 %11543 }
0x31c5   :  { %v11548_v48 = vmul.f32 0.03125, %v11544_v11 }
0x31c7   :  { %v11550_v49 = vadd.f32 1e-05, %v11548_v48 }
0x31c8   :  { %v11547_v46 = vpop.xlane.xlu0 %11546 }
0x31c9   :  { %13326 = vrsqrt.f32 %v11550_v49  ;;  %v11549_v15 = vmul.f32 0.03125, %v11547_v46  ;;  %v12142_v49 = vld [vmem:[#allocation18 + $0x1] ss:$0 sm:$0xff] }
0x31cb   :  { %v11551_v26 = vadd.f32 1e-05, %v11549_v15 }
0x31cd   :  { %13328 = vrsqrt.f32 %v11551_v26 }
0x31d3   :  { %v13327_v38 = vpop.eup %13326 }
0x31d4   :  { %v11554_v55 = vmul.f32 %v13327_v38, %v11538_v40 }
0x31d6   :  { %v11562_v57 = vmul.f32 %v12117_v54, %v11554_v55 }
0x31d7   :  { %v13329_v36 = vpop.eup %13328 }
0x31d8   :  { %v11555_v51 = vmul.f32 %v13329_v36, %v11539_v7  ;;  %v11570_v58 = vadd.f32 %v12118_v56, %v11562_v57 }
0x31da   :  { %v11563_v35 = vmul.f32 %v12117_v54, %v11555_v51  ;;  %12912 = vmatprep.mubr.msk.f32.mxu1 %vm372_vm3, %v11570_v58 }
0x31dc   :  { %v11571_v59 = vadd.f32 %v12118_v56, %v11563_v35 }
0x31de   :  { %12913 = vmatmul.mubr.msk.f32.vlgmr.msra.gmra.mrb[78].mxu1 %vm372_vm3, %v11571_v59 }
0x31df   :  { %13140 = vmatpush3.bf16.msra.mxu1 %v13137_v1 }
0x31e0   :  { %13142 = vmatprep.subr.bf16.mxu1 %v13141_v3 }
0x31e3   :  { %13144 = vmatpush3.bf16.msra.mxu1 %v13141_v3 }
0x32b1   :  { %v12914_v25 = vpop.f32.mrb[78].mxu1 }
0x32b2   :  { %v11663_v17 = vadd.f32 %v12914_v25, %v12123_v24  ;;  %v11657_v28 = vpop.f32.mrb[79].mxu1 }
0x32b3   :  { %v11658_v62 = vadd.f32 %v12123_v24, %v11657_v28 }
0x32b4   :  { %v11667_v34 = vmul.f32 %v11663_v17, %v11663_v17 }
0x32b5   :  { %v11666_v18 = vmul.f32 %v11658_v62, %v11658_v62 }
0x32b6   :  { %v11669_v19 = vmul.f32 %v11667_v34, %v11663_v17 }
0x32b7   :  { %v11668_v30 = vmul.f32 %v11666_v18, %v11658_v62 }
0x32b8   :  { %v11671_v43 = vmul.f32 0.044715, %v11669_v19 }
0x32b9   :  { %v11670_v7 = vmul.f32 0.044715, %v11668_v30 }
0x32ba   :  { %v11673_v40 = vadd.f32 %v11671_v43, %v11663_v17 }
0x32bb   :  { %v11672_v32 = vadd.f32 %v11670_v7, %v11658_v62 }
0x32bc   :  { %v11675_v31 = vmul.f32 0.7978846, %v11673_v40 }
0x32bd   :  { %v11674_v20 = vmul.f32 0.7978846, %v11672_v32 }
0x32be   :  { %13330 = vtanh.f32 %v11675_v31 }
0x32bf   :  { %13332 = vtanh.f32 %v11674_v20 }
0x32c8   :  { %v13331_v21 = vpop.eup %13330 }
0x32c9   :  { %v13333_v33 = vpop.eup %13332  ;;  %v11679_v6 = vadd.f32 1.0, %v13331_v21 }
0x32ca   :  { %v11678_v41 = vadd.f32 1.0, %v13333_v33 }
0x32cb   :  { %v11681_v42 = vmul.f32 0.5, %v11679_v6 }
0x32cc   :  { %v11680_v45 = vmul.f32 0.5, %v11678_v41 }
0x32cd   :  { %v11683_v11 = vmul.f32 %v11681_v42, %v11663_v17 }
0x32ce   :  { %v11682_v47 = vmul.f32 %v11680_v45, %v11658_v62 }
0x32d0   :  { %12947 = vmatprep.mubr.f32.mxu0 %v11682_v47 }
0x32d1   :  { %12948 = vmatmul.mubr.f32.vlgmr.msra.gmra.mrb[80].mxu0 %v11683_v11 }
0x33a4   :  { %v12949_v48 = vpop.f32.mrb[80].mxu0 }
0x33a5   :  { %v11777_v46 = vadd.f32 %v12949_v48, %v15300_v29  ;;  %v11767_v15 = vpop.f32.mrb[81].mxu0 }
0x33a6   :  { %v11776_v26 = vadd.f32 %v11767_v15, %v15302_v44 }
0x33a7   :  { %v11787_v38 = vadd.f32 %v12142_v49, %v11777_v46 }
0x33a8   :  { %v11786_v54 = vadd.f32 %v12142_v49, %v11776_v26 }
0x33a9   :  { %v11793_v55 = vsel %vm372_vm3, %v11787_v38, 0.0 }
0x33aa   :  { %11794 = vadd.xlane.f32.xlu0 %v11793_v55  ;;  %v11790_v56 = vsel %vm372_vm3, %v11786_v54, 0.0 }
0x33ab   :  { %11791 = vadd.xlane.f32.xlu1 %v11790_v56 }
0x3437   :  { %v11795_v57 = vpop.xlane.xlu0 %11794 }
0x3438   :  { %v11797_v36 = vmul.f32 0.03125, %v11795_v57  ;;  %v11792_v51 = vpop.xlane.xlu1 %11791 }
0x3439   :  { %v11796_v58 = vmul.f32 0.03125, %v11792_v51 }
0x343a   :  { %v11799_v35 = vsub.f32 %v11787_v38, %v11797_v36 }
0x343b   :  { %v11798_v59 = vsub.f32 %v11786_v54, %v11796_v58 }
0x343c   :  { %v11801_v53 = vmul.f32 %v11799_v35, %v11799_v35 }
0x343d   :  { %v11800_v60 = vmul.f32 %v11798_v59, %v11798_v59 }
0x343e   :  { %v11805_v29 = vsel %vm372_vm3, %v11801_v53, 0.0 }
0x343f   :  { %11806 = vadd.xlane.f32.xlu0 %v11805_v29  ;;  %v11802_v44 = vsel %vm372_vm3, %v11800_v60, 0.0 }
0x3440   :  { %11803 = vadd.xlane.f32.xlu1 %v11802_v44 }
0x34cc   :  { %v11807_v4 = vpop.xlane.xlu0 %11806 }
0x34cd   :  { %v11809_v50 = vmul.f32 0.03125, %v11807_v4  ;;  %v11804_v5 = vpop.xlane.xlu1 %11803 }
0x34ce   :  { %v11808_v0 = vmul.f32 0.03125, %v11804_v5 }
0x34cf   :  { %v11811_v8 = vadd.f32 1e-05, %v11809_v50 }
0x34d0   :  { %v11810_v12 = vadd.f32 1e-05, %v11808_v0 }
0x34d1   :  { %13334 = vrsqrt.f32 %v11811_v8 }
0x34d2   :  { %13336 = vrsqrt.f32 %v11810_v12 }
0x34db   :  { %v13335_v9 = vpop.eup %13334 }
0x34dc   :  { %v13337_v63 = vpop.eup %13336  ;;  %v11815_v13 = vmul.f32 %v13335_v9, %v11799_v35 }
0x34dd   :  { %v11814_v14 = vmul.f32 %v13337_v63, %v11798_v59 }
0x34de   :  { %v11823_v37 = vmul.f32 %v12143_v10, %v11815_v13 }
0x34df   :  { %v11822_v27 = vmul.f32 %v12143_v10, %v11814_v14 }
0x34e0   :  { %v11831_v16 = vadd.f32 %v12144_v22, %v11823_v37 }
0x34e1   :  { %v11830_v23 = vadd.f32 %v12144_v22, %v11822_v27 }
0x34e3   :  { %12958 = vmatprep.mubr.msk.f32.mxu1 %vm372_vm3, %v11830_v23 }
0x34e4   :  { %12959 = vmatmul.mubr.msk.f32.vlgmr.msra.gmra.mrb[80].mxu1 %vm372_vm3, %v11831_v16 }
0x35b7   :  { %v12960_v24 = vpop.f32.mrb[80].mxu1 }
0x35b8   :  { %11918 = vst [vmem:[%s15474_s11 + $0x8] sm:$0xff] %v12960_v24  ;;  %v11908_v25 = vpop.f32.mrb[81].mxu1 }
0x35b9   :  { %11917 = vst [vmem:[%s15474_s11] sm:$0xff] %v11908_v25 }
0x35ba   :  { %11923 = vsyncpa [#allocation3], 1 }
0x35bb   :  { %11924 = vsyncpa [#allocation5], 1 }
0x35bc   :  { %11925 = vsyncpa [#allocation8], 1 }
0x35bd   :  { %11926 = vsyncpa [#allocation11], 1 }
0x35be   :  { %11927 = vsyncpa [#allocation14], 1 }
0x35bf   :  { %11928 = vsyncpa [#allocation17], 1 }
0x35c0   :  { %11929 = vsyncpa [#allocation20], 1 }

</bundles_post_ra>
